<compile_context>
chip_gen: v7x
topology: tpu7x:2x2x1
jax: 0.10.0
libtpu: 0.0.40
codegen_flags: <defaults>
</compile_context>

<pallas_src>
import numpy as np

import jax
import jax.numpy as jnp
from jax import lax
from jax.experimental import pallas as pl
from jax.experimental.pallas import tpu as pltpu


# -----------------------------------------------------------------------------
# Static FineNet geometry for 16x16 inputs (square spatial dims throughout).
#   (kind, Cin, Cout, kernel, stride, pad, H_in)
# -----------------------------------------------------------------------------
_LAYERS = (
    ("conv",     2,  32, 5, 2, 2, 16),   # enc1: 16 -> 8
    ("conv",    32,  64, 3, 2, 1,  8),   # enc2:  8 -> 4
    ("conv",    64, 128, 3, 2, 1,  4),   # enc3:  4 -> 2
    ("deconv", 128,  64, 4, 2, 1,  2),   # dec1:  2 -> 4
    ("deconv",  64,  32, 4, 2, 1,  4),   # dec2:  4 -> 8
    ("deconv",  32,   2, 4, 2, 1,  8),   # dec3:  8 -> 16
)
_NAMES = ("enc1", "enc2", "enc3", "dec1", "dec2", "dec3")
_NLAYERS = len(_LAYERS)

# ConvTranspose2d(k=4, s=2, p=1) phase decomposition: output row 2m+a reads
# input rows (m + a + j - 1), j in {0,1}, with kernel tap kh = _DECONV_TAPS[a][j]
# (and identically along the width).
_DECONV_TAPS = ((3, 1), (2, 0))


def _layer_geoms():
    geoms = []
    for kind, cin, cout, k, s, p, hin in _LAYERS:
        if kind == "conv":
            hout = (hin + 2 * p - k) // s + 1
            n_taps = k
            gather_rows = hout
        else:
            hout = 2 * hin
            n_taps = 4
            gather_rows = hin
        geoms.append(dict(
            kind=kind, cin=cin, cout=cout, k=k, stride=s, pad=p,
            hin=hin, hout=hout,
            in_w=hin * cin,                 # input activation row width (lanes)
            out_w=hout * cout,              # output activation row width (lanes)
            t_shape=(n_taps, hin * cin, hout * cout),
            gather_shape=(gather_rows, hin * cin),
        ))
    return tuple(geoms)


_GEOMS = _layer_geoms()


# -----------------------------------------------------------------------------
# One-time (init) weight baking: PyTorch layout -> lane-dense block-Toeplitz
# GEMM matrices in the activation "row" layout (H, W*C).
# -----------------------------------------------------------------------------
def _bake_conv(w_oihw, bias, g):
    """Conv2d weights -> per-kh block-Toeplitz RHS (folds kw taps, W stride,
    W zero-padding and the channel contraction)."""
    w = np.asarray(w_oihw, np.float32)                 # (Cout, Cin, k, k)
    cout, cin, k, _ = w.shape
    win, wout, s, p = g["hin"], g["hout"], g["stride"], g["pad"]
    w_hwio = np.transpose(w, (2, 3, 1, 0))             # (kh, kw, Cin, Cout)
    t = np.zeros(g["t_shape"], np.float32)             # (k, win*cin, wout*cout)
    for kh in range(k):
        for wo in range(wout):
            for kw in range(k):
                wi = wo * s + kw - p                   # unpadded input column
                if 0 <= wi < win:
                    t[kh, wi * cin:(wi + 1) * cin,
                      wo * cout:(wo + 1) * cout] = w_hwio[kh, kw]
    brow = np.tile(np.asarray(bias, np.float32), wout).reshape(1, wout * cout)
    return jnp.asarray(t, jnp.bfloat16), jnp.asarray(brow, jnp.float32)


def _bake_deconv(w_iohw, bias, g):
    """ConvTranspose2d(k=4,s=2,p=1) weights -> 4 phase RHS matrices.
    T[2a+j] maps input rows (m+a+j-1) to the full interleaved output row 2m+a."""
    w = np.asarray(w_iohw, np.float32)                 # (Cin, Cout, 4, 4)
    cin, cout, _, _ = w.shape
    win = g["hin"]
    t = np.zeros((2, 2, win * cin, 2 * win * cout), np.float32)
    for a in range(2):              # output-row phase (selects kh taps)
        for j in range(2):          # row tap
            for b in range(2):      # output-col phase (selects kw taps)
                for n in range(win):
                    for l in range(2):          # col tap
                        c = n + b + l - 1       # unpadded input column
                        if 0 <= c < win:
                            ow = 2 * n + b
                            t[a, j, c * cin:(c + 1) * cin,
                              ow * cout:(ow + 1) * cout] = \
                                w[:, :, _DECONV_TAPS[a][j], _DECONV_TAPS[b][l]]
    brow = np.tile(np.asarray(bias, np.float32), 2 * win).reshape(1, 2 * win * cout)
    return (jnp.asarray(t.reshape(g["t_shape"]), jnp.bfloat16),
            jnp.asarray(brow, jnp.float32))


def bake_params(params):
    """Pre-bake all weight layout work at init time (no layout HLOs per forward)."""
    baked = []
    for name, g in zip(_NAMES, _GEOMS):
        w, b = params[name + "_w"], params[name + "_b"]
        t, brow = (_bake_conv if g["kind"] == "conv" else _bake_deconv)(w, b, g)
        baked += [t, brow]
    return tuple(baked)


# -----------------------------------------------------------------------------
# The fused Pallas kernel: one grid step == one image, whole network in VMEM.
# -----------------------------------------------------------------------------
def _finenet_kernel(x_ref, *refs):
    nw = 2 * _NLAYERS
    w_refs = refs[:nw]                      # (T, bias) per layer
    out_ref = refs[nw]
    acts = refs[nw + 1:nw + _NLAYERS]       # 5 hidden activations (VMEM scratch)
    gathers = refs[nw + _NLAYERS:]          # 6 row-gather buffers (VMEM scratch)

    def gather(gref, src, rows):
        """gref[i] = src[rows[i]]  (zeros when the row is in the zero padding)."""
        hsrc = src.shape[0]
        for i, r in enumerate(rows):
            if 0 <= r < hsrc:
                gref[i:i + 1, :] = src[r:r + 1, :]
            else:
                gref[i:i + 1, :] = jnp.zeros((1, gref.shape[1]), gref.dtype)

    def mm(lhs, rhs_bf16):
        return jnp.dot(lhs.astype(jnp.bfloat16), rhs_bf16,
                       preferred_element_type=jnp.float32)

    src = x_ref
    for li, g in enumerate(_GEOMS):
        t_ref, b_ref = w_refs[2 * li], w_refs[2 * li + 1]
        gref = gathers[li]
        last = li == _NLAYERS - 1
        dst = out_ref if last else acts[li]

        if g["kind"] == "conv":
            k, s, p = g["k"], g["stride"], g["pad"]
            acc = None
            for kh in range(k):
                gather(gref, src, [s * ho + kh - p for ho in range(g["hout"])])
                d = mm(gref[...], t_ref[kh])
                acc = d if acc is None else acc + d
            acc = jnp.maximum(acc + b_ref[...], 0.0)     # encoder layers: ReLU
            dst[...] = acc                               # full-block lane-dense store
        else:
            hin = g["hin"]
            for a in range(2):                           # output-row phase
                acc = None
                for j in range(2):                       # row tap
                    if a + j == 1:                       # taps == the full input block
                        lhs = src[...]
                    else:
                        gather(gref, src, [m + a + j - 1 for m in range(hin)])
                        lhs = gref[...]
                    d = mm(lhs, t_ref[2 * a + j])
                    acc = d if acc is None else acc + d
                acc = acc + b_ref[...]
                if not last:
                    acc = jnp.maximum(acc, 0.0)
                for m in range(hin):                     # interleave phase rows
                    r = 2 * m + a
                    dst[r:r + 1, :] = acc[m:m + 1, :]
        src = dst


def _finenet_call(batch):
    g0, gl = _GEOMS[0], _GEOMS[-1]

    in_specs = [pl.BlockSpec((None, g0["hin"], g0["in_w"]), lambda n: (n, 0, 0))]
    for g in _GEOMS:
        in_specs.append(pl.BlockSpec(g["t_shape"], lambda n: (0, 0, 0)))
        in_specs.append(pl.BlockSpec((1, g["out_w"]), lambda n: (0, 0)))

    out_spec = pl.BlockSpec((None, gl["hout"], gl["out_w"]), lambda n: (n, 0, 0))
    out_shape = jax.ShapeDtypeStruct((batch, gl["hout"], gl["out_w"]), jnp.float32)

    scratch = [pltpu.VMEM((g["hout"], g["out_w"]), jnp.float32) for g in _GEOMS[:-1]]
    scratch += [pltpu.VMEM(g["gather_shape"], jnp.float32) for g in _GEOMS]

    return pl.pallas_call(
        _finenet_kernel,
        out_shape=out_shape,
        grid=(batch,),
        in_specs=in_specs,
        out_specs=out_spec,
        scratch_shapes=scratch,
        compiler_params=pltpu.CompilerParams(
            dimension_semantics=("parallel",)),
    )


def fine_net_forward(baked, flow_nchw):
    """flow_nchw: (N, 2, 16, 16) float32 (PyTorch layout). Returns NCHW output."""
    n, c, h, w = flow_nchw.shape
    g0, gl = _GEOMS[0], _GEOMS[-1]
    assert (c, h, w) == (g0["cin"], g0["hin"], g0["hin"])
    x_rows = jnp.transpose(flow_nchw.astype(jnp.float32),
                           (0, 2, 3, 1)).reshape(n, h, h * c)
    out_rows = _finenet_call(n)(x_rows, *baked)
    out = out_rows.reshape(n, gl["hout"], gl["hout"], gl["cout"])
    return jnp.transpose(out, (0, 3, 1, 2))


# -----------------------------------------------------------------------------
# Parameter init (PyTorch-layout raw weights) and a pure-XLA reference.
# -----------------------------------------------------------------------------
def init_params(key):
    def conv_w(k_, cout, cin, ks):
        return jax.random.normal(k_, (cout, cin, ks, ks), jnp.float32) / np.sqrt(cin * ks * ks)

    def convt_w(k_, cin, cout, ks):
        return jax.random.normal(k_, (cin, cout, ks, ks), jnp.float32) / np.sqrt(cin * ks * ks)

    ks = jax.random.split(key, 12)
    return {
        "enc1_w": conv_w(ks[0], 32, 2, 5),   "enc1_b": 0.01 * jax.random.normal(ks[1], (32,)),
        "enc2_w": conv_w(ks[2], 64, 32, 3),  "enc2_b": 0.01 * jax.random.normal(ks[3], (64,)),
        "enc3_w": conv_w(ks[4], 128, 64, 3), "enc3_b": 0.01 * jax.random.normal(ks[5], (128,)),
        "dec1_w": convt_w(ks[6], 128, 64, 4), "dec1_b": 0.01 * jax.random.normal(ks[7], (64,)),
        "dec2_w": convt_w(ks[8], 64, 32, 4),  "dec2_b": 0.01 * jax.random.normal(ks[9], (32,)),
        "dec3_w": convt_w(ks[10], 32, 2, 4),  "dec3_b": 0.01 * jax.random.normal(ks[11], (2,)),
    }


def _reference_forward(params, flow_nchw):
    """Pure XLA reference with PyTorch semantics (used only for the self-check)."""
    x = jnp.transpose(flow_nchw, (0, 2, 3, 1)).astype(jnp.float32)

    def conv(x, w_oihw, b, stride, pad):
        y = lax.conv_general_dilated(
            x, w_oihw.astype(jnp.float32),
            window_strides=(stride, stride),
            padding=((pad, pad), (pad, pad)),
            dimension_numbers=("NHWC", "OIHW", "NHWC"),
            precision=lax.Precision.HIGHEST)
        return y + b

    def deconv(x, w_iohw, b, stride, pad):
        k = w_iohw.shape[-1]
        w_conv = jnp.transpose(w_iohw[:, :, ::-1, ::-1], (1, 0, 2, 3))
        y = lax.conv_general_dilated(
            x, w_conv.astype(jnp.float32),
            window_strides=(1, 1),
            padding=((k - 1 - pad,) * 2, (k - 1 - pad,) * 2),
            lhs_dilation=(stride, stride),
            dimension_numbers=("NHWC", "OIHW", "NHWC"),
            precision=lax.Precision.HIGHEST)
        return y + b

    x = jax.nn.relu(conv(x, params["enc1_w"], params["enc1_b"], 2, 2))
    x = jax.nn.relu(conv(x, params["enc2_w"], params["enc2_b"], 2, 1))
    x = jax.nn.relu(conv(x, params["enc3_w"], params["enc3_b"], 2, 1))
    x = jax.nn.relu(deconv(x, params["dec1_w"], params["dec1_b"], 2, 1))
    x = jax.nn.relu(deconv(x, params["dec2_w"], params["dec2_b"], 2, 1))
    x = deconv(x, params["dec3_w"], params["dec3_b"], 2, 1)
    return jnp.transpose(x, (0, 3, 1, 2))


if __name__ == "__main__":
    key = jax.random.PRNGKey(0)
    pkey, xkey = jax.random.split(key)
    params = init_params(pkey)
    baked = bake_params(params)                       # one-time layout baking

    # flow: (N=2, C=2, H=16, W=16), NCHW like the PyTorch module
    flow = jax.random.normal(xkey, (2, 2, 16, 16), jnp.float32)

    out = jax.block_until_ready(jax.jit(fine_net_forward)(baked, flow))

    assert out.shape == (2, 2, 16, 16), out.shape
    assert out.dtype == jnp.float32
    assert bool(jnp.all(jnp.isfinite(out)))

    # Self-check against a pure-XLA f32 reference (Pallas path uses bf16 MXU
    # inputs with f32 accumulation -> loose-ish tolerance).
    ref = jax.block_until_ready(jax.jit(_reference_forward)(params, flow))
    rel_err = float(jnp.max(jnp.abs(out - ref)) / (1e-6 + jnp.max(jnp.abs(ref))))
    assert rel_err < 0.1, f"Pallas output mismatch vs reference: rel_err={rel_err:.4f}"

    print("KERNEL_OK")
</pallas_src>

<mosaic_0001>
module attributes {stable_mosaic.version = 11 : i64} {
  func.func @_finenet_kernel(%arg0: i32, %arg1: memref<1x16x32xf32, #tpu.memory_space<vmem>>, %arg2: memref<5x32x256xbf16, #tpu.memory_space<vmem>>, %arg3: memref<1x256xf32, #tpu.memory_space<vmem>>, %arg4: memref<3x256x256xbf16, #tpu.memory_space<vmem>>, %arg5: memref<1x256xf32, #tpu.memory_space<vmem>>, %arg6: memref<3x256x256xbf16, #tpu.memory_space<vmem>>, %arg7: memref<1x256xf32, #tpu.memory_space<vmem>>, %arg8: memref<4x256x256xbf16, #tpu.memory_space<vmem>>, %arg9: memref<1x256xf32, #tpu.memory_space<vmem>>, %arg10: memref<4x256x256xbf16, #tpu.memory_space<vmem>>, %arg11: memref<1x256xf32, #tpu.memory_space<vmem>>, %arg12: memref<4x256x32xbf16, #tpu.memory_space<vmem>>, %arg13: memref<1x32xf32, #tpu.memory_space<vmem>>, %arg14: memref<1x16x32xf32, #tpu.memory_space<vmem>>, %arg15: memref<8x256xf32, #tpu.memory_space<vmem>>, %arg16: memref<4x256xf32, #tpu.memory_space<vmem>>, %arg17: memref<2x256xf32, #tpu.memory_space<vmem>>, %arg18: memref<4x256xf32, #tpu.memory_space<vmem>>, %arg19: memref<8x256xf32, #tpu.memory_space<vmem>>, %arg20: memref<8x32xf32, #tpu.memory_space<vmem>>, %arg21: memref<4x256xf32, #tpu.memory_space<vmem>>, %arg22: memref<2x256xf32, #tpu.memory_space<vmem>>, %arg23: memref<2x256xf32, #tpu.memory_space<vmem>>, %arg24: memref<4x256xf32, #tpu.memory_space<vmem>>, %arg25: memref<8x256xf32, #tpu.memory_space<vmem>>) attributes {dimension_semantics = [#tpu.dimension_semantics<parallel>], iteration_bounds = array<i64: 2>, scalar_prefetch = 0 : i64, scratch_operands = 11 : i64, tpu.core_type = #tpu.core_type<tc>, window_params = [{transform_indices = @transform_0, window_bounds = array<i64: 1, 16, 32>}, {pipeline_mode = #tpu.pipeline_mode<synchronous>, transform_indices = @transform_1, window_bounds = array<i64: 5, 32, 256>}, {pipeline_mode = #tpu.pipeline_mode<synchronous>, transform_indices = @transform_2, window_bounds = array<i64: 1, 256>}, {pipeline_mode = #tpu.pipeline_mode<synchronous>, transform_indices = @transform_3, window_bounds = array<i64: 3, 256, 256>}, {pipeline_mode = #tpu.pipeline_mode<synchronous>, transform_indices = @transform_4, window_bounds = array<i64: 1, 256>}, {pipeline_mode = #tpu.pipeline_mode<synchronous>, transform_indices = @transform_5, window_bounds = array<i64: 3, 256, 256>}, {pipeline_mode = #tpu.pipeline_mode<synchronous>, transform_indices = @transform_6, window_bounds = array<i64: 1, 256>}, {pipeline_mode = #tpu.pipeline_mode<synchronous>, transform_indices = @transform_7, window_bounds = array<i64: 4, 256, 256>}, {pipeline_mode = #tpu.pipeline_mode<synchronous>, transform_indices = @transform_8, window_bounds = array<i64: 1, 256>}, {pipeline_mode = #tpu.pipeline_mode<synchronous>, transform_indices = @transform_9, window_bounds = array<i64: 4, 256, 256>}, {pipeline_mode = #tpu.pipeline_mode<synchronous>, transform_indices = @transform_10, window_bounds = array<i64: 1, 256>}, {pipeline_mode = #tpu.pipeline_mode<synchronous>, transform_indices = @transform_11, window_bounds = array<i64: 4, 256, 32>}, {pipeline_mode = #tpu.pipeline_mode<synchronous>, transform_indices = @transform_12, window_bounds = array<i64: 1, 32>}, {transform_indices = @transform_13, window_bounds = array<i64: 1, 16, 32>}]} {
    %cst = arith.constant 0.000000e+00 : f32
    %0 = vector.broadcast %cst : f32 to vector<1x32xf32>
    %c0 = arith.constant 0 : index
    %c0_0 = arith.constant 0 : index
    %1 = vector.load %arg20[%c0, %c0_0] : memref<8x32xf32, #tpu.memory_space<vmem>>, vector<1x32xf32>
    tpu.vector_store %arg20[%c0, %c0_0], %0 {strides = array<i32>} : memref<8x32xf32, #tpu.memory_space<vmem>>, vector<1x32xf32>,
    %c0_1 = arith.constant 0 : index
    %c0_2 = arith.constant 0 : index
    %c0_3 = arith.constant 0 : index
    %2 = vector.load %arg1[%c0_1, %c0_2, %c0_3] : memref<1x16x32xf32, #tpu.memory_space<vmem>>, vector<1x1x32xf32>
    %3 = vector.shape_cast %2 : vector<1x1x32xf32> to vector<1x32xf32>
    %c1 = arith.constant 1 : index
    %c0_4 = arith.constant 0 : index
    %4 = vector.load %arg20[%c1, %c0_4] : memref<8x32xf32, #tpu.memory_space<vmem>>, vector<1x32xf32>
    tpu.vector_store %arg20[%c1, %c0_4], %3 {strides = array<i32>} : memref<8x32xf32, #tpu.memory_space<vmem>>, vector<1x32xf32>,
    %c0_5 = arith.constant 0 : index
    %c2 = arith.constant 2 : index
    %c0_6 = arith.constant 0 : index
    %5 = vector.load %arg1[%c0_5, %c2, %c0_6] : memref<1x16x32xf32, #tpu.memory_space<vmem>>, vector<1x1x32xf32>
    %6 = vector.shape_cast %5 : vector<1x1x32xf32> to vector<1x32xf32>
    %c2_7 = arith.constant 2 : index
    %c0_8 = arith.constant 0 : index
    %7 = vector.load %arg20[%c2_7, %c0_8] : memref<8x32xf32, #tpu.memory_space<vmem>>, vector<1x32xf32>
    tpu.vector_store %arg20[%c2_7, %c0_8], %6 {strides = array<i32>} : memref<8x32xf32, #tpu.memory_space<vmem>>, vector<1x32xf32>,
    %c0_9 = arith.constant 0 : index
    %c4 = arith.constant 4 : index
    %c0_10 = arith.constant 0 : index
    %8 = vector.load %arg1[%c0_9, %c4, %c0_10] : memref<1x16x32xf32, #tpu.memory_space<vmem>>, vector<1x1x32xf32>
    %9 = vector.shape_cast %8 : vector<1x1x32xf32> to vector<1x32xf32>
    %c3 = arith.constant 3 : index
    %c0_11 = arith.constant 0 : index
    %10 = vector.load %arg20[%c3, %c0_11] : memref<8x32xf32, #tpu.memory_space<vmem>>, vector<1x32xf32>
    tpu.vector_store %arg20[%c3, %c0_11], %9 {strides = array<i32>} : memref<8x32xf32, #tpu.memory_space<vmem>>, vector<1x32xf32>,
    %c0_12 = arith.constant 0 : index
    %c6 = arith.constant 6 : index
    %c0_13 = arith.constant 0 : index
    %11 = vector.load %arg1[%c0_12, %c6, %c0_13] : memref<1x16x32xf32, #tpu.memory_space<vmem>>, vector<1x1x32xf32>
    %12 = vector.shape_cast %11 : vector<1x1x32xf32> to vector<1x32xf32>
    %c4_14 = arith.constant 4 : index
    %c0_15 = arith.constant 0 : index
    %13 = vector.load %arg20[%c4_14, %c0_15] : memref<8x32xf32, #tpu.memory_space<vmem>>, vector<1x32xf32>
    tpu.vector_store %arg20[%c4_14, %c0_15], %12 {strides = array<i32>} : memref<8x32xf32, #tpu.memory_space<vmem>>, vector<1x32xf32>,
    %c0_16 = arith.constant 0 : index
    %c8 = arith.constant 8 : index
    %c0_17 = arith.constant 0 : index
    %14 = vector.load %arg1[%c0_16, %c8, %c0_17] : memref<1x16x32xf32, #tpu.memory_space<vmem>>, vector<1x1x32xf32>
    %15 = vector.shape_cast %14 : vector<1x1x32xf32> to vector<1x32xf32>
    %c5 = arith.constant 5 : index
    %c0_18 = arith.constant 0 : index
    %16 = vector.load %arg20[%c5, %c0_18] : memref<8x32xf32, #tpu.memory_space<vmem>>, vector<1x32xf32>
    tpu.vector_store %arg20[%c5, %c0_18], %15 {strides = array<i32>} : memref<8x32xf32, #tpu.memory_space<vmem>>, vector<1x32xf32>,
    %c0_19 = arith.constant 0 : index
    %c10 = arith.constant 10 : index
    %c0_20 = arith.constant 0 : index
    %17 = vector.load %arg1[%c0_19, %c10, %c0_20] : memref<1x16x32xf32, #tpu.memory_space<vmem>>, vector<1x1x32xf32>
    %18 = vector.shape_cast %17 : vector<1x1x32xf32> to vector<1x32xf32>
    %c6_21 = arith.constant 6 : index
    %c0_22 = arith.constant 0 : index
    %19 = vector.load %arg20[%c6_21, %c0_22] : memref<8x32xf32, #tpu.memory_space<vmem>>, vector<1x32xf32>
    tpu.vector_store %arg20[%c6_21, %c0_22], %18 {strides = array<i32>} : memref<8x32xf32, #tpu.memory_space<vmem>>, vector<1x32xf32>,
    %c0_23 = arith.constant 0 : index
    %c12 = arith.constant 12 : index
    %c0_24 = arith.constant 0 : index
    %20 = vector.load %arg1[%c0_23, %c12, %c0_24] : memref<1x16x32xf32, #tpu.memory_space<vmem>>, vector<1x1x32xf32>
    %21 = vector.shape_cast %20 : vector<1x1x32xf32> to vector<1x32xf32>
    %c7 = arith.constant 7 : index
    %c0_25 = arith.constant 0 : index
    %22 = vector.load %arg20[%c7, %c0_25] : memref<8x32xf32, #tpu.memory_space<vmem>>, vector<1x32xf32>
    tpu.vector_store %arg20[%c7, %c0_25], %21 {strides = array<i32>} : memref<8x32xf32, #tpu.memory_space<vmem>>, vector<1x32xf32>,
    %c0_26 = arith.constant 0 : index
    %c0_27 = arith.constant 0 : index
    %23 = vector.load %arg20[%c0_26, %c0_27] : memref<8x32xf32, #tpu.memory_space<vmem>>, vector<8x32xf32>
    %c0_28 = arith.constant 0 : index
    %c0_29 = arith.constant 0 : index
    %c0_30 = arith.constant 0 : index
    %24 = vector.load %arg2[%c0_28, %c0_29, %c0_30] : memref<5x32x256xbf16, #tpu.memory_space<vmem>>, vector<1x32x256xbf16>
    %25 = vector.shape_cast %24 : vector<1x32x256xbf16> to vector<32x256xbf16>
    %26 = arith.truncf %23 : vector<8x32xf32> to vector<8x32xbf16>
    %cst_31 = arith.constant dense<0.000000e+00> : vector<8x256xf32>
    %27 = tpu.matmul %26, %25, %cst_31 {dimension_numbers = #tpu.dot_dimension_numbers<[1], [0], [0], [1], [0, 0, 1, 1], [], []>} : vector<8x32xbf16>, vector<32x256xbf16>, vector<8x256xf32> -> vector<8x256xf32>
    %cst_32 = arith.constant 0.000000e+00 : f32
    %28 = vector.broadcast %cst_32 : f32 to vector<1x32xf32>
    %c0_33 = arith.constant 0 : index
    %c0_34 = arith.constant 0 : index
    %29 = vector.load %arg20[%c0_33, %c0_34] : memref<8x32xf32, #tpu.memory_space<vmem>>, vector<1x32xf32>
    tpu.vector_store %arg20[%c0_33, %c0_34], %28 {strides = array<i32>} : memref<8x32xf32, #tpu.memory_space<vmem>>, vector<1x32xf32>,
    %c0_35 = arith.constant 0 : index
    %c1_36 = arith.constant 1 : index
    %c0_37 = arith.constant 0 : index
    %30 = vector.load %arg1[%c0_35, %c1_36, %c0_37] : memref<1x16x32xf32, #tpu.memory_space<vmem>>, vector<1x1x32xf32>
    %31 = vector.shape_cast %30 : vector<1x1x32xf32> to vector<1x32xf32>
    %c1_38 = arith.constant 1 : index
    %c0_39 = arith.constant 0 : index
    %32 = vector.load %arg20[%c1_38, %c0_39] : memref<8x32xf32, #tpu.memory_space<vmem>>, vector<1x32xf32>
    tpu.vector_store %arg20[%c1_38, %c0_39], %31 {strides = array<i32>} : memref<8x32xf32, #tpu.memory_space<vmem>>, vector<1x32xf32>,
    %c0_40 = arith.constant 0 : index
    %c3_41 = arith.constant 3 : index
    %c0_42 = arith.constant 0 : index
    %33 = vector.load %arg1[%c0_40, %c3_41, %c0_42] : memref<1x16x32xf32, #tpu.memory_space<vmem>>, vector<1x1x32xf32>
    %34 = vector.shape_cast %33 : vector<1x1x32xf32> to vector<1x32xf32>
    %c2_43 = arith.constant 2 : index
    %c0_44 = arith.constant 0 : index
    %35 = vector.load %arg20[%c2_43, %c0_44] : memref<8x32xf32, #tpu.memory_space<vmem>>, vector<1x32xf32>
    tpu.vector_store %arg20[%c2_43, %c0_44], %34 {strides = array<i32>} : memref<8x32xf32, #tpu.memory_space<vmem>>, vector<1x32xf32>,
    %c0_45 = arith.constant 0 : index
    %c5_46 = arith.constant 5 : index
    %c0_47 = arith.constant 0 : index
    %36 = vector.load %arg1[%c0_45, %c5_46, %c0_47] : memref<1x16x32xf32, #tpu.memory_space<vmem>>, vector<1x1x32xf32>
    %37 = vector.shape_cast %36 : vector<1x1x32xf32> to vector<1x32xf32>
    %c3_48 = arith.constant 3 : index
    %c0_49 = arith.constant 0 : index
    %38 = vector.load %arg20[%c3_48, %c0_49] : memref<8x32xf32, #tpu.memory_space<vmem>>, vector<1x32xf32>
    tpu.vector_store %arg20[%c3_48, %c0_49], %37 {strides = array<i32>} : memref<8x32xf32, #tpu.memory_space<vmem>>, vector<1x32xf32>,
    %c0_50 = arith.constant 0 : index
    %c7_51 = arith.constant 7 : index
    %c0_52 = arith.constant 0 : index
    %39 = vector.load %arg1[%c0_50, %c7_51, %c0_52] : memref<1x16x32xf32, #tpu.memory_space<vmem>>, vector<1x1x32xf32>
    %40 = vector.shape_cast %39 : vector<1x1x32xf32> to vector<1x32xf32>
    %c4_53 = arith.constant 4 : index
    %c0_54 = arith.constant 0 : index
    %41 = vector.load %arg20[%c4_53, %c0_54] : memref<8x32xf32, #tpu.memory_space<vmem>>, vector<1x32xf32>
    tpu.vector_store %arg20[%c4_53, %c0_54], %40 {strides = array<i32>} : memref<8x32xf32, #tpu.memory_space<vmem>>, vector<1x32xf32>,
    %c0_55 = arith.constant 0 : index
    %c9 = arith.constant 9 : index
    %c0_56 = arith.constant 0 : index
    %42 = vector.load %arg1[%c0_55, %c9, %c0_56] : memref<1x16x32xf32, #tpu.memory_space<vmem>>, vector<1x1x32xf32>
    %43 = vector.shape_cast %42 : vector<1x1x32xf32> to vector<1x32xf32>
    %c5_57 = arith.constant 5 : index
    %c0_58 = arith.constant 0 : index
    %44 = vector.load %arg20[%c5_57, %c0_58] : memref<8x32xf32, #tpu.memory_space<vmem>>, vector<1x32xf32>
    tpu.vector_store %arg20[%c5_57, %c0_58], %43 {strides = array<i32>} : memref<8x32xf32, #tpu.memory_space<vmem>>, vector<1x32xf32>,
    %c0_59 = arith.constant 0 : index
    %c11 = arith.constant 11 : index
    %c0_60 = arith.constant 0 : index
    %45 = vector.load %arg1[%c0_59, %c11, %c0_60] : memref<1x16x32xf32, #tpu.memory_space<vmem>>, vector<1x1x32xf32>
    %46 = vector.shape_cast %45 : vector<1x1x32xf32> to vector<1x32xf32>
    %c6_61 = arith.constant 6 : index
    %c0_62 = arith.constant 0 : index
    %47 = vector.load %arg20[%c6_61, %c0_62] : memref<8x32xf32, #tpu.memory_space<vmem>>, vector<1x32xf32>
    tpu.vector_store %arg20[%c6_61, %c0_62], %46 {strides = array<i32>} : memref<8x32xf32, #tpu.memory_space<vmem>>, vector<1x32xf32>,
    %c0_63 = arith.constant 0 : index
    %c13 = arith.constant 13 : index
    %c0_64 = arith.constant 0 : index
    %48 = vector.load %arg1[%c0_63, %c13, %c0_64] : memref<1x16x32xf32, #tpu.memory_space<vmem>>, vector<1x1x32xf32>
    %49 = vector.shape_cast %48 : vector<1x1x32xf32> to vector<1x32xf32>
    %c7_65 = arith.constant 7 : index
    %c0_66 = arith.constant 0 : index
    %50 = vector.load %arg20[%c7_65, %c0_66] : memref<8x32xf32, #tpu.memory_space<vmem>>, vector<1x32xf32>
    tpu.vector_store %arg20[%c7_65, %c0_66], %49 {strides = array<i32>} : memref<8x32xf32, #tpu.memory_space<vmem>>, vector<1x32xf32>,
    %c0_67 = arith.constant 0 : index
    %c0_68 = arith.constant 0 : index
    %51 = vector.load %arg20[%c0_67, %c0_68] : memref<8x32xf32, #tpu.memory_space<vmem>>, vector<8x32xf32>
    %c1_69 = arith.constant 1 : index
    %c0_70 = arith.constant 0 : index
    %c0_71 = arith.constant 0 : index
    %52 = vector.load %arg2[%c1_69, %c0_70, %c0_71] : memref<5x32x256xbf16, #tpu.memory_space<vmem>>, vector<1x32x256xbf16>
    %53 = vector.shape_cast %52 : vector<1x32x256xbf16> to vector<32x256xbf16>
    %54 = arith.truncf %51 : vector<8x32xf32> to vector<8x32xbf16>
    %cst_72 = arith.constant dense<0.000000e+00> : vector<8x256xf32>
    %55 = tpu.matmul %54, %53, %cst_72 {dimension_numbers = #tpu.dot_dimension_numbers<[1], [0], [0], [1], [0, 0, 1, 1], [], []>} : vector<8x32xbf16>, vector<32x256xbf16>, vector<8x256xf32> -> vector<8x256xf32>
    %56 = arith.addf %27, %55 : vector<8x256xf32>
    %c0_73 = arith.constant 0 : index
    %c0_74 = arith.constant 0 : index
    %c0_75 = arith.constant 0 : index
    %57 = vector.load %arg1[%c0_73, %c0_74, %c0_75] : memref<1x16x32xf32, #tpu.memory_space<vmem>>, vector<1x1x32xf32>
    %58 = vector.shape_cast %57 : vector<1x1x32xf32> to vector<1x32xf32>
    %c0_76 = arith.constant 0 : index
    %c0_77 = arith.constant 0 : index
    %59 = vector.load %arg20[%c0_76, %c0_77] : memref<8x32xf32, #tpu.memory_space<vmem>>, vector<1x32xf32>
    tpu.vector_store %arg20[%c0_76, %c0_77], %58 {strides = array<i32>} : memref<8x32xf32, #tpu.memory_space<vmem>>, vector<1x32xf32>,
    %c0_78 = arith.constant 0 : index
    %c2_79 = arith.constant 2 : index
    %c0_80 = arith.constant 0 : index
    %60 = vector.load %arg1[%c0_78, %c2_79, %c0_80] : memref<1x16x32xf32, #tpu.memory_space<vmem>>, vector<1x1x32xf32>
    %61 = vector.shape_cast %60 : vector<1x1x32xf32> to vector<1x32xf32>
    %c1_81 = arith.constant 1 : index
    %c0_82 = arith.constant 0 : index
    %62 = vector.load %arg20[%c1_81, %c0_82] : memref<8x32xf32, #tpu.memory_space<vmem>>, vector<1x32xf32>
    tpu.vector_store %arg20[%c1_81, %c0_82], %61 {strides = array<i32>} : memref<8x32xf32, #tpu.memory_space<vmem>>, vector<1x32xf32>,
    %c0_83 = arith.constant 0 : index
    %c4_84 = arith.constant 4 : index
    %c0_85 = arith.constant 0 : index
    %63 = vector.load %arg1[%c0_83, %c4_84, %c0_85] : memref<1x16x32xf32, #tpu.memory_space<vmem>>, vector<1x1x32xf32>
    %64 = vector.shape_cast %63 : vector<1x1x32xf32> to vector<1x32xf32>
    %c2_86 = arith.constant 2 : index
    %c0_87 = arith.constant 0 : index
    %65 = vector.load %arg20[%c2_86, %c0_87] : memref<8x32xf32, #tpu.memory_space<vmem>>, vector<1x32xf32>
    tpu.vector_store %arg20[%c2_86, %c0_87], %64 {strides = array<i32>} : memref<8x32xf32, #tpu.memory_space<vmem>>, vector<1x32xf32>,
    %c0_88 = arith.constant 0 : index
    %c6_89 = arith.constant 6 : index
    %c0_90 = arith.constant 0 : index
    %66 = vector.load %arg1[%c0_88, %c6_89, %c0_90] : memref<1x16x32xf32, #tpu.memory_space<vmem>>, vector<1x1x32xf32>
    %67 = vector.shape_cast %66 : vector<1x1x32xf32> to vector<1x32xf32>
    %c3_91 = arith.constant 3 : index
    %c0_92 = arith.constant 0 : index
    %68 = vector.load %arg20[%c3_91, %c0_92] : memref<8x32xf32, #tpu.memory_space<vmem>>, vector<1x32xf32>
    tpu.vector_store %arg20[%c3_91, %c0_92], %67 {strides = array<i32>} : memref<8x32xf32, #tpu.memory_space<vmem>>, vector<1x32xf32>,
    %c0_93 = arith.constant 0 : index
    %c8_94 = arith.constant 8 : index
    %c0_95 = arith.constant 0 : index
    %69 = vector.load %arg1[%c0_93, %c8_94, %c0_95] : memref<1x16x32xf32, #tpu.memory_space<vmem>>, vector<1x1x32xf32>
    %70 = vector.shape_cast %69 : vector<1x1x32xf32> to vector<1x32xf32>
    %c4_96 = arith.constant 4 : index
    %c0_97 = arith.constant 0 : index
    %71 = vector.load %arg20[%c4_96, %c0_97] : memref<8x32xf32, #tpu.memory_space<vmem>>, vector<1x32xf32>
    tpu.vector_store %arg20[%c4_96, %c0_97], %70 {strides = array<i32>} : memref<8x32xf32, #tpu.memory_space<vmem>>, vector<1x32xf32>,
    %c0_98 = arith.constant 0 : index
    %c10_99 = arith.constant 10 : index
    %c0_100 = arith.constant 0 : index
    %72 = vector.load %arg1[%c0_98, %c10_99, %c0_100] : memref<1x16x32xf32, #tpu.memory_space<vmem>>, vector<1x1x32xf32>
    %73 = vector.shape_cast %72 : vector<1x1x32xf32> to vector<1x32xf32>
    %c5_101 = arith.constant 5 : index
    %c0_102 = arith.constant 0 : index
    %74 = vector.load %arg20[%c5_101, %c0_102] : memref<8x32xf32, #tpu.memory_space<vmem>>, vector<1x32xf32>
    tpu.vector_store %arg20[%c5_101, %c0_102], %73 {strides = array<i32>} : memref<8x32xf32, #tpu.memory_space<vmem>>, vector<1x32xf32>,
    %c0_103 = arith.constant 0 : index
    %c12_104 = arith.constant 12 : index
    %c0_105 = arith.constant 0 : index
    %75 = vector.load %arg1[%c0_103, %c12_104, %c0_105] : memref<1x16x32xf32, #tpu.memory_space<vmem>>, vector<1x1x32xf32>
    %76 = vector.shape_cast %75 : vector<1x1x32xf32> to vector<1x32xf32>
    %c6_106 = arith.constant 6 : index
    %c0_107 = arith.constant 0 : index
    %77 = vector.load %arg20[%c6_106, %c0_107] : memref<8x32xf32, #tpu.memory_space<vmem>>, vector<1x32xf32>
    tpu.vector_store %arg20[%c6_106, %c0_107], %76 {strides = array<i32>} : memref<8x32xf32, #tpu.memory_space<vmem>>, vector<1x32xf32>,
    %c0_108 = arith.constant 0 : index
    %c14 = arith.constant 14 : index
    %c0_109 = arith.constant 0 : index
    %78 = vector.load %arg1[%c0_108, %c14, %c0_109] : memref<1x16x32xf32, #tpu.memory_space<vmem>>, vector<1x1x32xf32>
    %79 = vector.shape_cast %78 : vector<1x1x32xf32> to vector<1x32xf32>
    %c7_110 = arith.constant 7 : index
    %c0_111 = arith.constant 0 : index
    %80 = vector.load %arg20[%c7_110, %c0_111] : memref<8x32xf32, #tpu.memory_space<vmem>>, vector<1x32xf32>
    tpu.vector_store %arg20[%c7_110, %c0_111], %79 {strides = array<i32>} : memref<8x32xf32, #tpu.memory_space<vmem>>, vector<1x32xf32>,
    %c0_112 = arith.constant 0 : index
    %c0_113 = arith.constant 0 : index
    %81 = vector.load %arg20[%c0_112, %c0_113] : memref<8x32xf32, #tpu.memory_space<vmem>>, vector<8x32xf32>
    %c2_114 = arith.constant 2 : index
    %c0_115 = arith.constant 0 : index
    %c0_116 = arith.constant 0 : index
    %82 = vector.load %arg2[%c2_114, %c0_115, %c0_116] : memref<5x32x256xbf16, #tpu.memory_space<vmem>>, vector<1x32x256xbf16>
    %83 = vector.shape_cast %82 : vector<1x32x256xbf16> to vector<32x256xbf16>
    %84 = arith.truncf %81 : vector<8x32xf32> to vector<8x32xbf16>
    %cst_117 = arith.constant dense<0.000000e+00> : vector<8x256xf32>
    %85 = tpu.matmul %84, %83, %cst_117 {dimension_numbers = #tpu.dot_dimension_numbers<[1], [0], [0], [1], [0, 0, 1, 1], [], []>} : vector<8x32xbf16>, vector<32x256xbf16>, vector<8x256xf32> -> vector<8x256xf32>
    %86 = arith.addf %56, %85 : vector<8x256xf32>
    %c0_118 = arith.constant 0 : index
    %c1_119 = arith.constant 1 : index
    %c0_120 = arith.constant 0 : index
    %87 = vector.load %arg1[%c0_118, %c1_119, %c0_120] : memref<1x16x32xf32, #tpu.memory_space<vmem>>, vector<1x1x32xf32>
    %88 = vector.shape_cast %87 : vector<1x1x32xf32> to vector<1x32xf32>
    %c0_121 = arith.constant 0 : index
    %c0_122 = arith.constant 0 : index
    %89 = vector.load %arg20[%c0_121, %c0_122] : memref<8x32xf32, #tpu.memory_space<vmem>>, vector<1x32xf32>
    tpu.vector_store %arg20[%c0_121, %c0_122], %88 {strides = array<i32>} : memref<8x32xf32, #tpu.memory_space<vmem>>, vector<1x32xf32>,
    %c0_123 = arith.constant 0 : index
    %c3_124 = arith.constant 3 : index
    %c0_125 = arith.constant 0 : index
    %90 = vector.load %arg1[%c0_123, %c3_124, %c0_125] : memref<1x16x32xf32, #tpu.memory_space<vmem>>, vector<1x1x32xf32>
    %91 = vector.shape_cast %90 : vector<1x1x32xf32> to vector<1x32xf32>
    %c1_126 = arith.constant 1 : index
    %c0_127 = arith.constant 0 : index
    %92 = vector.load %arg20[%c1_126, %c0_127] : memref<8x32xf32, #tpu.memory_space<vmem>>, vector<1x32xf32>
    tpu.vector_store %arg20[%c1_126, %c0_127], %91 {strides = array<i32>} : memref<8x32xf32, #tpu.memory_space<vmem>>, vector<1x32xf32>,
    %c0_128 = arith.constant 0 : index
    %c5_129 = arith.constant 5 : index
    %c0_130 = arith.constant 0 : index
    %93 = vector.load %arg1[%c0_128, %c5_129, %c0_130] : memref<1x16x32xf32, #tpu.memory_space<vmem>>, vector<1x1x32xf32>
    %94 = vector.shape_cast %93 : vector<1x1x32xf32> to vector<1x32xf32>
    %c2_131 = arith.constant 2 : index
    %c0_132 = arith.constant 0 : index
    %95 = vector.load %arg20[%c2_131, %c0_132] : memref<8x32xf32, #tpu.memory_space<vmem>>, vector<1x32xf32>
    tpu.vector_store %arg20[%c2_131, %c0_132], %94 {strides = array<i32>} : memref<8x32xf32, #tpu.memory_space<vmem>>, vector<1x32xf32>,
    %c0_133 = arith.constant 0 : index
    %c7_134 = arith.constant 7 : index
    %c0_135 = arith.constant 0 : index
    %96 = vector.load %arg1[%c0_133, %c7_134, %c0_135] : memref<1x16x32xf32, #tpu.memory_space<vmem>>, vector<1x1x32xf32>
    %97 = vector.shape_cast %96 : vector<1x1x32xf32> to vector<1x32xf32>
    %c3_136 = arith.constant 3 : index
    %c0_137 = arith.constant 0 : index
    %98 = vector.load %arg20[%c3_136, %c0_137] : memref<8x32xf32, #tpu.memory_space<vmem>>, vector<1x32xf32>
    tpu.vector_store %arg20[%c3_136, %c0_137], %97 {strides = array<i32>} : memref<8x32xf32, #tpu.memory_space<vmem>>, vector<1x32xf32>,
    %c0_138 = arith.constant 0 : index
    %c9_139 = arith.constant 9 : index
    %c0_140 = arith.constant 0 : index
    %99 = vector.load %arg1[%c0_138, %c9_139, %c0_140] : memref<1x16x32xf32, #tpu.memory_space<vmem>>, vector<1x1x32xf32>
    %100 = vector.shape_cast %99 : vector<1x1x32xf32> to vector<1x32xf32>
    %c4_141 = arith.constant 4 : index
    %c0_142 = arith.constant 0 : index
    %101 = vector.load %arg20[%c4_141, %c0_142] : memref<8x32xf32, #tpu.memory_space<vmem>>, vector<1x32xf32>
    tpu.vector_store %arg20[%c4_141, %c0_142], %100 {strides = array<i32>} : memref<8x32xf32, #tpu.memory_space<vmem>>, vector<1x32xf32>,
    %c0_143 = arith.constant 0 : index
    %c11_144 = arith.constant 11 : index
    %c0_145 = arith.constant 0 : index
    %102 = vector.load %arg1[%c0_143, %c11_144, %c0_145] : memref<1x16x32xf32, #tpu.memory_space<vmem>>, vector<1x1x32xf32>
    %103 = vector.shape_cast %102 : vector<1x1x32xf32> to vector<1x32xf32>
    %c5_146 = arith.constant 5 : index
    %c0_147 = arith.constant 0 : index
    %104 = vector.load %arg20[%c5_146, %c0_147] : memref<8x32xf32, #tpu.memory_space<vmem>>, vector<1x32xf32>
    tpu.vector_store %arg20[%c5_146, %c0_147], %103 {strides = array<i32>} : memref<8x32xf32, #tpu.memory_space<vmem>>, vector<1x32xf32>,
    %c0_148 = arith.constant 0 : index
    %c13_149 = arith.constant 13 : index
    %c0_150 = arith.constant 0 : index
    %105 = vector.load %arg1[%c0_148, %c13_149, %c0_150] : memref<1x16x32xf32, #tpu.memory_space<vmem>>, vector<1x1x32xf32>
    %106 = vector.shape_cast %105 : vector<1x1x32xf32> to vector<1x32xf32>
    %c6_151 = arith.constant 6 : index
    %c0_152 = arith.constant 0 : index
    %107 = vector.load %arg20[%c6_151, %c0_152] : memref<8x32xf32, #tpu.memory_space<vmem>>, vector<1x32xf32>
    tpu.vector_store %arg20[%c6_151, %c0_152], %106 {strides = array<i32>} : memref<8x32xf32, #tpu.memory_space<vmem>>, vector<1x32xf32>,
    %c0_153 = arith.constant 0 : index
    %c15 = arith.constant 15 : index
    %c0_154 = arith.constant 0 : index
    %108 = vector.load %arg1[%c0_153, %c15, %c0_154] : memref<1x16x32xf32, #tpu.memory_space<vmem>>, vector<1x1x32xf32>
    %109 = vector.shape_cast %108 : vector<1x1x32xf32> to vector<1x32xf32>
    %c7_155 = arith.constant 7 : index
    %c0_156 = arith.constant 0 : index
    %110 = vector.load %arg20[%c7_155, %c0_156] : memref<8x32xf32, #tpu.memory_space<vmem>>, vector<1x32xf32>
    tpu.vector_store %arg20[%c7_155, %c0_156], %109 {strides = array<i32>} : memref<8x32xf32, #tpu.memory_space<vmem>>, vector<1x32xf32>,
    %c0_157 = arith.constant 0 : index
    %c0_158 = arith.constant 0 : index
    %111 = vector.load %arg20[%c0_157, %c0_158] : memref<8x32xf32, #tpu.memory_space<vmem>>, vector<8x32xf32>
    %c3_159 = arith.constant 3 : index
    %c0_160 = arith.constant 0 : index
    %c0_161 = arith.constant 0 : index
    %112 = vector.load %arg2[%c3_159, %c0_160, %c0_161] : memref<5x32x256xbf16, #tpu.memory_space<vmem>>, vector<1x32x256xbf16>
    %113 = vector.shape_cast %112 : vector<1x32x256xbf16> to vector<32x256xbf16>
    %114 = arith.truncf %111 : vector<8x32xf32> to vector<8x32xbf16>
    %cst_162 = arith.constant dense<0.000000e+00> : vector<8x256xf32>
    %115 = tpu.matmul %114, %113, %cst_162 {dimension_numbers = #tpu.dot_dimension_numbers<[1], [0], [0], [1], [0, 0, 1, 1], [], []>} : vector<8x32xbf16>, vector<32x256xbf16>, vector<8x256xf32> -> vector<8x256xf32>
    %116 = arith.addf %86, %115 : vector<8x256xf32>
    %c0_163 = arith.constant 0 : index
    %c2_164 = arith.constant 2 : index
    %c0_165 = arith.constant 0 : index
    %117 = vector.load %arg1[%c0_163, %c2_164, %c0_165] : memref<1x16x32xf32, #tpu.memory_space<vmem>>, vector<1x1x32xf32>
    %118 = vector.shape_cast %117 : vector<1x1x32xf32> to vector<1x32xf32>
    %c0_166 = arith.constant 0 : index
    %c0_167 = arith.constant 0 : index
    %119 = vector.load %arg20[%c0_166, %c0_167] : memref<8x32xf32, #tpu.memory_space<vmem>>, vector<1x32xf32>
    tpu.vector_store %arg20[%c0_166, %c0_167], %118 {strides = array<i32>} : memref<8x32xf32, #tpu.memory_space<vmem>>, vector<1x32xf32>,
    %c0_168 = arith.constant 0 : index
    %c4_169 = arith.constant 4 : index
    %c0_170 = arith.constant 0 : index
    %120 = vector.load %arg1[%c0_168, %c4_169, %c0_170] : memref<1x16x32xf32, #tpu.memory_space<vmem>>, vector<1x1x32xf32>
    %121 = vector.shape_cast %120 : vector<1x1x32xf32> to vector<1x32xf32>
    %c1_171 = arith.constant 1 : index
    %c0_172 = arith.constant 0 : index
    %122 = vector.load %arg20[%c1_171, %c0_172] : memref<8x32xf32, #tpu.memory_space<vmem>>, vector<1x32xf32>
    tpu.vector_store %arg20[%c1_171, %c0_172], %121 {strides = array<i32>} : memref<8x32xf32, #tpu.memory_space<vmem>>, vector<1x32xf32>,
    %c0_173 = arith.constant 0 : index
    %c6_174 = arith.constant 6 : index
    %c0_175 = arith.constant 0 : index
    %123 = vector.load %arg1[%c0_173, %c6_174, %c0_175] : memref<1x16x32xf32, #tpu.memory_space<vmem>>, vector<1x1x32xf32>
    %124 = vector.shape_cast %123 : vector<1x1x32xf32> to vector<1x32xf32>
    %c2_176 = arith.constant 2 : index
    %c0_177 = arith.constant 0 : index
    %125 = vector.load %arg20[%c2_176, %c0_177] : memref<8x32xf32, #tpu.memory_space<vmem>>, vector<1x32xf32>
    tpu.vector_store %arg20[%c2_176, %c0_177], %124 {strides = array<i32>} : memref<8x32xf32, #tpu.memory_space<vmem>>, vector<1x32xf32>,
    %c0_178 = arith.constant 0 : index
    %c8_179 = arith.constant 8 : index
    %c0_180 = arith.constant 0 : index
    %126 = vector.load %arg1[%c0_178, %c8_179, %c0_180] : memref<1x16x32xf32, #tpu.memory_space<vmem>>, vector<1x1x32xf32>
    %127 = vector.shape_cast %126 : vector<1x1x32xf32> to vector<1x32xf32>
    %c3_181 = arith.constant 3 : index
    %c0_182 = arith.constant 0 : index
    %128 = vector.load %arg20[%c3_181, %c0_182] : memref<8x32xf32, #tpu.memory_space<vmem>>, vector<1x32xf32>
    tpu.vector_store %arg20[%c3_181, %c0_182], %127 {strides = array<i32>} : memref<8x32xf32, #tpu.memory_space<vmem>>, vector<1x32xf32>,
    %c0_183 = arith.constant 0 : index
    %c10_184 = arith.constant 10 : index
    %c0_185 = arith.constant 0 : index
    %129 = vector.load %arg1[%c0_183, %c10_184, %c0_185] : memref<1x16x32xf32, #tpu.memory_space<vmem>>, vector<1x1x32xf32>
    %130 = vector.shape_cast %129 : vector<1x1x32xf32> to vector<1x32xf32>
    %c4_186 = arith.constant 4 : index
    %c0_187 = arith.constant 0 : index
    %131 = vector.load %arg20[%c4_186, %c0_187] : memref<8x32xf32, #tpu.memory_space<vmem>>, vector<1x32xf32>
    tpu.vector_store %arg20[%c4_186, %c0_187], %130 {strides = array<i32>} : memref<8x32xf32, #tpu.memory_space<vmem>>, vector<1x32xf32>,
    %c0_188 = arith.constant 0 : index
    %c12_189 = arith.constant 12 : index
    %c0_190 = arith.constant 0 : index
    %132 = vector.load %arg1[%c0_188, %c12_189, %c0_190] : memref<1x16x32xf32, #tpu.memory_space<vmem>>, vector<1x1x32xf32>
    %133 = vector.shape_cast %132 : vector<1x1x32xf32> to vector<1x32xf32>
    %c5_191 = arith.constant 5 : index
    %c0_192 = arith.constant 0 : index
    %134 = vector.load %arg20[%c5_191, %c0_192] : memref<8x32xf32, #tpu.memory_space<vmem>>, vector<1x32xf32>
    tpu.vector_store %arg20[%c5_191, %c0_192], %133 {strides = array<i32>} : memref<8x32xf32, #tpu.memory_space<vmem>>, vector<1x32xf32>,
    %c0_193 = arith.constant 0 : index
    %c14_194 = arith.constant 14 : index
    %c0_195 = arith.constant 0 : index
    %135 = vector.load %arg1[%c0_193, %c14_194, %c0_195] : memref<1x16x32xf32, #tpu.memory_space<vmem>>, vector<1x1x32xf32>
    %136 = vector.shape_cast %135 : vector<1x1x32xf32> to vector<1x32xf32>
    %c6_196 = arith.constant 6 : index
    %c0_197 = arith.constant 0 : index
    %137 = vector.load %arg20[%c6_196, %c0_197] : memref<8x32xf32, #tpu.memory_space<vmem>>, vector<1x32xf32>
    tpu.vector_store %arg20[%c6_196, %c0_197], %136 {strides = array<i32>} : memref<8x32xf32, #tpu.memory_space<vmem>>, vector<1x32xf32>,
    %cst_198 = arith.constant 0.000000e+00 : f32
    %138 = vector.broadcast %cst_198 : f32 to vector<1x32xf32>
    %c7_199 = arith.constant 7 : index
    %c0_200 = arith.constant 0 : index
    %139 = vector.load %arg20[%c7_199, %c0_200] : memref<8x32xf32, #tpu.memory_space<vmem>>, vector<1x32xf32>
    tpu.vector_store %arg20[%c7_199, %c0_200], %138 {strides = array<i32>} : memref<8x32xf32, #tpu.memory_space<vmem>>, vector<1x32xf32>,
    %c0_201 = arith.constant 0 : index
    %c0_202 = arith.constant 0 : index
    %140 = vector.load %arg20[%c0_201, %c0_202] : memref<8x32xf32, #tpu.memory_space<vmem>>, vector<8x32xf32>
    %c4_203 = arith.constant 4 : index
    %c0_204 = arith.constant 0 : index
    %c0_205 = arith.constant 0 : index
    %141 = vector.load %arg2[%c4_203, %c0_204, %c0_205] : memref<5x32x256xbf16, #tpu.memory_space<vmem>>, vector<1x32x256xbf16>
    %142 = vector.shape_cast %141 : vector<1x32x256xbf16> to vector<32x256xbf16>
    %143 = arith.truncf %140 : vector<8x32xf32> to vector<8x32xbf16>
    %cst_206 = arith.constant dense<0.000000e+00> : vector<8x256xf32>
    %144 = tpu.matmul %143, %142, %cst_206 {dimension_numbers = #tpu.dot_dimension_numbers<[1], [0], [0], [1], [0, 0, 1, 1], [], []>} : vector<8x32xbf16>, vector<32x256xbf16>, vector<8x256xf32> -> vector<8x256xf32>
    %145 = arith.addf %116, %144 : vector<8x256xf32>
    %c0_207 = arith.constant 0 : index
    %c0_208 = arith.constant 0 : index
    %146 = vector.load %arg3[%c0_207, %c0_208] : memref<1x256xf32, #tpu.memory_space<vmem>>, vector<1x256xf32>
    %147 = vector.broadcast %146 : vector<1x256xf32> to vector<8x256xf32>
    %148 = arith.addf %145, %147 : vector<8x256xf32>
    %cst_209 = arith.constant 0.000000e+00 : f32
    %149 = vector.broadcast %cst_209 : f32 to vector<8x256xf32>
    %150 = arith.maximumf %148, %149 : vector<8x256xf32>
    %c0_210 = arith.constant 0 : index
    %c0_211 = arith.constant 0 : index
    %151 = vector.load %arg15[%c0_210, %c0_211] : memref<8x256xf32, #tpu.memory_space<vmem>>, vector<8x256xf32>
    tpu.vector_store %arg15[%c0_210, %c0_211], %150 {strides = array<i32>} : memref<8x256xf32, #tpu.memory_space<vmem>>, vector<8x256xf32>,
    %cst_212 = arith.constant 0.000000e+00 : f32
    %152 = vector.broadcast %cst_212 : f32 to vector<1x256xf32>
    %c0_213 = arith.constant 0 : index
    %c0_214 = arith.constant 0 : index
    %153 = vector.load %arg21[%c0_213, %c0_214] : memref<4x256xf32, #tpu.memory_space<vmem>>, vector<1x256xf32>
    tpu.vector_store %arg21[%c0_213, %c0_214], %152 {strides = array<i32>} : memref<4x256xf32, #tpu.memory_space<vmem>>, vector<1x256xf32>,
    %c1_215 = arith.constant 1 : index
    %c0_216 = arith.constant 0 : index
    %154 = vector.load %arg15[%c1_215, %c0_216] : memref<8x256xf32, #tpu.memory_space<vmem>>, vector<1x256xf32>
    %c1_217 = arith.constant 1 : index
    %c0_218 = arith.constant 0 : index
    %155 = vector.load %arg21[%c1_217, %c0_218] : memref<4x256xf32, #tpu.memory_space<vmem>>, vector<1x256xf32>
    tpu.vector_store %arg21[%c1_217, %c0_218], %154 {strides = array<i32>} : memref<4x256xf32, #tpu.memory_space<vmem>>, vector<1x256xf32>,
    %c3_219 = arith.constant 3 : index
    %c0_220 = arith.constant 0 : index
    %156 = vector.load %arg15[%c3_219, %c0_220] : memref<8x256xf32, #tpu.memory_space<vmem>>, vector<1x256xf32>
    %c2_221 = arith.constant 2 : index
    %c0_222 = arith.constant 0 : index
    %157 = vector.load %arg21[%c2_221, %c0_222] : memref<4x256xf32, #tpu.memory_space<vmem>>, vector<1x256xf32>
    tpu.vector_store %arg21[%c2_221, %c0_222], %156 {strides = array<i32>} : memref<4x256xf32, #tpu.memory_space<vmem>>, vector<1x256xf32>,
    %c5_223 = arith.constant 5 : index
    %c0_224 = arith.constant 0 : index
    %158 = vector.load %arg15[%c5_223, %c0_224] : memref<8x256xf32, #tpu.memory_space<vmem>>, vector<1x256xf32>
    %c3_225 = arith.constant 3 : index
    %c0_226 = arith.constant 0 : index
    %159 = vector.load %arg21[%c3_225, %c0_226] : memref<4x256xf32, #tpu.memory_space<vmem>>, vector<1x256xf32>
    tpu.vector_store %arg21[%c3_225, %c0_226], %158 {strides = array<i32>} : memref<4x256xf32, #tpu.memory_space<vmem>>, vector<1x256xf32>,
    %c0_227 = arith.constant 0 : index
    %c0_228 = arith.constant 0 : index
    %160 = vector.load %arg21[%c0_227, %c0_228] : memref<4x256xf32, #tpu.memory_space<vmem>>, vector<4x256xf32>
    %c0_229 = arith.constant 0 : index
    %c0_230 = arith.constant 0 : index
    %c0_231 = arith.constant 0 : index
    %161 = vector.load %arg4[%c0_229, %c0_230, %c0_231] : memref<3x256x256xbf16, #tpu.memory_space<vmem>>, vector<1x256x256xbf16>
    %162 = vector.shape_cast %161 : vector<1x256x256xbf16> to vector<256x256xbf16>
    %163 = arith.truncf %160 : vector<4x256xf32> to vector<4x256xbf16>
    %cst_232 = arith.constant dense<0.000000e+00> : vector<4x256xf32>
    %164 = tpu.matmul %163, %162, %cst_232 {dimension_numbers = #tpu.dot_dimension_numbers<[1], [0], [0], [1], [0, 0, 1, 1], [], []>} : vector<4x256xbf16>, vector<256x256xbf16>, vector<4x256xf32> -> vector<4x256xf32>
    %c0_233 = arith.constant 0 : index
    %c0_234 = arith.constant 0 : index
    %165 = vector.load %arg15[%c0_233, %c0_234] : memref<8x256xf32, #tpu.memory_space<vmem>>, vector<1x256xf32>
    %c0_235 = arith.constant 0 : index
    %c0_236 = arith.constant 0 : index
    %166 = vector.load %arg21[%c0_235, %c0_236] : memref<4x256xf32, #tpu.memory_space<vmem>>, vector<1x256xf32>
    tpu.vector_store %arg21[%c0_235, %c0_236], %165 {strides = array<i32>} : memref<4x256xf32, #tpu.memory_space<vmem>>, vector<1x256xf32>,
    %c2_237 = arith.constant 2 : index
    %c0_238 = arith.constant 0 : index
    %167 = vector.load %arg15[%c2_237, %c0_238] : memref<8x256xf32, #tpu.memory_space<vmem>>, vector<1x256xf32>
    %c1_239 = arith.constant 1 : index
    %c0_240 = arith.constant 0 : index
    %168 = vector.load %arg21[%c1_239, %c0_240] : memref<4x256xf32, #tpu.memory_space<vmem>>, vector<1x256xf32>
    tpu.vector_store %arg21[%c1_239, %c0_240], %167 {strides = array<i32>} : memref<4x256xf32, #tpu.memory_space<vmem>>, vector<1x256xf32>,
    %c4_241 = arith.constant 4 : index
    %c0_242 = arith.constant 0 : index
    %169 = vector.load %arg15[%c4_241, %c0_242] : memref<8x256xf32, #tpu.memory_space<vmem>>, vector<1x256xf32>
    %c2_243 = arith.constant 2 : index
    %c0_244 = arith.constant 0 : index
    %170 = vector.load %arg21[%c2_243, %c0_244] : memref<4x256xf32, #tpu.memory_space<vmem>>, vector<1x256xf32>
    tpu.vector_store %arg21[%c2_243, %c0_244], %169 {strides = array<i32>} : memref<4x256xf32, #tpu.memory_space<vmem>>, vector<1x256xf32>,
    %c6_245 = arith.constant 6 : index
    %c0_246 = arith.constant 0 : index
    %171 = vector.load %arg15[%c6_245, %c0_246] : memref<8x256xf32, #tpu.memory_space<vmem>>, vector<1x256xf32>
    %c3_247 = arith.constant 3 : index
    %c0_248 = arith.constant 0 : index
    %172 = vector.load %arg21[%c3_247, %c0_248] : memref<4x256xf32, #tpu.memory_space<vmem>>, vector<1x256xf32>
    tpu.vector_store %arg21[%c3_247, %c0_248], %171 {strides = array<i32>} : memref<4x256xf32, #tpu.memory_space<vmem>>, vector<1x256xf32>,
    %c0_249 = arith.constant 0 : index
    %c0_250 = arith.constant 0 : index
    %173 = vector.load %arg21[%c0_249, %c0_250] : memref<4x256xf32, #tpu.memory_space<vmem>>, vector<4x256xf32>
    %c1_251 = arith.constant 1 : index
    %c0_252 = arith.constant 0 : index
    %c0_253 = arith.constant 0 : index
    %174 = vector.load %arg4[%c1_251, %c0_252, %c0_253] : memref<3x256x256xbf16, #tpu.memory_space<vmem>>, vector<1x256x256xbf16>
    %175 = vector.shape_cast %174 : vector<1x256x256xbf16> to vector<256x256xbf16>
    %176 = arith.truncf %173 : vector<4x256xf32> to vector<4x256xbf16>
    %cst_254 = arith.constant dense<0.000000e+00> : vector<4x256xf32>
    %177 = tpu.matmul %176, %175, %cst_254 {dimension_numbers = #tpu.dot_dimension_numbers<[1], [0], [0], [1], [0, 0, 1, 1], [], []>} : vector<4x256xbf16>, vector<256x256xbf16>, vector<4x256xf32> -> vector<4x256xf32>
    %178 = arith.addf %164, %177 : vector<4x256xf32>
    %c1_255 = arith.constant 1 : index
    %c0_256 = arith.constant 0 : index
    %179 = vector.load %arg15[%c1_255, %c0_256] : memref<8x256xf32, #tpu.memory_space<vmem>>, vector<1x256xf32>
    %c0_257 = arith.constant 0 : index
    %c0_258 = arith.constant 0 : index
    %180 = vector.load %arg21[%c0_257, %c0_258] : memref<4x256xf32, #tpu.memory_space<vmem>>, vector<1x256xf32>
    tpu.vector_store %arg21[%c0_257, %c0_258], %179 {strides = array<i32>} : memref<4x256xf32, #tpu.memory_space<vmem>>, vector<1x256xf32>,
    %c3_259 = arith.constant 3 : index
    %c0_260 = arith.constant 0 : index
    %181 = vector.load %arg15[%c3_259, %c0_260] : memref<8x256xf32, #tpu.memory_space<vmem>>, vector<1x256xf32>
    %c1_261 = arith.constant 1 : index
    %c0_262 = arith.constant 0 : index
    %182 = vector.load %arg21[%c1_261, %c0_262] : memref<4x256xf32, #tpu.memory_space<vmem>>, vector<1x256xf32>
    tpu.vector_store %arg21[%c1_261, %c0_262], %181 {strides = array<i32>} : memref<4x256xf32, #tpu.memory_space<vmem>>, vector<1x256xf32>,
    %c5_263 = arith.constant 5 : index
    %c0_264 = arith.constant 0 : index
    %183 = vector.load %arg15[%c5_263, %c0_264] : memref<8x256xf32, #tpu.memory_space<vmem>>, vector<1x256xf32>
    %c2_265 = arith.constant 2 : index
    %c0_266 = arith.constant 0 : index
    %184 = vector.load %arg21[%c2_265, %c0_266] : memref<4x256xf32, #tpu.memory_space<vmem>>, vector<1x256xf32>
    tpu.vector_store %arg21[%c2_265, %c0_266], %183 {strides = array<i32>} : memref<4x256xf32, #tpu.memory_space<vmem>>, vector<1x256xf32>,
    %c7_267 = arith.constant 7 : index
    %c0_268 = arith.constant 0 : index
    %185 = vector.load %arg15[%c7_267, %c0_268] : memref<8x256xf32, #tpu.memory_space<vmem>>, vector<1x256xf32>
    %c3_269 = arith.constant 3 : index
    %c0_270 = arith.constant 0 : index
    %186 = vector.load %arg21[%c3_269, %c0_270] : memref<4x256xf32, #tpu.memory_space<vmem>>, vector<1x256xf32>
    tpu.vector_store %arg21[%c3_269, %c0_270], %185 {strides = array<i32>} : memref<4x256xf32, #tpu.memory_space<vmem>>, vector<1x256xf32>,
    %c0_271 = arith.constant 0 : index
    %c0_272 = arith.constant 0 : index
    %187 = vector.load %arg21[%c0_271, %c0_272] : memref<4x256xf32, #tpu.memory_space<vmem>>, vector<4x256xf32>
    %c2_273 = arith.constant 2 : index
    %c0_274 = arith.constant 0 : index
    %c0_275 = arith.constant 0 : index
    %188 = vector.load %arg4[%c2_273, %c0_274, %c0_275] : memref<3x256x256xbf16, #tpu.memory_space<vmem>>, vector<1x256x256xbf16>
    %189 = vector.shape_cast %188 : vector<1x256x256xbf16> to vector<256x256xbf16>
    %190 = arith.truncf %187 : vector<4x256xf32> to vector<4x256xbf16>
    %cst_276 = arith.constant dense<0.000000e+00> : vector<4x256xf32>
    %191 = tpu.matmul %190, %189, %cst_276 {dimension_numbers = #tpu.dot_dimension_numbers<[1], [0], [0], [1], [0, 0, 1, 1], [], []>} : vector<4x256xbf16>, vector<256x256xbf16>, vector<4x256xf32> -> vector<4x256xf32>
    %192 = arith.addf %178, %191 : vector<4x256xf32>
    %c0_277 = arith.constant 0 : index
    %c0_278 = arith.constant 0 : index
    %193 = vector.load %arg5[%c0_277, %c0_278] : memref<1x256xf32, #tpu.memory_space<vmem>>, vector<1x256xf32>
    %194 = vector.broadcast %193 : vector<1x256xf32> to vector<4x256xf32>
    %195 = arith.addf %192, %194 : vector<4x256xf32>
    %cst_279 = arith.constant 0.000000e+00 : f32
    %196 = vector.broadcast %cst_279 : f32 to vector<4x256xf32>
    %197 = arith.maximumf %195, %196 : vector<4x256xf32>
    %c0_280 = arith.constant 0 : index
    %c0_281 = arith.constant 0 : index
    %198 = vector.load %arg16[%c0_280, %c0_281] : memref<4x256xf32, #tpu.memory_space<vmem>>, vector<4x256xf32>
    tpu.vector_store %arg16[%c0_280, %c0_281], %197 {strides = array<i32>} : memref<4x256xf32, #tpu.memory_space<vmem>>, vector<4x256xf32>,
    %cst_282 = arith.constant 0.000000e+00 : f32
    %199 = vector.broadcast %cst_282 : f32 to vector<1x256xf32>
    %c0_283 = arith.constant 0 : index
    %c0_284 = arith.constant 0 : index
    %200 = vector.load %arg22[%c0_283, %c0_284] : memref<2x256xf32, #tpu.memory_space<vmem>>, vector<1x256xf32>
    tpu.vector_store %arg22[%c0_283, %c0_284], %199 {strides = array<i32>} : memref<2x256xf32, #tpu.memory_space<vmem>>, vector<1x256xf32>,
    %c1_285 = arith.constant 1 : index
    %c0_286 = arith.constant 0 : index
    %201 = vector.load %arg16[%c1_285, %c0_286] : memref<4x256xf32, #tpu.memory_space<vmem>>, vector<1x256xf32>
    %c1_287 = arith.constant 1 : index
    %c0_288 = arith.constant 0 : index
    %202 = vector.load %arg22[%c1_287, %c0_288] : memref<2x256xf32, #tpu.memory_space<vmem>>, vector<1x256xf32>
    tpu.vector_store %arg22[%c1_287, %c0_288], %201 {strides = array<i32>} : memref<2x256xf32, #tpu.memory_space<vmem>>, vector<1x256xf32>,
    %c0_289 = arith.constant 0 : index
    %c0_290 = arith.constant 0 : index
    %203 = vector.load %arg22[%c0_289, %c0_290] : memref<2x256xf32, #tpu.memory_space<vmem>>, vector<2x256xf32>
    %c0_291 = arith.constant 0 : index
    %c0_292 = arith.constant 0 : index
    %c0_293 = arith.constant 0 : index
    %204 = vector.load %arg6[%c0_291, %c0_292, %c0_293] : memref<3x256x256xbf16, #tpu.memory_space<vmem>>, vector<1x256x256xbf16>
    %205 = vector.shape_cast %204 : vector<1x256x256xbf16> to vector<256x256xbf16>
    %206 = arith.truncf %203 : vector<2x256xf32> to vector<2x256xbf16>
    %cst_294 = arith.constant dense<0.000000e+00> : vector<2x256xf32>
    %207 = tpu.matmul %206, %205, %cst_294 {dimension_numbers = #tpu.dot_dimension_numbers<[1], [0], [0], [1], [0, 0, 1, 1], [], []>} : vector<2x256xbf16>, vector<256x256xbf16>, vector<2x256xf32> -> vector<2x256xf32>
    %c0_295 = arith.constant 0 : index
    %c0_296 = arith.constant 0 : index
    %208 = vector.load %arg16[%c0_295, %c0_296] : memref<4x256xf32, #tpu.memory_space<vmem>>, vector<1x256xf32>
    %c0_297 = arith.constant 0 : index
    %c0_298 = arith.constant 0 : index
    %209 = vector.load %arg22[%c0_297, %c0_298] : memref<2x256xf32, #tpu.memory_space<vmem>>, vector<1x256xf32>
    tpu.vector_store %arg22[%c0_297, %c0_298], %208 {strides = array<i32>} : memref<2x256xf32, #tpu.memory_space<vmem>>, vector<1x256xf32>,
    %c2_299 = arith.constant 2 : index
    %c0_300 = arith.constant 0 : index
    %210 = vector.load %arg16[%c2_299, %c0_300] : memref<4x256xf32, #tpu.memory_space<vmem>>, vector<1x256xf32>
    %c1_301 = arith.constant 1 : index
    %c0_302 = arith.constant 0 : index
    %211 = vector.load %arg22[%c1_301, %c0_302] : memref<2x256xf32, #tpu.memory_space<vmem>>, vector<1x256xf32>
    tpu.vector_store %arg22[%c1_301, %c0_302], %210 {strides = array<i32>} : memref<2x256xf32, #tpu.memory_space<vmem>>, vector<1x256xf32>,
    %c0_303 = arith.constant 0 : index
    %c0_304 = arith.constant 0 : index
    %212 = vector.load %arg22[%c0_303, %c0_304] : memref<2x256xf32, #tpu.memory_space<vmem>>, vector<2x256xf32>
    %c1_305 = arith.constant 1 : index
    %c0_306 = arith.constant 0 : index
    %c0_307 = arith.constant 0 : index
    %213 = vector.load %arg6[%c1_305, %c0_306, %c0_307] : memref<3x256x256xbf16, #tpu.memory_space<vmem>>, vector<1x256x256xbf16>
    %214 = vector.shape_cast %213 : vector<1x256x256xbf16> to vector<256x256xbf16>
    %215 = arith.truncf %212 : vector<2x256xf32> to vector<2x256xbf16>
    %cst_308 = arith.constant dense<0.000000e+00> : vector<2x256xf32>
    %216 = tpu.matmul %215, %214, %cst_308 {dimension_numbers = #tpu.dot_dimension_numbers<[1], [0], [0], [1], [0, 0, 1, 1], [], []>} : vector<2x256xbf16>, vector<256x256xbf16>, vector<2x256xf32> -> vector<2x256xf32>
    %217 = arith.addf %207, %216 : vector<2x256xf32>
    %c1_309 = arith.constant 1 : index
    %c0_310 = arith.constant 0 : index
    %218 = vector.load %arg16[%c1_309, %c0_310] : memref<4x256xf32, #tpu.memory_space<vmem>>, vector<1x256xf32>
    %c0_311 = arith.constant 0 : index
    %c0_312 = arith.constant 0 : index
    %219 = vector.load %arg22[%c0_311, %c0_312] : memref<2x256xf32, #tpu.memory_space<vmem>>, vector<1x256xf32>
    tpu.vector_store %arg22[%c0_311, %c0_312], %218 {strides = array<i32>} : memref<2x256xf32, #tpu.memory_space<vmem>>, vector<1x256xf32>,
    %c3_313 = arith.constant 3 : index
    %c0_314 = arith.constant 0 : index
    %220 = vector.load %arg16[%c3_313, %c0_314] : memref<4x256xf32, #tpu.memory_space<vmem>>, vector<1x256xf32>
    %c1_315 = arith.constant 1 : index
    %c0_316 = arith.constant 0 : index
    %221 = vector.load %arg22[%c1_315, %c0_316] : memref<2x256xf32, #tpu.memory_space<vmem>>, vector<1x256xf32>
    tpu.vector_store %arg22[%c1_315, %c0_316], %220 {strides = array<i32>} : memref<2x256xf32, #tpu.memory_space<vmem>>, vector<1x256xf32>,
    %c0_317 = arith.constant 0 : index
    %c0_318 = arith.constant 0 : index
    %222 = vector.load %arg22[%c0_317, %c0_318] : memref<2x256xf32, #tpu.memory_space<vmem>>, vector<2x256xf32>
    %c2_319 = arith.constant 2 : index
    %c0_320 = arith.constant 0 : index
    %c0_321 = arith.constant 0 : index
    %223 = vector.load %arg6[%c2_319, %c0_320, %c0_321] : memref<3x256x256xbf16, #tpu.memory_space<vmem>>, vector<1x256x256xbf16>
    %224 = vector.shape_cast %223 : vector<1x256x256xbf16> to vector<256x256xbf16>
    %225 = arith.truncf %222 : vector<2x256xf32> to vector<2x256xbf16>
    %cst_322 = arith.constant dense<0.000000e+00> : vector<2x256xf32>
    %226 = tpu.matmul %225, %224, %cst_322 {dimension_numbers = #tpu.dot_dimension_numbers<[1], [0], [0], [1], [0, 0, 1, 1], [], []>} : vector<2x256xbf16>, vector<256x256xbf16>, vector<2x256xf32> -> vector<2x256xf32>
    %227 = arith.addf %217, %226 : vector<2x256xf32>
    %c0_323 = arith.constant 0 : index
    %c0_324 = arith.constant 0 : index
    %228 = vector.load %arg7[%c0_323, %c0_324] : memref<1x256xf32, #tpu.memory_space<vmem>>, vector<1x256xf32>
    %229 = vector.broadcast %228 : vector<1x256xf32> to vector<2x256xf32>
    %230 = arith.addf %227, %229 : vector<2x256xf32>
    %cst_325 = arith.constant 0.000000e+00 : f32
    %231 = vector.broadcast %cst_325 : f32 to vector<2x256xf32>
    %232 = arith.maximumf %230, %231 : vector<2x256xf32>
    %c0_326 = arith.constant 0 : index
    %c0_327 = arith.constant 0 : index
    %233 = vector.load %arg17[%c0_326, %c0_327] : memref<2x256xf32, #tpu.memory_space<vmem>>, vector<2x256xf32>
    tpu.vector_store %arg17[%c0_326, %c0_327], %232 {strides = array<i32>} : memref<2x256xf32, #tpu.memory_space<vmem>>, vector<2x256xf32>,
    %cst_328 = arith.constant 0.000000e+00 : f32
    %234 = vector.broadcast %cst_328 : f32 to vector<1x256xf32>
    %c0_329 = arith.constant 0 : index
    %c0_330 = arith.constant 0 : index
    %235 = vector.load %arg23[%c0_329, %c0_330] : memref<2x256xf32, #tpu.memory_space<vmem>>, vector<1x256xf32>
    tpu.vector_store %arg23[%c0_329, %c0_330], %234 {strides = array<i32>} : memref<2x256xf32, #tpu.memory_space<vmem>>, vector<1x256xf32>,
    %c0_331 = arith.constant 0 : index
    %c0_332 = arith.constant 0 : index
    %236 = vector.load %arg17[%c0_331, %c0_332] : memref<2x256xf32, #tpu.memory_space<vmem>>, vector<1x256xf32>
    %c1_333 = arith.constant 1 : index
    %c0_334 = arith.constant 0 : index
    %237 = vector.load %arg23[%c1_333, %c0_334] : memref<2x256xf32, #tpu.memory_space<vmem>>, vector<1x256xf32>
    tpu.vector_store %arg23[%c1_333, %c0_334], %236 {strides = array<i32>} : memref<2x256xf32, #tpu.memory_space<vmem>>, vector<1x256xf32>,
    %c0_335 = arith.constant 0 : index
    %c0_336 = arith.constant 0 : index
    %238 = vector.load %arg23[%c0_335, %c0_336] : memref<2x256xf32, #tpu.memory_space<vmem>>, vector<2x256xf32>
    %c0_337 = arith.constant 0 : index
    %c0_338 = arith.constant 0 : index
    %c0_339 = arith.constant 0 : index
    %239 = vector.load %arg8[%c0_337, %c0_338, %c0_339] : memref<4x256x256xbf16, #tpu.memory_space<vmem>>, vector<1x256x256xbf16>
    %240 = vector.shape_cast %239 : vector<1x256x256xbf16> to vector<256x256xbf16>
    %241 = arith.truncf %238 : vector<2x256xf32> to vector<2x256xbf16>
    %cst_340 = arith.constant dense<0.000000e+00> : vector<2x256xf32>
    %242 = tpu.matmul %241, %240, %cst_340 {dimension_numbers = #tpu.dot_dimension_numbers<[1], [0], [0], [1], [0, 0, 1, 1], [], []>} : vector<2x256xbf16>, vector<256x256xbf16>, vector<2x256xf32> -> vector<2x256xf32>
    %c0_341 = arith.constant 0 : index
    %c0_342 = arith.constant 0 : index
    %243 = vector.load %arg17[%c0_341, %c0_342] : memref<2x256xf32, #tpu.memory_space<vmem>>, vector<2x256xf32>
    %c1_343 = arith.constant 1 : index
    %c0_344 = arith.constant 0 : index
    %c0_345 = arith.constant 0 : index
    %244 = vector.load %arg8[%c1_343, %c0_344, %c0_345] : memref<4x256x256xbf16, #tpu.memory_space<vmem>>, vector<1x256x256xbf16>
    %245 = vector.shape_cast %244 : vector<1x256x256xbf16> to vector<256x256xbf16>
    %246 = arith.truncf %243 : vector<2x256xf32> to vector<2x256xbf16>
    %cst_346 = arith.constant dense<0.000000e+00> : vector<2x256xf32>
    %247 = tpu.matmul %246, %245, %cst_346 {dimension_numbers = #tpu.dot_dimension_numbers<[1], [0], [0], [1], [0, 0, 1, 1], [], []>} : vector<2x256xbf16>, vector<256x256xbf16>, vector<2x256xf32> -> vector<2x256xf32>
    %248 = arith.addf %242, %247 : vector<2x256xf32>
    %c0_347 = arith.constant 0 : index
    %c0_348 = arith.constant 0 : index
    %249 = vector.load %arg9[%c0_347, %c0_348] : memref<1x256xf32, #tpu.memory_space<vmem>>, vector<1x256xf32>
    %250 = vector.broadcast %249 : vector<1x256xf32> to vector<2x256xf32>
    %251 = arith.addf %248, %250 : vector<2x256xf32>
    %cst_349 = arith.constant 0.000000e+00 : f32
    %252 = vector.broadcast %cst_349 : f32 to vector<2x256xf32>
    %253 = arith.maximumf %251, %252 : vector<2x256xf32>
    %254 = vector.extract_strided_slice %253 {offsets = [0, 0], sizes = [1, 256], strides = [1, 1]} : vector<2x256xf32> to vector<1x256xf32>
    %c0_350 = arith.constant 0 : index
    %c0_351 = arith.constant 0 : index
    %255 = vector.load %arg18[%c0_350, %c0_351] : memref<4x256xf32, #tpu.memory_space<vmem>>, vector<1x256xf32>
    tpu.vector_store %arg18[%c0_350, %c0_351], %254 {strides = array<i32>} : memref<4x256xf32, #tpu.memory_space<vmem>>, vector<1x256xf32>,
    %256 = vector.extract_strided_slice %253 {offsets = [1, 0], sizes = [1, 256], strides = [1, 1]} : vector<2x256xf32> to vector<1x256xf32>
    %c2_352 = arith.constant 2 : index
    %c0_353 = arith.constant 0 : index
    %257 = vector.load %arg18[%c2_352, %c0_353] : memref<4x256xf32, #tpu.memory_space<vmem>>, vector<1x256xf32>
    tpu.vector_store %arg18[%c2_352, %c0_353], %256 {strides = array<i32>} : memref<4x256xf32, #tpu.memory_space<vmem>>, vector<1x256xf32>,
    %c0_354 = arith.constant 0 : index
    %c0_355 = arith.constant 0 : index
    %258 = vector.load %arg17[%c0_354, %c0_355] : memref<2x256xf32, #tpu.memory_space<vmem>>, vector<2x256xf32>
    %c2_356 = arith.constant 2 : index
    %c0_357 = arith.constant 0 : index
    %c0_358 = arith.constant 0 : index
    %259 = vector.load %arg8[%c2_356, %c0_357, %c0_358] : memref<4x256x256xbf16, #tpu.memory_space<vmem>>, vector<1x256x256xbf16>
    %260 = vector.shape_cast %259 : vector<1x256x256xbf16> to vector<256x256xbf16>
    %261 = arith.truncf %258 : vector<2x256xf32> to vector<2x256xbf16>
    %cst_359 = arith.constant dense<0.000000e+00> : vector<2x256xf32>
    %262 = tpu.matmul %261, %260, %cst_359 {dimension_numbers = #tpu.dot_dimension_numbers<[1], [0], [0], [1], [0, 0, 1, 1], [], []>} : vector<2x256xbf16>, vector<256x256xbf16>, vector<2x256xf32> -> vector<2x256xf32>
    %c1_360 = arith.constant 1 : index
    %c0_361 = arith.constant 0 : index
    %263 = vector.load %arg17[%c1_360, %c0_361] : memref<2x256xf32, #tpu.memory_space<vmem>>, vector<1x256xf32>
    %c0_362 = arith.constant 0 : index
    %c0_363 = arith.constant 0 : index
    %264 = vector.load %arg23[%c0_362, %c0_363] : memref<2x256xf32, #tpu.memory_space<vmem>>, vector<1x256xf32>
    tpu.vector_store %arg23[%c0_362, %c0_363], %263 {strides = array<i32>} : memref<2x256xf32, #tpu.memory_space<vmem>>, vector<1x256xf32>,
    %cst_364 = arith.constant 0.000000e+00 : f32
    %265 = vector.broadcast %cst_364 : f32 to vector<1x256xf32>
    %c1_365 = arith.constant 1 : index
    %c0_366 = arith.constant 0 : index
    %266 = vector.load %arg23[%c1_365, %c0_366] : memref<2x256xf32, #tpu.memory_space<vmem>>, vector<1x256xf32>
    tpu.vector_store %arg23[%c1_365, %c0_366], %265 {strides = array<i32>} : memref<2x256xf32, #tpu.memory_space<vmem>>, vector<1x256xf32>,
    %c0_367 = arith.constant 0 : index
    %c0_368 = arith.constant 0 : index
    %267 = vector.load %arg23[%c0_367, %c0_368] : memref<2x256xf32, #tpu.memory_space<vmem>>, vector<2x256xf32>
    %c3_369 = arith.constant 3 : index
    %c0_370 = arith.constant 0 : index
    %c0_371 = arith.constant 0 : index
    %268 = vector.load %arg8[%c3_369, %c0_370, %c0_371] : memref<4x256x256xbf16, #tpu.memory_space<vmem>>, vector<1x256x256xbf16>
    %269 = vector.shape_cast %268 : vector<1x256x256xbf16> to vector<256x256xbf16>
    %270 = arith.truncf %267 : vector<2x256xf32> to vector<2x256xbf16>
    %cst_372 = arith.constant dense<0.000000e+00> : vector<2x256xf32>
    %271 = tpu.matmul %270, %269, %cst_372 {dimension_numbers = #tpu.dot_dimension_numbers<[1], [0], [0], [1], [0, 0, 1, 1], [], []>} : vector<2x256xbf16>, vector<256x256xbf16>, vector<2x256xf32> -> vector<2x256xf32>
    %272 = arith.addf %262, %271 : vector<2x256xf32>
    %c0_373 = arith.constant 0 : index
    %c0_374 = arith.constant 0 : index
    %273 = vector.load %arg9[%c0_373, %c0_374] : memref<1x256xf32, #tpu.memory_space<vmem>>, vector<1x256xf32>
    %274 = vector.broadcast %273 : vector<1x256xf32> to vector<2x256xf32>
    %275 = arith.addf %272, %274 : vector<2x256xf32>
    %cst_375 = arith.constant 0.000000e+00 : f32
    %276 = vector.broadcast %cst_375 : f32 to vector<2x256xf32>
    %277 = arith.maximumf %275, %276 : vector<2x256xf32>
    %278 = vector.extract_strided_slice %277 {offsets = [0, 0], sizes = [1, 256], strides = [1, 1]} : vector<2x256xf32> to vector<1x256xf32>
    %c1_376 = arith.constant 1 : index
    %c0_377 = arith.constant 0 : index
    %279 = vector.load %arg18[%c1_376, %c0_377] : memref<4x256xf32, #tpu.memory_space<vmem>>, vector<1x256xf32>
    tpu.vector_store %arg18[%c1_376, %c0_377], %278 {strides = array<i32>} : memref<4x256xf32, #tpu.memory_space<vmem>>, vector<1x256xf32>,
    %280 = vector.extract_strided_slice %277 {offsets = [1, 0], sizes = [1, 256], strides = [1, 1]} : vector<2x256xf32> to vector<1x256xf32>
    %c3_378 = arith.constant 3 : index
    %c0_379 = arith.constant 0 : index
    %281 = vector.load %arg18[%c3_378, %c0_379] : memref<4x256xf32, #tpu.memory_space<vmem>>, vector<1x256xf32>
    tpu.vector_store %arg18[%c3_378, %c0_379], %280 {strides = array<i32>} : memref<4x256xf32, #tpu.memory_space<vmem>>, vector<1x256xf32>,
    %cst_380 = arith.constant 0.000000e+00 : f32
    %282 = vector.broadcast %cst_380 : f32 to vector<1x256xf32>
    %c0_381 = arith.constant 0 : index
    %c0_382 = arith.constant 0 : index
    %283 = vector.load %arg24[%c0_381, %c0_382] : memref<4x256xf32, #tpu.memory_space<vmem>>, vector<1x256xf32>
    tpu.vector_store %arg24[%c0_381, %c0_382], %282 {strides = array<i32>} : memref<4x256xf32, #tpu.memory_space<vmem>>, vector<1x256xf32>,
    %c0_383 = arith.constant 0 : index
    %c0_384 = arith.constant 0 : index
    %284 = vector.load %arg18[%c0_383, %c0_384] : memref<4x256xf32, #tpu.memory_space<vmem>>, vector<1x256xf32>
    %c1_385 = arith.constant 1 : index
    %c0_386 = arith.constant 0 : index
    %285 = vector.load %arg24[%c1_385, %c0_386] : memref<4x256xf32, #tpu.memory_space<vmem>>, vector<1x256xf32>
    tpu.vector_store %arg24[%c1_385, %c0_386], %284 {strides = array<i32>} : memref<4x256xf32, #tpu.memory_space<vmem>>, vector<1x256xf32>,
    %c1_387 = arith.constant 1 : index
    %c0_388 = arith.constant 0 : index
    %286 = vector.load %arg18[%c1_387, %c0_388] : memref<4x256xf32, #tpu.memory_space<vmem>>, vector<1x256xf32>
    %c2_389 = arith.constant 2 : index
    %c0_390 = arith.constant 0 : index
    %287 = vector.load %arg24[%c2_389, %c0_390] : memref<4x256xf32, #tpu.memory_space<vmem>>, vector<1x256xf32>
    tpu.vector_store %arg24[%c2_389, %c0_390], %286 {strides = array<i32>} : memref<4x256xf32, #tpu.memory_space<vmem>>, vector<1x256xf32>,
    %c2_391 = arith.constant 2 : index
    %c0_392 = arith.constant 0 : index
    %288 = vector.load %arg18[%c2_391, %c0_392] : memref<4x256xf32, #tpu.memory_space<vmem>>, vector<1x256xf32>
    %c3_393 = arith.constant 3 : index
    %c0_394 = arith.constant 0 : index
    %289 = vector.load %arg24[%c3_393, %c0_394] : memref<4x256xf32, #tpu.memory_space<vmem>>, vector<1x256xf32>
    tpu.vector_store %arg24[%c3_393, %c0_394], %288 {strides = array<i32>} : memref<4x256xf32, #tpu.memory_space<vmem>>, vector<1x256xf32>,
    %c0_395 = arith.constant 0 : index
    %c0_396 = arith.constant 0 : index
    %290 = vector.load %arg24[%c0_395, %c0_396] : memref<4x256xf32, #tpu.memory_space<vmem>>, vector<4x256xf32>
    %c0_397 = arith.constant 0 : index
    %c0_398 = arith.constant 0 : index
    %c0_399 = arith.constant 0 : index
    %291 = vector.load %arg10[%c0_397, %c0_398, %c0_399] : memref<4x256x256xbf16, #tpu.memory_space<vmem>>, vector<1x256x256xbf16>
    %292 = vector.shape_cast %291 : vector<1x256x256xbf16> to vector<256x256xbf16>
    %293 = arith.truncf %290 : vector<4x256xf32> to vector<4x256xbf16>
    %cst_400 = arith.constant dense<0.000000e+00> : vector<4x256xf32>
    %294 = tpu.matmul %293, %292, %cst_400 {dimension_numbers = #tpu.dot_dimension_numbers<[1], [0], [0], [1], [0, 0, 1, 1], [], []>} : vector<4x256xbf16>, vector<256x256xbf16>, vector<4x256xf32> -> vector<4x256xf32>
    %c0_401 = arith.constant 0 : index
    %c0_402 = arith.constant 0 : index
    %295 = vector.load %arg18[%c0_401, %c0_402] : memref<4x256xf32, #tpu.memory_space<vmem>>, vector<4x256xf32>
    %c1_403 = arith.constant 1 : index
    %c0_404 = arith.constant 0 : index
    %c0_405 = arith.constant 0 : index
    %296 = vector.load %arg10[%c1_403, %c0_404, %c0_405] : memref<4x256x256xbf16, #tpu.memory_space<vmem>>, vector<1x256x256xbf16>
    %297 = vector.shape_cast %296 : vector<1x256x256xbf16> to vector<256x256xbf16>
    %298 = arith.truncf %295 : vector<4x256xf32> to vector<4x256xbf16>
    %cst_406 = arith.constant dense<0.000000e+00> : vector<4x256xf32>
    %299 = tpu.matmul %298, %297, %cst_406 {dimension_numbers = #tpu.dot_dimension_numbers<[1], [0], [0], [1], [0, 0, 1, 1], [], []>} : vector<4x256xbf16>, vector<256x256xbf16>, vector<4x256xf32> -> vector<4x256xf32>
    %300 = arith.addf %294, %299 : vector<4x256xf32>
    %c0_407 = arith.constant 0 : index
    %c0_408 = arith.constant 0 : index
    %301 = vector.load %arg11[%c0_407, %c0_408] : memref<1x256xf32, #tpu.memory_space<vmem>>, vector<1x256xf32>
    %302 = vector.broadcast %301 : vector<1x256xf32> to vector<4x256xf32>
    %303 = arith.addf %300, %302 : vector<4x256xf32>
    %cst_409 = arith.constant 0.000000e+00 : f32
    %304 = vector.broadcast %cst_409 : f32 to vector<4x256xf32>
    %305 = arith.maximumf %303, %304 : vector<4x256xf32>
    %306 = vector.extract_strided_slice %305 {offsets = [0, 0], sizes = [1, 256], strides = [1, 1]} : vector<4x256xf32> to vector<1x256xf32>
    %c0_410 = arith.constant 0 : index
    %c0_411 = arith.constant 0 : index
    %307 = vector.load %arg19[%c0_410, %c0_411] : memref<8x256xf32, #tpu.memory_space<vmem>>, vector<1x256xf32>
    tpu.vector_store %arg19[%c0_410, %c0_411], %306 {strides = array<i32>} : memref<8x256xf32, #tpu.memory_space<vmem>>, vector<1x256xf32>,
    %308 = vector.extract_strided_slice %305 {offsets = [1, 0], sizes = [1, 256], strides = [1, 1]} : vector<4x256xf32> to vector<1x256xf32>
    %c2_412 = arith.constant 2 : index
    %c0_413 = arith.constant 0 : index
    %309 = vector.load %arg19[%c2_412, %c0_413] : memref<8x256xf32, #tpu.memory_space<vmem>>, vector<1x256xf32>
    tpu.vector_store %arg19[%c2_412, %c0_413], %308 {strides = array<i32>} : memref<8x256xf32, #tpu.memory_space<vmem>>, vector<1x256xf32>,
    %310 = vector.extract_strided_slice %305 {offsets = [2, 0], sizes = [1, 256], strides = [1, 1]} : vector<4x256xf32> to vector<1x256xf32>
    %c4_414 = arith.constant 4 : index
    %c0_415 = arith.constant 0 : index
    %311 = vector.load %arg19[%c4_414, %c0_415] : memref<8x256xf32, #tpu.memory_space<vmem>>, vector<1x256xf32>
    tpu.vector_store %arg19[%c4_414, %c0_415], %310 {strides = array<i32>} : memref<8x256xf32, #tpu.memory_space<vmem>>, vector<1x256xf32>,
    %312 = vector.extract_strided_slice %305 {offsets = [3, 0], sizes = [1, 256], strides = [1, 1]} : vector<4x256xf32> to vector<1x256xf32>
    %c6_416 = arith.constant 6 : index
    %c0_417 = arith.constant 0 : index
    %313 = vector.load %arg19[%c6_416, %c0_417] : memref<8x256xf32, #tpu.memory_space<vmem>>, vector<1x256xf32>
    tpu.vector_store %arg19[%c6_416, %c0_417], %312 {strides = array<i32>} : memref<8x256xf32, #tpu.memory_space<vmem>>, vector<1x256xf32>,
    %c0_418 = arith.constant 0 : index
    %c0_419 = arith.constant 0 : index
    %314 = vector.load %arg18[%c0_418, %c0_419] : memref<4x256xf32, #tpu.memory_space<vmem>>, vector<4x256xf32>
    %c2_420 = arith.constant 2 : index
    %c0_421 = arith.constant 0 : index
    %c0_422 = arith.constant 0 : index
    %315 = vector.load %arg10[%c2_420, %c0_421, %c0_422] : memref<4x256x256xbf16, #tpu.memory_space<vmem>>, vector<1x256x256xbf16>
    %316 = vector.shape_cast %315 : vector<1x256x256xbf16> to vector<256x256xbf16>
    %317 = arith.truncf %314 : vector<4x256xf32> to vector<4x256xbf16>
    %cst_423 = arith.constant dense<0.000000e+00> : vector<4x256xf32>
    %318 = tpu.matmul %317, %316, %cst_423 {dimension_numbers = #tpu.dot_dimension_numbers<[1], [0], [0], [1], [0, 0, 1, 1], [], []>} : vector<4x256xbf16>, vector<256x256xbf16>, vector<4x256xf32> -> vector<4x256xf32>
    %c1_424 = arith.constant 1 : index
    %c0_425 = arith.constant 0 : index
    %319 = vector.load %arg18[%c1_424, %c0_425] : memref<4x256xf32, #tpu.memory_space<vmem>>, vector<1x256xf32>
    %c0_426 = arith.constant 0 : index
    %c0_427 = arith.constant 0 : index
    %320 = vector.load %arg24[%c0_426, %c0_427] : memref<4x256xf32, #tpu.memory_space<vmem>>, vector<1x256xf32>
    tpu.vector_store %arg24[%c0_426, %c0_427], %319 {strides = array<i32>} : memref<4x256xf32, #tpu.memory_space<vmem>>, vector<1x256xf32>,
    %c2_428 = arith.constant 2 : index
    %c0_429 = arith.constant 0 : index
    %321 = vector.load %arg18[%c2_428, %c0_429] : memref<4x256xf32, #tpu.memory_space<vmem>>, vector<1x256xf32>
    %c1_430 = arith.constant 1 : index
    %c0_431 = arith.constant 0 : index
    %322 = vector.load %arg24[%c1_430, %c0_431] : memref<4x256xf32, #tpu.memory_space<vmem>>, vector<1x256xf32>
    tpu.vector_store %arg24[%c1_430, %c0_431], %321 {strides = array<i32>} : memref<4x256xf32, #tpu.memory_space<vmem>>, vector<1x256xf32>,
    %c3_432 = arith.constant 3 : index
    %c0_433 = arith.constant 0 : index
    %323 = vector.load %arg18[%c3_432, %c0_433] : memref<4x256xf32, #tpu.memory_space<vmem>>, vector<1x256xf32>
    %c2_434 = arith.constant 2 : index
    %c0_435 = arith.constant 0 : index
    %324 = vector.load %arg24[%c2_434, %c0_435] : memref<4x256xf32, #tpu.memory_space<vmem>>, vector<1x256xf32>
    tpu.vector_store %arg24[%c2_434, %c0_435], %323 {strides = array<i32>} : memref<4x256xf32, #tpu.memory_space<vmem>>, vector<1x256xf32>,
    %cst_436 = arith.constant 0.000000e+00 : f32
    %325 = vector.broadcast %cst_436 : f32 to vector<1x256xf32>
    %c3_437 = arith.constant 3 : index
    %c0_438 = arith.constant 0 : index
    %326 = vector.load %arg24[%c3_437, %c0_438] : memref<4x256xf32, #tpu.memory_space<vmem>>, vector<1x256xf32>
    tpu.vector_store %arg24[%c3_437, %c0_438], %325 {strides = array<i32>} : memref<4x256xf32, #tpu.memory_space<vmem>>, vector<1x256xf32>,
    %c0_439 = arith.constant 0 : index
    %c0_440 = arith.constant 0 : index
    %327 = vector.load %arg24[%c0_439, %c0_440] : memref<4x256xf32, #tpu.memory_space<vmem>>, vector<4x256xf32>
    %c3_441 = arith.constant 3 : index
    %c0_442 = arith.constant 0 : index
    %c0_443 = arith.constant 0 : index
    %328 = vector.load %arg10[%c3_441, %c0_442, %c0_443] : memref<4x256x256xbf16, #tpu.memory_space<vmem>>, vector<1x256x256xbf16>
    %329 = vector.shape_cast %328 : vector<1x256x256xbf16> to vector<256x256xbf16>
    %330 = arith.truncf %327 : vector<4x256xf32> to vector<4x256xbf16>
    %cst_444 = arith.constant dense<0.000000e+00> : vector<4x256xf32>
    %331 = tpu.matmul %330, %329, %cst_444 {dimension_numbers = #tpu.dot_dimension_numbers<[1], [0], [0], [1], [0, 0, 1, 1], [], []>} : vector<4x256xbf16>, vector<256x256xbf16>, vector<4x256xf32> -> vector<4x256xf32>
    %332 = arith.addf %318, %331 : vector<4x256xf32>
    %c0_445 = arith.constant 0 : index
    %c0_446 = arith.constant 0 : index
    %333 = vector.load %arg11[%c0_445, %c0_446] : memref<1x256xf32, #tpu.memory_space<vmem>>, vector<1x256xf32>
    %334 = vector.broadcast %333 : vector<1x256xf32> to vector<4x256xf32>
    %335 = arith.addf %332, %334 : vector<4x256xf32>
    %cst_447 = arith.constant 0.000000e+00 : f32
    %336 = vector.broadcast %cst_447 : f32 to vector<4x256xf32>
    %337 = arith.maximumf %335, %336 : vector<4x256xf32>
    %338 = vector.extract_strided_slice %337 {offsets = [0, 0], sizes = [1, 256], strides = [1, 1]} : vector<4x256xf32> to vector<1x256xf32>
    %c1_448 = arith.constant 1 : index
    %c0_449 = arith.constant 0 : index
    %339 = vector.load %arg19[%c1_448, %c0_449] : memref<8x256xf32, #tpu.memory_space<vmem>>, vector<1x256xf32>
    tpu.vector_store %arg19[%c1_448, %c0_449], %338 {strides = array<i32>} : memref<8x256xf32, #tpu.memory_space<vmem>>, vector<1x256xf32>,
    %340 = vector.extract_strided_slice %337 {offsets = [1, 0], sizes = [1, 256], strides = [1, 1]} : vector<4x256xf32> to vector<1x256xf32>
    %c3_450 = arith.constant 3 : index
    %c0_451 = arith.constant 0 : index
    %341 = vector.load %arg19[%c3_450, %c0_451] : memref<8x256xf32, #tpu.memory_space<vmem>>, vector<1x256xf32>
    tpu.vector_store %arg19[%c3_450, %c0_451], %340 {strides = array<i32>} : memref<8x256xf32, #tpu.memory_space<vmem>>, vector<1x256xf32>,
    %342 = vector.extract_strided_slice %337 {offsets = [2, 0], sizes = [1, 256], strides = [1, 1]} : vector<4x256xf32> to vector<1x256xf32>
    %c5_452 = arith.constant 5 : index
    %c0_453 = arith.constant 0 : index
    %343 = vector.load %arg19[%c5_452, %c0_453] : memref<8x256xf32, #tpu.memory_space<vmem>>, vector<1x256xf32>
    tpu.vector_store %arg19[%c5_452, %c0_453], %342 {strides = array<i32>} : memref<8x256xf32, #tpu.memory_space<vmem>>, vector<1x256xf32>,
    %344 = vector.extract_strided_slice %337 {offsets = [3, 0], sizes = [1, 256], strides = [1, 1]} : vector<4x256xf32> to vector<1x256xf32>
    %c7_454 = arith.constant 7 : index
    %c0_455 = arith.constant 0 : index
    %345 = vector.load %arg19[%c7_454, %c0_455] : memref<8x256xf32, #tpu.memory_space<vmem>>, vector<1x256xf32>
    tpu.vector_store %arg19[%c7_454, %c0_455], %344 {strides = array<i32>} : memref<8x256xf32, #tpu.memory_space<vmem>>, vector<1x256xf32>,
    %cst_456 = arith.constant 0.000000e+00 : f32
    %346 = vector.broadcast %cst_456 : f32 to vector<1x256xf32>
    %c0_457 = arith.constant 0 : index
    %c0_458 = arith.constant 0 : index
    %347 = vector.load %arg25[%c0_457, %c0_458] : memref<8x256xf32, #tpu.memory_space<vmem>>, vector<1x256xf32>
    tpu.vector_store %arg25[%c0_457, %c0_458], %346 {strides = array<i32>} : memref<8x256xf32, #tpu.memory_space<vmem>>, vector<1x256xf32>,
    %c0_459 = arith.constant 0 : index
    %c0_460 = arith.constant 0 : index
    %348 = vector.load %arg19[%c0_459, %c0_460] : memref<8x256xf32, #tpu.memory_space<vmem>>, vector<1x256xf32>
    %c1_461 = arith.constant 1 : index
    %c0_462 = arith.constant 0 : index
    %349 = vector.load %arg25[%c1_461, %c0_462] : memref<8x256xf32, #tpu.memory_space<vmem>>, vector<1x256xf32>
    tpu.vector_store %arg25[%c1_461, %c0_462], %348 {strides = array<i32>} : memref<8x256xf32, #tpu.memory_space<vmem>>, vector<1x256xf32>,
    %c1_463 = arith.constant 1 : index
    %c0_464 = arith.constant 0 : index
    %350 = vector.load %arg19[%c1_463, %c0_464] : memref<8x256xf32, #tpu.memory_space<vmem>>, vector<1x256xf32>
    %c2_465 = arith.constant 2 : index
    %c0_466 = arith.constant 0 : index
    %351 = vector.load %arg25[%c2_465, %c0_466] : memref<8x256xf32, #tpu.memory_space<vmem>>, vector<1x256xf32>
    tpu.vector_store %arg25[%c2_465, %c0_466], %350 {strides = array<i32>} : memref<8x256xf32, #tpu.memory_space<vmem>>, vector<1x256xf32>,
    %c2_467 = arith.constant 2 : index
    %c0_468 = arith.constant 0 : index
    %352 = vector.load %arg19[%c2_467, %c0_468] : memref<8x256xf32, #tpu.memory_space<vmem>>, vector<1x256xf32>
    %c3_469 = arith.constant 3 : index
    %c0_470 = arith.constant 0 : index
    %353 = vector.load %arg25[%c3_469, %c0_470] : memref<8x256xf32, #tpu.memory_space<vmem>>, vector<1x256xf32>
    tpu.vector_store %arg25[%c3_469, %c0_470], %352 {strides = array<i32>} : memref<8x256xf32, #tpu.memory_space<vmem>>, vector<1x256xf32>,
    %c3_471 = arith.constant 3 : index
    %c0_472 = arith.constant 0 : index
    %354 = vector.load %arg19[%c3_471, %c0_472] : memref<8x256xf32, #tpu.memory_space<vmem>>, vector<1x256xf32>
    %c4_473 = arith.constant 4 : index
    %c0_474 = arith.constant 0 : index
    %355 = vector.load %arg25[%c4_473, %c0_474] : memref<8x256xf32, #tpu.memory_space<vmem>>, vector<1x256xf32>
    tpu.vector_store %arg25[%c4_473, %c0_474], %354 {strides = array<i32>} : memref<8x256xf32, #tpu.memory_space<vmem>>, vector<1x256xf32>,
    %c4_475 = arith.constant 4 : index
    %c0_476 = arith.constant 0 : index
    %356 = vector.load %arg19[%c4_475, %c0_476] : memref<8x256xf32, #tpu.memory_space<vmem>>, vector<1x256xf32>
    %c5_477 = arith.constant 5 : index
    %c0_478 = arith.constant 0 : index
    %357 = vector.load %arg25[%c5_477, %c0_478] : memref<8x256xf32, #tpu.memory_space<vmem>>, vector<1x256xf32>
    tpu.vector_store %arg25[%c5_477, %c0_478], %356 {strides = array<i32>} : memref<8x256xf32, #tpu.memory_space<vmem>>, vector<1x256xf32>,
    %c5_479 = arith.constant 5 : index
    %c0_480 = arith.constant 0 : index
    %358 = vector.load %arg19[%c5_479, %c0_480] : memref<8x256xf32, #tpu.memory_space<vmem>>, vector<1x256xf32>
    %c6_481 = arith.constant 6 : index
    %c0_482 = arith.constant 0 : index
    %359 = vector.load %arg25[%c6_481, %c0_482] : memref<8x256xf32, #tpu.memory_space<vmem>>, vector<1x256xf32>
    tpu.vector_store %arg25[%c6_481, %c0_482], %358 {strides = array<i32>} : memref<8x256xf32, #tpu.memory_space<vmem>>, vector<1x256xf32>,
    %c6_483 = arith.constant 6 : index
    %c0_484 = arith.constant 0 : index
    %360 = vector.load %arg19[%c6_483, %c0_484] : memref<8x256xf32, #tpu.memory_space<vmem>>, vector<1x256xf32>
    %c7_485 = arith.constant 7 : index
    %c0_486 = arith.constant 0 : index
    %361 = vector.load %arg25[%c7_485, %c0_486] : memref<8x256xf32, #tpu.memory_space<vmem>>, vector<1x256xf32>
    tpu.vector_store %arg25[%c7_485, %c0_486], %360 {strides = array<i32>} : memref<8x256xf32, #tpu.memory_space<vmem>>, vector<1x256xf32>,
    %c0_487 = arith.constant 0 : index
    %c0_488 = arith.constant 0 : index
    %362 = vector.load %arg25[%c0_487, %c0_488] : memref<8x256xf32, #tpu.memory_space<vmem>>, vector<8x256xf32>
    %c0_489 = arith.constant 0 : index
    %c0_490 = arith.constant 0 : index
    %c0_491 = arith.constant 0 : index
    %363 = vector.load %arg12[%c0_489, %c0_490, %c0_491] : memref<4x256x32xbf16, #tpu.memory_space<vmem>>, vector<1x256x32xbf16>
    %364 = vector.shape_cast %363 : vector<1x256x32xbf16> to vector<256x32xbf16>
    %365 = arith.truncf %362 : vector<8x256xf32> to vector<8x256xbf16>
    %cst_492 = arith.constant dense<0.000000e+00> : vector<8x32xf32>
    %366 = tpu.matmul %365, %364, %cst_492 {dimension_numbers = #tpu.dot_dimension_numbers<[1], [0], [0], [1], [0, 0, 1, 1], [], []>} : vector<8x256xbf16>, vector<256x32xbf16>, vector<8x32xf32> -> vector<8x32xf32>
    %c0_493 = arith.constant 0 : index
    %c0_494 = arith.constant 0 : index
    %367 = vector.load %arg19[%c0_493, %c0_494] : memref<8x256xf32, #tpu.memory_space<vmem>>, vector<8x256xf32>
    %c1_495 = arith.constant 1 : index
    %c0_496 = arith.constant 0 : index
    %c0_497 = arith.constant 0 : index
    %368 = vector.load %arg12[%c1_495, %c0_496, %c0_497] : memref<4x256x32xbf16, #tpu.memory_space<vmem>>, vector<1x256x32xbf16>
    %369 = vector.shape_cast %368 : vector<1x256x32xbf16> to vector<256x32xbf16>
    %370 = arith.truncf %367 : vector<8x256xf32> to vector<8x256xbf16>
    %cst_498 = arith.constant dense<0.000000e+00> : vector<8x32xf32>
    %371 = tpu.matmul %370, %369, %cst_498 {dimension_numbers = #tpu.dot_dimension_numbers<[1], [0], [0], [1], [0, 0, 1, 1], [], []>} : vector<8x256xbf16>, vector<256x32xbf16>, vector<8x32xf32> -> vector<8x32xf32>
    %372 = arith.addf %366, %371 : vector<8x32xf32>
    %c0_499 = arith.constant 0 : index
    %c0_500 = arith.constant 0 : index
    %373 = vector.load %arg13[%c0_499, %c0_500] : memref<1x32xf32, #tpu.memory_space<vmem>>, vector<1x32xf32>
    %374 = vector.broadcast %373 : vector<1x32xf32> to vector<8x32xf32>
    %375 = arith.addf %372, %374 : vector<8x32xf32>
    %376 = vector.extract_strided_slice %375 {offsets = [0, 0], sizes = [1, 32], strides = [1, 1]} : vector<8x32xf32> to vector<1x32xf32>
    %c0_501 = arith.constant 0 : index
    %c0_502 = arith.constant 0 : index
    %c0_503 = arith.constant 0 : index
    %377 = vector.load %arg14[%c0_501, %c0_502, %c0_503] : memref<1x16x32xf32, #tpu.memory_space<vmem>>, vector<1x1x32xf32>
    %378 = vector.shape_cast %377 : vector<1x1x32xf32> to vector<1x32xf32>
    %379 = vector.shape_cast %376 : vector<1x32xf32> to vector<1x1x32xf32>
    tpu.vector_store %arg14[%c0_501, %c0_502, %c0_503], %379 {strides = array<i32>} : memref<1x16x32xf32, #tpu.memory_space<vmem>>, vector<1x1x32xf32>,
    %380 = vector.extract_strided_slice %375 {offsets = [1, 0], sizes = [1, 32], strides = [1, 1]} : vector<8x32xf32> to vector<1x32xf32>
    %c0_504 = arith.constant 0 : index
    %c2_505 = arith.constant 2 : index
    %c0_506 = arith.constant 0 : index
    %381 = vector.load %arg14[%c0_504, %c2_505, %c0_506] : memref<1x16x32xf32, #tpu.memory_space<vmem>>, vector<1x1x32xf32>
    %382 = vector.shape_cast %381 : vector<1x1x32xf32> to vector<1x32xf32>
    %383 = vector.shape_cast %380 : vector<1x32xf32> to vector<1x1x32xf32>
    tpu.vector_store %arg14[%c0_504, %c2_505, %c0_506], %383 {strides = array<i32>} : memref<1x16x32xf32, #tpu.memory_space<vmem>>, vector<1x1x32xf32>,
    %384 = vector.extract_strided_slice %375 {offsets = [2, 0], sizes = [1, 32], strides = [1, 1]} : vector<8x32xf32> to vector<1x32xf32>
    %c0_507 = arith.constant 0 : index
    %c4_508 = arith.constant 4 : index
    %c0_509 = arith.constant 0 : index
    %385 = vector.load %arg14[%c0_507, %c4_508, %c0_509] : memref<1x16x32xf32, #tpu.memory_space<vmem>>, vector<1x1x32xf32>
    %386 = vector.shape_cast %385 : vector<1x1x32xf32> to vector<1x32xf32>
    %387 = vector.shape_cast %384 : vector<1x32xf32> to vector<1x1x32xf32>
    tpu.vector_store %arg14[%c0_507, %c4_508, %c0_509], %387 {strides = array<i32>} : memref<1x16x32xf32, #tpu.memory_space<vmem>>, vector<1x1x32xf32>,
    %388 = vector.extract_strided_slice %375 {offsets = [3, 0], sizes = [1, 32], strides = [1, 1]} : vector<8x32xf32> to vector<1x32xf32>
    %c0_510 = arith.constant 0 : index
    %c6_511 = arith.constant 6 : index
    %c0_512 = arith.constant 0 : index
    %389 = vector.load %arg14[%c0_510, %c6_511, %c0_512] : memref<1x16x32xf32, #tpu.memory_space<vmem>>, vector<1x1x32xf32>
    %390 = vector.shape_cast %389 : vector<1x1x32xf32> to vector<1x32xf32>
    %391 = vector.shape_cast %388 : vector<1x32xf32> to vector<1x1x32xf32>
    tpu.vector_store %arg14[%c0_510, %c6_511, %c0_512], %391 {strides = array<i32>} : memref<1x16x32xf32, #tpu.memory_space<vmem>>, vector<1x1x32xf32>,
    %392 = vector.extract_strided_slice %375 {offsets = [4, 0], sizes = [1, 32], strides = [1, 1]} : vector<8x32xf32> to vector<1x32xf32>
    %c0_513 = arith.constant 0 : index
    %c8_514 = arith.constant 8 : index
    %c0_515 = arith.constant 0 : index
    %393 = vector.load %arg14[%c0_513, %c8_514, %c0_515] : memref<1x16x32xf32, #tpu.memory_space<vmem>>, vector<1x1x32xf32>
    %394 = vector.shape_cast %393 : vector<1x1x32xf32> to vector<1x32xf32>
    %395 = vector.shape_cast %392 : vector<1x32xf32> to vector<1x1x32xf32>
    tpu.vector_store %arg14[%c0_513, %c8_514, %c0_515], %395 {strides = array<i32>} : memref<1x16x32xf32, #tpu.memory_space<vmem>>, vector<1x1x32xf32>,
    %396 = vector.extract_strided_slice %375 {offsets = [5, 0], sizes = [1, 32], strides = [1, 1]} : vector<8x32xf32> to vector<1x32xf32>
    %c0_516 = arith.constant 0 : index
    %c10_517 = arith.constant 10 : index
    %c0_518 = arith.constant 0 : index
    %397 = vector.load %arg14[%c0_516, %c10_517, %c0_518] : memref<1x16x32xf32, #tpu.memory_space<vmem>>, vector<1x1x32xf32>
    %398 = vector.shape_cast %397 : vector<1x1x32xf32> to vector<1x32xf32>
    %399 = vector.shape_cast %396 : vector<1x32xf32> to vector<1x1x32xf32>
    tpu.vector_store %arg14[%c0_516, %c10_517, %c0_518], %399 {strides = array<i32>} : memref<1x16x32xf32, #tpu.memory_space<vmem>>, vector<1x1x32xf32>,
    %400 = vector.extract_strided_slice %375 {offsets = [6, 0], sizes = [1, 32], strides = [1, 1]} : vector<8x32xf32> to vector<1x32xf32>
    %c0_519 = arith.constant 0 : index
    %c12_520 = arith.constant 12 : index
    %c0_521 = arith.constant 0 : index
    %401 = vector.load %arg14[%c0_519, %c12_520, %c0_521] : memref<1x16x32xf32, #tpu.memory_space<vmem>>, vector<1x1x32xf32>
    %402 = vector.shape_cast %401 : vector<1x1x32xf32> to vector<1x32xf32>
    %403 = vector.shape_cast %400 : vector<1x32xf32> to vector<1x1x32xf32>
    tpu.vector_store %arg14[%c0_519, %c12_520, %c0_521], %403 {strides = array<i32>} : memref<1x16x32xf32, #tpu.memory_space<vmem>>, vector<1x1x32xf32>,
    %404 = vector.extract_strided_slice %375 {offsets = [7, 0], sizes = [1, 32], strides = [1, 1]} : vector<8x32xf32> to vector<1x32xf32>
    %c0_522 = arith.constant 0 : index
    %c14_523 = arith.constant 14 : index
    %c0_524 = arith.constant 0 : index
    %405 = vector.load %arg14[%c0_522, %c14_523, %c0_524] : memref<1x16x32xf32, #tpu.memory_space<vmem>>, vector<1x1x32xf32>
    %406 = vector.shape_cast %405 : vector<1x1x32xf32> to vector<1x32xf32>
    %407 = vector.shape_cast %404 : vector<1x32xf32> to vector<1x1x32xf32>
    tpu.vector_store %arg14[%c0_522, %c14_523, %c0_524], %407 {strides = array<i32>} : memref<1x16x32xf32, #tpu.memory_space<vmem>>, vector<1x1x32xf32>,
    %c0_525 = arith.constant 0 : index
    %c0_526 = arith.constant 0 : index
    %408 = vector.load %arg19[%c0_525, %c0_526] : memref<8x256xf32, #tpu.memory_space<vmem>>, vector<8x256xf32>
    %c2_527 = arith.constant 2 : index
    %c0_528 = arith.constant 0 : index
    %c0_529 = arith.constant 0 : index
    %409 = vector.load %arg12[%c2_527, %c0_528, %c0_529] : memref<4x256x32xbf16, #tpu.memory_space<vmem>>, vector<1x256x32xbf16>
    %410 = vector.shape_cast %409 : vector<1x256x32xbf16> to vector<256x32xbf16>
    %411 = arith.truncf %408 : vector<8x256xf32> to vector<8x256xbf16>
    %cst_530 = arith.constant dense<0.000000e+00> : vector<8x32xf32>
    %412 = tpu.matmul %411, %410, %cst_530 {dimension_numbers = #tpu.dot_dimension_numbers<[1], [0], [0], [1], [0, 0, 1, 1], [], []>} : vector<8x256xbf16>, vector<256x32xbf16>, vector<8x32xf32> -> vector<8x32xf32>
    %c1_531 = arith.constant 1 : index
    %c0_532 = arith.constant 0 : index
    %413 = vector.load %arg19[%c1_531, %c0_532] : memref<8x256xf32, #tpu.memory_space<vmem>>, vector<1x256xf32>
    %c0_533 = arith.constant 0 : index
    %c0_534 = arith.constant 0 : index
    %414 = vector.load %arg25[%c0_533, %c0_534] : memref<8x256xf32, #tpu.memory_space<vmem>>, vector<1x256xf32>
    tpu.vector_store %arg25[%c0_533, %c0_534], %413 {strides = array<i32>} : memref<8x256xf32, #tpu.memory_space<vmem>>, vector<1x256xf32>,
    %c2_535 = arith.constant 2 : index
    %c0_536 = arith.constant 0 : index
    %415 = vector.load %arg19[%c2_535, %c0_536] : memref<8x256xf32, #tpu.memory_space<vmem>>, vector<1x256xf32>
    %c1_537 = arith.constant 1 : index
    %c0_538 = arith.constant 0 : index
    %416 = vector.load %arg25[%c1_537, %c0_538] : memref<8x256xf32, #tpu.memory_space<vmem>>, vector<1x256xf32>
    tpu.vector_store %arg25[%c1_537, %c0_538], %415 {strides = array<i32>} : memref<8x256xf32, #tpu.memory_space<vmem>>, vector<1x256xf32>,
    %c3_539 = arith.constant 3 : index
    %c0_540 = arith.constant 0 : index
    %417 = vector.load %arg19[%c3_539, %c0_540] : memref<8x256xf32, #tpu.memory_space<vmem>>, vector<1x256xf32>
    %c2_541 = arith.constant 2 : index
    %c0_542 = arith.constant 0 : index
    %418 = vector.load %arg25[%c2_541, %c0_542] : memref<8x256xf32, #tpu.memory_space<vmem>>, vector<1x256xf32>
    tpu.vector_store %arg25[%c2_541, %c0_542], %417 {strides = array<i32>} : memref<8x256xf32, #tpu.memory_space<vmem>>, vector<1x256xf32>,
    %c4_543 = arith.constant 4 : index
    %c0_544 = arith.constant 0 : index
    %419 = vector.load %arg19[%c4_543, %c0_544] : memref<8x256xf32, #tpu.memory_space<vmem>>, vector<1x256xf32>
    %c3_545 = arith.constant 3 : index
    %c0_546 = arith.constant 0 : index
    %420 = vector.load %arg25[%c3_545, %c0_546] : memref<8x256xf32, #tpu.memory_space<vmem>>, vector<1x256xf32>
    tpu.vector_store %arg25[%c3_545, %c0_546], %419 {strides = array<i32>} : memref<8x256xf32, #tpu.memory_space<vmem>>, vector<1x256xf32>,
    %c5_547 = arith.constant 5 : index
    %c0_548 = arith.constant 0 : index
    %421 = vector.load %arg19[%c5_547, %c0_548] : memref<8x256xf32, #tpu.memory_space<vmem>>, vector<1x256xf32>
    %c4_549 = arith.constant 4 : index
    %c0_550 = arith.constant 0 : index
    %422 = vector.load %arg25[%c4_549, %c0_550] : memref<8x256xf32, #tpu.memory_space<vmem>>, vector<1x256xf32>
    tpu.vector_store %arg25[%c4_549, %c0_550], %421 {strides = array<i32>} : memref<8x256xf32, #tpu.memory_space<vmem>>, vector<1x256xf32>,
    %c6_551 = arith.constant 6 : index
    %c0_552 = arith.constant 0 : index
    %423 = vector.load %arg19[%c6_551, %c0_552] : memref<8x256xf32, #tpu.memory_space<vmem>>, vector<1x256xf32>
    %c5_553 = arith.constant 5 : index
    %c0_554 = arith.constant 0 : index
    %424 = vector.load %arg25[%c5_553, %c0_554] : memref<8x256xf32, #tpu.memory_space<vmem>>, vector<1x256xf32>
    tpu.vector_store %arg25[%c5_553, %c0_554], %423 {strides = array<i32>} : memref<8x256xf32, #tpu.memory_space<vmem>>, vector<1x256xf32>,
    %c7_555 = arith.constant 7 : index
    %c0_556 = arith.constant 0 : index
    %425 = vector.load %arg19[%c7_555, %c0_556] : memref<8x256xf32, #tpu.memory_space<vmem>>, vector<1x256xf32>
    %c6_557 = arith.constant 6 : index
    %c0_558 = arith.constant 0 : index
    %426 = vector.load %arg25[%c6_557, %c0_558] : memref<8x256xf32, #tpu.memory_space<vmem>>, vector<1x256xf32>
    tpu.vector_store %arg25[%c6_557, %c0_558], %425 {strides = array<i32>} : memref<8x256xf32, #tpu.memory_space<vmem>>, vector<1x256xf32>,
    %cst_559 = arith.constant 0.000000e+00 : f32
    %427 = vector.broadcast %cst_559 : f32 to vector<1x256xf32>
    %c7_560 = arith.constant 7 : index
    %c0_561 = arith.constant 0 : index
    %428 = vector.load %arg25[%c7_560, %c0_561] : memref<8x256xf32, #tpu.memory_space<vmem>>, vector<1x256xf32>
    tpu.vector_store %arg25[%c7_560, %c0_561], %427 {strides = array<i32>} : memref<8x256xf32, #tpu.memory_space<vmem>>, vector<1x256xf32>,
    %c0_562 = arith.constant 0 : index
    %c0_563 = arith.constant 0 : index
    %429 = vector.load %arg25[%c0_562, %c0_563] : memref<8x256xf32, #tpu.memory_space<vmem>>, vector<8x256xf32>
    %c3_564 = arith.constant 3 : index
    %c0_565 = arith.constant 0 : index
    %c0_566 = arith.constant 0 : index
    %430 = vector.load %arg12[%c3_564, %c0_565, %c0_566] : memref<4x256x32xbf16, #tpu.memory_space<vmem>>, vector<1x256x32xbf16>
    %431 = vector.shape_cast %430 : vector<1x256x32xbf16> to vector<256x32xbf16>
    %432 = arith.truncf %429 : vector<8x256xf32> to vector<8x256xbf16>
    %cst_567 = arith.constant dense<0.000000e+00> : vector<8x32xf32>
    %433 = tpu.matmul %432, %431, %cst_567 {dimension_numbers = #tpu.dot_dimension_numbers<[1], [0], [0], [1], [0, 0, 1, 1], [], []>} : vector<8x256xbf16>, vector<256x32xbf16>, vector<8x32xf32> -> vector<8x32xf32>
    %434 = arith.addf %412, %433 : vector<8x32xf32>
    %c0_568 = arith.constant 0 : index
    %c0_569 = arith.constant 0 : index
    %435 = vector.load %arg13[%c0_568, %c0_569] : memref<1x32xf32, #tpu.memory_space<vmem>>, vector<1x32xf32>
    %436 = vector.broadcast %435 : vector<1x32xf32> to vector<8x32xf32>
    %437 = arith.addf %434, %436 : vector<8x32xf32>
    %438 = vector.extract_strided_slice %437 {offsets = [0, 0], sizes = [1, 32], strides = [1, 1]} : vector<8x32xf32> to vector<1x32xf32>
    %c0_570 = arith.constant 0 : index
    %c1_571 = arith.constant 1 : index
    %c0_572 = arith.constant 0 : index
    %439 = vector.load %arg14[%c0_570, %c1_571, %c0_572] : memref<1x16x32xf32, #tpu.memory_space<vmem>>, vector<1x1x32xf32>
    %440 = vector.shape_cast %439 : vector<1x1x32xf32> to vector<1x32xf32>
    %441 = vector.shape_cast %438 : vector<1x32xf32> to vector<1x1x32xf32>
    tpu.vector_store %arg14[%c0_570, %c1_571, %c0_572], %441 {strides = array<i32>} : memref<1x16x32xf32, #tpu.memory_space<vmem>>, vector<1x1x32xf32>,
    %442 = vector.extract_strided_slice %437 {offsets = [1, 0], sizes = [1, 32], strides = [1, 1]} : vector<8x32xf32> to vector<1x32xf32>
    %c0_573 = arith.constant 0 : index
    %c3_574 = arith.constant 3 : index
    %c0_575 = arith.constant 0 : index
    %443 = vector.load %arg14[%c0_573, %c3_574, %c0_575] : memref<1x16x32xf32, #tpu.memory_space<vmem>>, vector<1x1x32xf32>
    %444 = vector.shape_cast %443 : vector<1x1x32xf32> to vector<1x32xf32>
    %445 = vector.shape_cast %442 : vector<1x32xf32> to vector<1x1x32xf32>
    tpu.vector_store %arg14[%c0_573, %c3_574, %c0_575], %445 {strides = array<i32>} : memref<1x16x32xf32, #tpu.memory_space<vmem>>, vector<1x1x32xf32>,
    %446 = vector.extract_strided_slice %437 {offsets = [2, 0], sizes = [1, 32], strides = [1, 1]} : vector<8x32xf32> to vector<1x32xf32>
    %c0_576 = arith.constant 0 : index
    %c5_577 = arith.constant 5 : index
    %c0_578 = arith.constant 0 : index
    %447 = vector.load %arg14[%c0_576, %c5_577, %c0_578] : memref<1x16x32xf32, #tpu.memory_space<vmem>>, vector<1x1x32xf32>
    %448 = vector.shape_cast %447 : vector<1x1x32xf32> to vector<1x32xf32>
    %449 = vector.shape_cast %446 : vector<1x32xf32> to vector<1x1x32xf32>
    tpu.vector_store %arg14[%c0_576, %c5_577, %c0_578], %449 {strides = array<i32>} : memref<1x16x32xf32, #tpu.memory_space<vmem>>, vector<1x1x32xf32>,
    %450 = vector.extract_strided_slice %437 {offsets = [3, 0], sizes = [1, 32], strides = [1, 1]} : vector<8x32xf32> to vector<1x32xf32>
    %c0_579 = arith.constant 0 : index
    %c7_580 = arith.constant 7 : index
    %c0_581 = arith.constant 0 : index
    %451 = vector.load %arg14[%c0_579, %c7_580, %c0_581] : memref<1x16x32xf32, #tpu.memory_space<vmem>>, vector<1x1x32xf32>
    %452 = vector.shape_cast %451 : vector<1x1x32xf32> to vector<1x32xf32>
    %453 = vector.shape_cast %450 : vector<1x32xf32> to vector<1x1x32xf32>
    tpu.vector_store %arg14[%c0_579, %c7_580, %c0_581], %453 {strides = array<i32>} : memref<1x16x32xf32, #tpu.memory_space<vmem>>, vector<1x1x32xf32>,
    %454 = vector.extract_strided_slice %437 {offsets = [4, 0], sizes = [1, 32], strides = [1, 1]} : vector<8x32xf32> to vector<1x32xf32>
    %c0_582 = arith.constant 0 : index
    %c9_583 = arith.constant 9 : index
    %c0_584 = arith.constant 0 : index
    %455 = vector.load %arg14[%c0_582, %c9_583, %c0_584] : memref<1x16x32xf32, #tpu.memory_space<vmem>>, vector<1x1x32xf32>
    %456 = vector.shape_cast %455 : vector<1x1x32xf32> to vector<1x32xf32>
    %457 = vector.shape_cast %454 : vector<1x32xf32> to vector<1x1x32xf32>
    tpu.vector_store %arg14[%c0_582, %c9_583, %c0_584], %457 {strides = array<i32>} : memref<1x16x32xf32, #tpu.memory_space<vmem>>, vector<1x1x32xf32>,
    %458 = vector.extract_strided_slice %437 {offsets = [5, 0], sizes = [1, 32], strides = [1, 1]} : vector<8x32xf32> to vector<1x32xf32>
    %c0_585 = arith.constant 0 : index
    %c11_586 = arith.constant 11 : index
    %c0_587 = arith.constant 0 : index
    %459 = vector.load %arg14[%c0_585, %c11_586, %c0_587] : memref<1x16x32xf32, #tpu.memory_space<vmem>>, vector<1x1x32xf32>
    %460 = vector.shape_cast %459 : vector<1x1x32xf32> to vector<1x32xf32>
    %461 = vector.shape_cast %458 : vector<1x32xf32> to vector<1x1x32xf32>
    tpu.vector_store %arg14[%c0_585, %c11_586, %c0_587], %461 {strides = array<i32>} : memref<1x16x32xf32, #tpu.memory_space<vmem>>, vector<1x1x32xf32>,
    %462 = vector.extract_strided_slice %437 {offsets = [6, 0], sizes = [1, 32], strides = [1, 1]} : vector<8x32xf32> to vector<1x32xf32>
    %c0_588 = arith.constant 0 : index
    %c13_589 = arith.constant 13 : index
    %c0_590 = arith.constant 0 : index
    %463 = vector.load %arg14[%c0_588, %c13_589, %c0_590] : memref<1x16x32xf32, #tpu.memory_space<vmem>>, vector<1x1x32xf32>
    %464 = vector.shape_cast %463 : vector<1x1x32xf32> to vector<1x32xf32>
    %465 = vector.shape_cast %462 : vector<1x32xf32> to vector<1x1x32xf32>
    tpu.vector_store %arg14[%c0_588, %c13_589, %c0_590], %465 {strides = array<i32>} : memref<1x16x32xf32, #tpu.memory_space<vmem>>, vector<1x1x32xf32>,
    %466 = vector.extract_strided_slice %437 {offsets = [7, 0], sizes = [1, 32], strides = [1, 1]} : vector<8x32xf32> to vector<1x32xf32>
    %c0_591 = arith.constant 0 : index
    %c15_592 = arith.constant 15 : index
    %c0_593 = arith.constant 0 : index
    %467 = vector.load %arg14[%c0_591, %c15_592, %c0_593] : memref<1x16x32xf32, #tpu.memory_space<vmem>>, vector<1x1x32xf32>
    %468 = vector.shape_cast %467 : vector<1x1x32xf32> to vector<1x32xf32>
    %469 = vector.shape_cast %466 : vector<1x32xf32> to vector<1x1x32xf32>
    tpu.vector_store %arg14[%c0_591, %c15_592, %c0_593], %469 {strides = array<i32>} : memref<1x16x32xf32, #tpu.memory_space<vmem>>, vector<1x1x32xf32>,
    return
  }
  func.func @transform_0(%arg0: i32) -> (i32, i32, i32) {
    %c0_i32 = arith.constant 0 : i32
    %c0_i32_0 = arith.constant 0 : i32
    %c0_i32_1 = arith.constant 0 : i32
    return %arg0, %c0_i32, %c0_i32_0 : i32, i32, i32
  }
  func.func @transform_1(%arg0: i32) -> (i32, i32, i32) {
    %c0_i32 = arith.constant 0 : i32
    %c0_i32_0 = arith.constant 0 : i32
    %c0_i32_1 = arith.constant 0 : i32
    %c0_i32_2 = arith.constant 0 : i32
    return %c0_i32, %c0_i32_0, %c0_i32_1 : i32, i32, i32
  }
  func.func @transform_2(%arg0: i32) -> (i32, i32) {
    %c0_i32 = arith.constant 0 : i32
    %c0_i32_0 = arith.constant 0 : i32
    %c0_i32_1 = arith.constant 0 : i32
    return %c0_i32, %c0_i32_0 : i32, i32
  }
  func.func @transform_3(%arg0: i32) -> (i32, i32, i32) {
    %c0_i32 = arith.constant 0 : i32
    %c0_i32_0 = arith.constant 0 : i32
    %c0_i32_1 = arith.constant 0 : i32
    %c0_i32_2 = arith.constant 0 : i32
    return %c0_i32, %c0_i32_0, %c0_i32_1 : i32, i32, i32
  }
  func.func @transform_4(%arg0: i32) -> (i32, i32) {
    %c0_i32 = arith.constant 0 : i32
    %c0_i32_0 = arith.constant 0 : i32
    %c0_i32_1 = arith.constant 0 : i32
    return %c0_i32, %c0_i32_0 : i32, i32
  }
  func.func @transform_5(%arg0: i32) -> (i32, i32, i32) {
    %c0_i32 = arith.constant 0 : i32
    %c0_i32_0 = arith.constant 0 : i32
    %c0_i32_1 = arith.constant 0 : i32
    %c0_i32_2 = arith.constant 0 : i32
    return %c0_i32, %c0_i32_0, %c0_i32_1 : i32, i32, i32
  }
  func.func @transform_6(%arg0: i32) -> (i32, i32) {
    %c0_i32 = arith.constant 0 : i32
    %c0_i32_0 = arith.constant 0 : i32
    %c0_i32_1 = arith.constant 0 : i32
    return %c0_i32, %c0_i32_0 : i32, i32
  }
  func.func @transform_7(%arg0: i32) -> (i32, i32, i32) {
    %c0_i32 = arith.constant 0 : i32
    %c0_i32_0 = arith.constant 0 : i32
    %c0_i32_1 = arith.constant 0 : i32
    %c0_i32_2 = arith.constant 0 : i32
    return %c0_i32, %c0_i32_0, %c0_i32_1 : i32, i32, i32
  }
  func.func @transform_8(%arg0: i32) -> (i32, i32) {
    %c0_i32 = arith.constant 0 : i32
    %c0_i32_0 = arith.constant 0 : i32
    %c0_i32_1 = arith.constant 0 : i32
    return %c0_i32, %c0_i32_0 : i32, i32
  }
  func.func @transform_9(%arg0: i32) -> (i32, i32, i32) {
    %c0_i32 = arith.constant 0 : i32
    %c0_i32_0 = arith.constant 0 : i32
    %c0_i32_1 = arith.constant 0 : i32
    %c0_i32_2 = arith.constant 0 : i32
    return %c0_i32, %c0_i32_0, %c0_i32_1 : i32, i32, i32
  }
  func.func @transform_10(%arg0: i32) -> (i32, i32) {
    %c0_i32 = arith.constant 0 : i32
    %c0_i32_0 = arith.constant 0 : i32
    %c0_i32_1 = arith.constant 0 : i32
    return %c0_i32, %c0_i32_0 : i32, i32
  }
  func.func @transform_11(%arg0: i32) -> (i32, i32, i32) {
    %c0_i32 = arith.constant 0 : i32
    %c0_i32_0 = arith.constant 0 : i32
    %c0_i32_1 = arith.constant 0 : i32
    %c0_i32_2 = arith.constant 0 : i32
    return %c0_i32, %c0_i32_0, %c0_i32_1 : i32, i32, i32
  }
  func.func @transform_12(%arg0: i32) -> (i32, i32) {
    %c0_i32 = arith.constant 0 : i32
    %c0_i32_0 = arith.constant 0 : i32
    %c0_i32_1 = arith.constant 0 : i32
    return %c0_i32, %c0_i32_0 : i32, i32
  }
  func.func @transform_13(%arg0: i32) -> (i32, i32, i32) {
    %c0_i32 = arith.constant 0 : i32
    %c0_i32_0 = arith.constant 0 : i32
    %c0_i32_1 = arith.constant 0 : i32
    return %arg0, %c0_i32, %c0_i32_0 : i32, i32, i32
  }
}

</mosaic_0001>

<bundles_post_ra>
// kernel: fine_net_forward.1
= control target key start
LH: loop header
LB: loop body
LE: loop exit
PB: predicated region body
PF: predicated region fallthrough
CT: control target
= control target key end

     0   :  { %s8674_s0 = inlined_call_operand.vmem [shape: f32[2,16,32], index: 0, kind: input, shape index: {}]   ;;  %s8675_s1 = inlined_call_operand.hbm [shape: bf16[5,32,256], index: 1, kind: input, shape index: {}]   ;;  %s8676_s2 = inlined_call_operand.vmem [shape: f32[1,256], index: 2, kind: input, shape index: {}]   ;;  %s8677_s3 = inlined_call_operand.vmem [shape: bf16[3,256,256], index: 3, kind: input, shape index: {}]   ;;  %s8678_s4 = inlined_call_operand.hbm [shape: f32[1,256], index: 4, kind: input, shape index: {}]   ;;  %s8679_s5 = inlined_call_operand.hbm [shape: bf16[3,256,256], index: 5, kind: input, shape index: {}]   ;;  %s8680_s6 = inlined_call_operand.hbm [shape: f32[1,256], index: 6, kind: input, shape index: {}]   ;;  %s8681_s7 = inlined_call_operand.hbm [shape: bf16[4,256,256], index: 7, kind: input, shape index: {}]   ;;  %s8682_s8 = inlined_call_operand.hbm [shape: f32[1,256], index: 8, kind: input, shape index: {}]   ;;  %s8683_s9 = inlined_call_operand.hbm [shape: bf16[4,256,256], index: 9, kind: input, shape index: {}]   ;;  %s8684_s10 = inlined_call_operand.vmem [shape: f32[1,256], index: 10, kind: input, shape index: {}]   ;;  %s8685_s11 = inlined_call_operand.vmem [shape: bf16[4,256,32], index: 11, kind: input, shape index: {}]   ;;  %s8686_s12 = inlined_call_operand.vmem [shape: f32[1,32], index: 12, kind: input, shape index: {}]   ;;  %s8687_s13 = inlined_call_operand.vmem [shape: f32[2,16,32], index: 13, kind: output, shape index: {}]  }
   0x1   :  { %8691 = sst [smem:[#allocation29_spill]] %s8678_s4 }
   0x2   :  { %8692 = sst [smem:[#allocation30_spill]] %s8680_s6 }
   0x3   :  { %8693 = sst [smem:[#allocation31_spill]] %s8682_s8 }
   0x4   :  { %18 = vsyncpa [#allocation14], 0 }
   0x5   :  { %19 = vsyncpa [#allocation16], 0 }
   0x6   :  { %20 = vsyncpa [#allocation19], 0 }
   0x7   :  { %21 = vsyncpa [#allocation22], 0  ;;  %s7634_s25 = smov 0  }
   0x8 LB: > { %8694 = sst [smem:[#allocation28_spill]] %s7550_s25  ;;  %s7552_s26 = smov [#allocation15]   ;;  %s7550_s25 = sphi %s7634_s25, %s27_s25  }
   0x9   : > { %s368_s27 = sshll.u32 %s7552_s26, 4  ;;  %s7640_s28 = sadd.s32 4294967295, %s7550_s25   ;;  %s7645_s27 = int_to_ptr.vmem [resolvable:$true] %s368_s27 }
   0xa   : > { %p5656_p0 = scmp.ge.s32.totalorder %s7550_s25, 1  ;;  %p336_p1 = scmp.lt.s32.totalorder %s7550_s25, 3 }
   0xb   : > { %p8689_p2 = scmp.eq.s32.totalorder %s7640_s28, 0  ;;  %s7553_s30 = smov [#allocation18]  }
   0xc   : > { %p7647_p3 = pnand %p5656_p0, %p336_p1  ;;  %s392_s14 = sshll.u32 %s7553_s30, 4  ;;  %s7653_s14 = int_to_ptr.vmem [resolvable:$true] %s392_s14 }
   0xd   : > { %s7554_s15 = smov [#allocation21]   ;;  %s7555_s18 = smov [#allocation13]  }
   0xe   : > { %s8695_s29 = scalar_select %p7647_p3, 1, 0 }
   0xf   : > { %p6504_p4 = pneg %p7647_p3  ;;  %s416_s16 = sshll.u32 %s7554_s15, 4  ;;  %s7661_s16 = int_to_ptr.vmem [resolvable:$true] %s416_s16 }
  0x10   : > { %s348_s19 = sshll.u32 %s7555_s18, 4  ;;  %s8697_s4 = sld [smem:[#allocation29_spill]]  ;;  %s7663_s19 = int_to_ptr.vmem [resolvable:$true] %s348_s19 }
  0x11   : > { %p7657_p5 = pnand %p8689_p2, %p6504_p4 }
  0x13   : > { %p7673_p7 = pneg %p7657_p5 }
  0x16   : > { %s7332_s22 = scalar_lea.hbm %s8697_s4, 32 }
  0x17   : > { %p7333_p6 = scmp.ne.s32.totalorder %s8697_s4, %s7332_s22  ;;  %p7339_p10 = scmp.lt.u32.totalorder %s7332_s22, %s8697_s4 }
  0x19   : > { %p7335_p8 = pnand %p7673_p7, %p7333_p6 }
  0x1b   : > { %p7336_p9 = pneg %p7335_p8 }
  0x1d   : > { %p7341_p11 = pnand %p7339_p10, %p7336_p9 }
  0x1f   : > { %7344 = shalt.err (!%p7341_p11)
}
  0x20   : > { %s7345_s18 = scalar_lea.vmem %s7645_s27, 32  ;;  %p7353_p1 = scmp.lt.s32.totalorder %s7645_s27, %s7645_s27 }
  0x21   : > { %p7346_p12 = scmp.ne.s32.totalorder %s7645_s27, %s7345_s18  ;;  %p7354_p4 = scmp.lt.s32.totalorder %s7345_s18, %s7345_s18 }
  0x23   : > { %p7348_p13 = pnand %p7346_p12, %p7673_p7  ;;  %p7355_p6 = por %p7354_p4, %p7353_p1 }
  0x25   : > { %p7349_p0 = pneg %p7348_p13 }
  0x27   : > { %p7356_p8 = pnand %p7355_p6, %p7349_p0 }
  0x29   : > { %7359 = shalt.err (!%p7356_p8)
}
  0x2a   : > { %6510 = dma.hbm_to_vmem [thread:$0]  (!%p7657_p5), %s8697_s4, 32, %s7645_s27, [#allocation16]  }
  0x2b   : > { %s8699_s6 = sld [smem:[#allocation30_spill]] }
  0x31   : > { %s7360_s24 = scalar_lea.hbm %s8699_s6, 32 }
  0x32   : > { %p7361_p9 = scmp.ne.s32.totalorder %s8699_s6, %s7360_s24  ;;  %p7367_p12 = scmp.lt.u32.totalorder %s7360_s24, %s8699_s6 }
  0x34   : > { %p7363_p10 = pnand %p7361_p9, %p7673_p7 }
  0x36   : > { %p7364_p11 = pneg %p7363_p10 }
  0x38   : > { %p7369_p13 = pnand %p7367_p12, %p7364_p11 }
  0x3a   : > { %7372 = shalt.err (!%p7369_p13)
}
  0x3b   : > { %s7373_s27 = scalar_lea.vmem %s7653_s14, 32  ;;  %p7381_p6 = scmp.lt.s32.totalorder %s7653_s14, %s7653_s14 }
  0x3c   : > { %p7374_p0 = scmp.ne.s32.totalorder %s7653_s14, %s7373_s27  ;;  %p7382_p8 = scmp.lt.s32.totalorder %s7373_s27, %s7373_s27 }
  0x3e   : > { %p7376_p1 = pnand %p7374_p0, %p7673_p7  ;;  %p7383_p9 = por %p7382_p8, %p7381_p6 }
  0x40   : > { %p7377_p4 = pneg %p7376_p1 }
  0x42   : > { %p7384_p10 = pnand %p7383_p9, %p7377_p4 }
  0x44   : > { %7387 = shalt.err (!%p7384_p10)
}
  0x45   : > { %6516 = dma.hbm_to_vmem [thread:$0]  (!%p7657_p5), %s8699_s6, 32, %s7653_s14, [#allocation19]  }
  0x46   : > { %s8700_s8 = sld [smem:[#allocation31_spill]] }
  0x4c   : > { %s7388_s23 = scalar_lea.hbm %s8700_s8, 32 }
  0x4d   : > { %p7389_p11 = scmp.ne.s32.totalorder %s8700_s8, %s7388_s23  ;;  %p7395_p0 = scmp.lt.u32.totalorder %s7388_s23, %s8700_s8 }
  0x4f   : > { %p7391_p12 = pnand %p7389_p11, %p7673_p7 }
  0x51   : > { %p7392_p13 = pneg %p7391_p12 }
  0x53   : > { %p7397_p1 = pnand %p7395_p0, %p7392_p13 }
  0x55   : > { %7400 = shalt.err (!%p7397_p1)
}
  0x56   : > { %s7401_s14 = scalar_lea.vmem %s7661_s16, 32  ;;  %p7409_p9 = scmp.lt.s32.totalorder %s7661_s16, %s7661_s16 }
  0x57   : > { %p7402_p4 = scmp.ne.s32.totalorder %s7661_s16, %s7401_s14  ;;  %p7410_p10 = scmp.lt.s32.totalorder %s7401_s14, %s7401_s14 }
  0x59   : > { %p7404_p6 = pnand %p7402_p4, %p7673_p7  ;;  %p7411_p11 = por %p7410_p10, %p7409_p9 }
  0x5b   : > { %p7405_p8 = pneg %p7404_p6 }
  0x5d   : > { %p7412_p12 = pnand %p7411_p11, %p7405_p8 }
  0x5f   : > { %7415 = shalt.err (!%p7412_p12)
}
  0x60   : > { %6522 = dma.hbm_to_vmem [thread:$0]  (!%p7657_p5), %s8700_s8, 32, %s7661_s16, [#allocation22]  }
  0x61   : > { %s7416_s22 = scalar_lea.hbm %s8675_s1, 2560 }
  0x62   : > { %p7417_p13 = scmp.ne.s32.totalorder %s8675_s1, %s7416_s22  ;;  %p7423_p4 = scmp.lt.u32.totalorder %s7416_s22, %s8675_s1 }
  0x64   : > { %p7419_p0 = pnand %p7417_p13, %p7673_p7 }
  0x66   : > { %p7420_p1 = pneg %p7419_p0 }
  0x68   : > { %p7425_p6 = pnand %p7423_p4, %p7420_p1 }
  0x6a   : > { %7428 = shalt.err (!%p7425_p6)
}
  0x6b   : > { %s7429_s16 = scalar_lea.vmem %s7663_s19, 2560  ;;  %p7437_p11 = scmp.lt.s32.totalorder %s7663_s19, %s7663_s19 }
  0x6c   : > { %p7430_p8 = scmp.ne.s32.totalorder %s7663_s19, %s7429_s16  ;;  %p7438_p12 = scmp.lt.s32.totalorder %s7429_s16, %s7429_s16 }
  0x6e   : > { %p7432_p9 = pnand %p7430_p8, %p7673_p7  ;;  %p7439_p13 = por %p7438_p12, %p7437_p11 }
  0x70   : > { %p7433_p10 = pneg %p7432_p9 }
  0x72   : > { %p7440_p0 = pnand %p7439_p13, %p7433_p10 }
  0x74   : > { %7443 = shalt.err (!%p7440_p0)
}
  0x75   : > { %s7556_s18 = smov 128   ;;  %s7557_s14 = smov 8  }
  0x76   : > { %6507 = dma.hbm_to_vmem [thread:$0]  (!%p7657_p5), %s8675_s1, 2560, %s7663_s19, [#allocation14], %s7556_s18, %s7556_s18, %s7557_s14  }
  0x77   : > { %s7558_s20 = smov [#allocation17]   ;;  %s7559_s22 = smov [#allocation20]  }
  0x78   : > { %s378_s21 = sshll.u32 %s7558_s20, 4  ;;  %s402_s23 = sshll.u32 %s7559_s22, 4  ;;  %s379_s21 = int_to_ptr.vmem [resolvable:$true] %s378_s21  ;;  %s403_s23 = int_to_ptr.vmem [resolvable:$true] %s402_s23 }
  0x79   : > { %s7444_s15 = scalar_lea.hbm %s8679_s5, 12288 }
  0x7a   : > { %p7445_p1 = scmp.ne.s32.totalorder %s8679_s5, %s7444_s15  ;;  %p7451_p8 = scmp.lt.u32.totalorder %s7444_s15, %s8679_s5 }
  0x7c   : > { %p7447_p4 = pnand %p7445_p1, %p7673_p7 }
  0x7e   : > { %p7448_p6 = pneg %p7447_p4 }
  0x80   : > { %p7453_p9 = pnand %p7451_p8, %p7448_p6 }
  0x82   : > { %7456 = shalt.err (!%p7453_p9)
}
  0x83   : > { %s7457_s19 = scalar_lea.vmem %s379_s21, 12288  ;;  %p7465_p13 = scmp.lt.s32.totalorder %s379_s21, %s379_s21 }
  0x84   : > { %p7458_p10 = scmp.ne.s32.totalorder %s379_s21, %s7457_s19  ;;  %p7466_p0 = scmp.lt.s32.totalorder %s7457_s19, %s7457_s19 }
  0x86   : > { %p7460_p11 = pnand %p7458_p10, %p7673_p7  ;;  %p7467_p2 = por %p7466_p0, %p7465_p13 }
  0x88   : > { %p7461_p12 = pneg %p7460_p11 }
  0x8a   : > { %p7468_p3 = pnand %p7467_p2, %p7461_p12 }
  0x8c   : > { %7471 = shalt.err (!%p7468_p3)
}
  0x8d   : > { %6513 = dma.hbm_to_vmem [thread:$0]  (!%p7657_p5), %s8679_s5, 12288, %s379_s21, [#allocation16], %s7556_s18, %s7556_s18, %s7557_s14  }
  0x8e   : > { %s7472_s25 = scalar_lea.hbm %s8681_s7, 16384 }
  0x8f   : > { %p7473_p2 = scmp.ne.s32.totalorder %s8681_s7, %s7472_s25  ;;  %p7479_p4 = scmp.lt.u32.totalorder %s7472_s25, %s8681_s7 }
  0x91   : > { %p7475_p3 = pnand %p7473_p2, %p7673_p7 }
  0x93   : > { %p7476_p1 = pneg %p7475_p3 }
  0x95   : > { %p7481_p6 = pnand %p7479_p4, %p7476_p1 }
  0x97   : > { %7484 = shalt.err (!%p7481_p6)
}
  0x98   : > { %s7485_s15 = scalar_lea.vmem %s403_s23, 16384  ;;  %p7493_p11 = scmp.lt.s32.totalorder %s403_s23, %s403_s23 }
  0x99   : > { %p7486_p8 = scmp.ne.s32.totalorder %s403_s23, %s7485_s15  ;;  %p7494_p12 = scmp.lt.s32.totalorder %s7485_s15, %s7485_s15 }
  0x9b   : > { %p7488_p9 = pnand %p7486_p8, %p7673_p7  ;;  %p7495_p13 = por %p7494_p12, %p7493_p11 }
  0x9d   : > { %p7489_p10 = pneg %p7488_p9 }
  0x9f   : > { %p7496_p0 = pnand %p7495_p13, %p7489_p10 }
  0xa1   : > { %7499 = shalt.err (!%p7496_p0)
}
  0xa2   : > { %6519 = dma.hbm_to_vmem [thread:$0]  (!%p7657_p5), %s8681_s7, 16384, %s403_s23, [#allocation19], %s7556_s18, %s7556_s18, %s7557_s14  }
  0xa3   : > { %s7560_s19 = smov [#allocation23]   ;;  %s7500_s27 = scalar_lea.hbm %s8683_s9, 16384 }
  0xa4   : > { %s426_s4 = sshll.u32 %s7560_s19, 4  ;;  %p7501_p2 = scmp.ne.s32.totalorder %s8683_s9, %s7500_s27  ;;  %s427_s4 = int_to_ptr.vmem [resolvable:$true] %s426_s4 }
  0xa5   : > { %p7507_p4 = scmp.lt.u32.totalorder %s7500_s27, %s8683_s9 }
  0xa6   : > { %p7503_p3 = pnand %p7501_p2, %p7673_p7 }
  0xa8   : > { %p7504_p1 = pneg %p7503_p3 }
  0xaa   : > { %p7509_p6 = pnand %p7507_p4, %p7504_p1 }
  0xac   : > { %7512 = shalt.err (!%p7509_p6)
}
  0xad   : > { %s7513_s23 = scalar_lea.vmem %s427_s4, 16384  ;;  %p7521_p11 = scmp.lt.s32.totalorder %s427_s4, %s427_s4 }
  0xae   : > { %p7514_p8 = scmp.ne.s32.totalorder %s427_s4, %s7513_s23  ;;  %p7522_p12 = scmp.lt.s32.totalorder %s7513_s23, %s7513_s23 }
  0xb0   : > { %p7516_p9 = pnand %p7514_p8, %p7673_p7  ;;  %p7523_p13 = por %p7522_p12, %p7521_p11 }
  0xb2   : > { %p7517_p10 = pneg %p7516_p9 }
  0xb4   : > { %p7524_p0 = pnand %p7523_p13, %p7517_p10 }
  0xb6   : > { %7527 = shalt.err (!%p7524_p0)
}
  0xb7   : > { %6525 = dma.hbm_to_vmem [thread:$0]  (!%p7657_p5), %s8683_s9, 16384, %s427_s4, [#allocation22], %s7556_s18, %s7556_s18, %s7557_s14  }
  0xb8   : > { %p8701_p2 = scmp.ne.s32.totalorder %s8695_s29, 0 }
  0xb9   : > { %p8702_p7 = scmp.eq.s32.totalorder (!%p8701_p2), %s7640_s28, 0 }
  0xba   : > { %459 = sbr.rel (%p8701_p2) target bundleno = 2018 (0x7e2), region = 72 }
  0xc1   : > { %7533 = dma.done.wait (%p8702_p7), [#allocation14], 2560   ;;  %p8703_p3 = pmov %p8702_p7 }
  0xc3   : > { %7535 = vsyncadd (%p8703_p3), [#allocation14], 4294964736  ;;  %p8704_p1 = pmov %p8703_p3 }
  0xc5   : > { %7537 = dma.done.wait (%p8704_p1), [#allocation16], 12320   ;;  %p8705_p4 = pmov %p8704_p1 }
  0xc6   : > { %p8706_p6 = pmov %p8704_p1 }
  0xc7   : > { %7539 = vsyncadd (%p8705_p4), [#allocation16], 4294954976 }
  0xc8   : > { %7541 = dma.done.wait (%p8706_p6), [#allocation19], 16416   ;;  %p8707_p5 = pmov %p8704_p1 }
  0xc9   : > { %p8708_p8 = pmov %p8704_p1 }
  0xca   : > { %7543 = vsyncadd (%p8707_p5), [#allocation19], 4294950880 }
  0xcb   : > { %7545 = dma.done.wait (%p8708_p8), [#allocation22], 16416   ;;  %p8709_p9 = pmov %p8704_p1 }
  0xcc   : > { %p527_p10 = scmp.lt.s32.totalorder %s7640_s28, 1  ;;  %vm538_vm0 = vcmask 253952   ;;  %v7561_v0 = vmov 0   ;;  %v7562_v1 = vmov 0.0   ;;  %v6560_v2 = vld [vmem:[#allocation13 + $0x24] ss:$8 sps:$4 sm:$0xff]  }
  0xcd   : > { %7547 = vsyncadd (%p8709_p9), [#allocation22], 4294950880  ;;  %638 = vmatprep.mubr.bf16.mxu0 %v7561_v0  ;;  %539 = vst.msk [vmem:[#allocation7] sm:$0x1] %vm538_vm0, %v7562_v1  ;;  %702 = vmatprep.mubr.bf16.mxu1 %v7561_v0  ;;  %v6562_v3 = vld [vmem:[#allocation13 + $0x20] ss:$8 sps:$4 sm:$0xff]  }
  0xce   : > { %s8714_s28 = smov (!%p527_p10, %s7640_s28), 1  ;;  %606 = vmatprep.subr.bf16.mxu0 %v6560_v2  ;;  %v6563_v4 = vld [vmem:[#allocation13 + $0x34] ss:$8 sps:$4 sm:$0xff]   ;;  %v6565_v5 = vld [vmem:[#allocation13 + $0x30] ss:$8 sps:$4 sm:$0xff]   ;;  %vm602_vm1 = vcmask 261120  }
  0xcf   : > { %s6386_s29 = sshll.u32 %s8714_s28, 4  ;;  %607 = vmatpush1.bf16.msra.mxu0 %v6562_v3  ;;  %v6566_v6 = vld [vmem:[#allocation13 + $0x4] ss:$8 sps:$4 sm:$0xff]   ;;  %v6568_v7 = vld [vmem:[#allocation13] ss:$8 sps:$4 sm:$0xff]   ;;  %vm5131_vm3 = vcmask 254977  }
  0xd0   : > { %s7861_s18 = scalar_lea.vmem %s8674_s0, %s6386_s29  ;;  %608 = vmatprep.subr.bf16.mxu0 %v6563_v4  ;;  %670 = vmatprep.subr.bf16.mxu1 %v6566_v6  ;;  %v6571_v15 = vld [vmem:[#allocation13 + $0x44] ss:$8 sps:$4 sm:$0xff]   ;;  %v6572_v21 = vld [vmem:[#allocation13 + $0x14] ss:$8 sps:$4 sm:$0xff]   ;;  %v6574_v22 = vld [vmem:[#allocation13 + $0x10] ss:$8 sps:$4 sm:$0xff]   ;;  %s8637_s8 = scalar_lea.vmem %s8687_s13, %s6386_s29 }
  0xd1   : > { %v540_v8 = vld [vmem:[%s7861_s18] sm:$0x1]  ;;  %v542_v9 = vld [vmem:[%s7861_s18 + $0x2] sm:$0x1]  ;;  %v544_v10 = vld [vmem:[%s7861_s18 + $0x4] sm:$0x1]  ;;  %671 = vmatpush1.bf16.msra.mxu1 %v6568_v7 }
  0xd2   : > { %541 = vst.msk [vmem:[#allocation7 + $0x1] sm:$0x1] %vm538_vm0, %v540_v8  ;;  %543 = vst.msk [vmem:[#allocation7 + $0x2] sm:$0x1] %vm538_vm0, %v542_v9  ;;  %v546_v11 = vld [vmem:[%s7861_s18 + $0x6] sm:$0x1]  ;;  %672 = vmatprep.subr.bf16.mxu1 %v6572_v21 }
  0xd3   : > { %545 = vst.msk [vmem:[#allocation7 + $0x3] sm:$0x1] %vm538_vm0, %v544_v10  ;;  %v548_v12 = vld [vmem:[%s7861_s18 + $0x8] sm:$0x1]  ;;  %v550_v13 = vld [vmem:[%s7861_s18 + $0xa] sm:$0x1]  ;;  %609 = vmatpush1.bf16.msra.mxu0 %v6565_v5 }
  0xd4   : > { %547 = vst.msk [vmem:[#allocation7 + $0x4] sm:$0x1] %vm538_vm0, %v546_v11  ;;  %549 = vst.msk [vmem:[#allocation7 + $0x5] sm:$0x1] %vm538_vm0, %v548_v12  ;;  %v552_v14 = vld [vmem:[%s7861_s18 + $0xc] sm:$0x1]  ;;  %757 = vmatprep.subr.bf16.mxu0 %v6571_v15 }
  0xd5   : > { %551 = vst.msk [vmem:[#allocation7 + $0x6] sm:$0x1] %vm538_vm0, %v550_v13  ;;  %553 = vst.msk [vmem:[#allocation7 + $0x7] sm:$0x1] %vm538_vm0, %v552_v14  ;;  %v561_v16 = vld [vmem:[%s7861_s18 + $0x1] sm:$0x1]  ;;  %673 = vmatpush1.bf16.msra.mxu1 %v6574_v22 }
  0xd6   : > { %v563_v17 = vld [vmem:[%s7861_s18 + $0x3] sm:$0x1]  ;;  %v565_v18 = vld [vmem:[%s7861_s18 + $0x5] sm:$0x1]  ;;  %v567_v19 = vld [vmem:[%s7861_s18 + $0x7] sm:$0x1] }
  0xd7   : > { %v569_v20 = vld [vmem:[%s7861_s18 + $0x9] sm:$0x1]  ;;  %v571_v23 = vld [vmem:[%s7861_s18 + $0xb] sm:$0x1]  ;;  %v573_v24 = vld [vmem:[%s7861_s18 + $0xd] sm:$0x1] }
  0xd8   : > { %v6580_v25 = vld [vmem:[#allocation13 + $0x64] ss:$8 sps:$4 sm:$0xff]   ;;  %v6578_v27 = vld [vmem:[#allocation13 + $0x60] ss:$8 sps:$4 sm:$0xff]   ;;  %v6581_v29 = vld [vmem:[#allocation13 + $0x70] ss:$8 sps:$4 sm:$0xff]  }
  0xd9   : > { %846 = vmatprep.subr.bf16.mxu1 %v6580_v25  ;;  %v711_v30 = vld [vmem:[%s7861_s18] sm:$0x1]  ;;  %v713_v31 = vld [vmem:[%s7861_s18 + $0x2] sm:$0x1]  ;;  %v715_v33 = vld [vmem:[%s7861_s18 + $0x4] sm:$0x1] }
  0xda   : > { %v6583_v32 = vld [vmem:[#allocation13 + $0x74] ss:$8 sps:$4 sm:$0xff]   ;;  %v717_v34 = vld [vmem:[%s7861_s18 + $0x6] sm:$0x1]  ;;  %v719_v35 = vld [vmem:[%s7861_s18 + $0x8] sm:$0x1] }
  0xdb   : > { %v721_v36 = vld [vmem:[%s7861_s18 + $0xa] sm:$0x1]  ;;  %v723_v37 = vld [vmem:[%s7861_s18 + $0xc] sm:$0x1]  ;;  %v725_v38 = vld [vmem:[%s7861_s18 + $0xe] sm:$0x1] }
  0xdc   : > { %v554_v26 = vld [vmem:[#allocation7] sm:$0xff]  ;;  %v6569_v40 = vld [vmem:[#allocation13 + $0x40] ss:$8 sps:$4 sm:$0xff]   ;;  %v6586_v44 = vld [vmem:[#allocation13 + $0x84] ss:$8 sps:$4 sm:$0xff]   ;;  %vm5133_vm4 = vcmask 256002  }
  0xdd   : > { %560 = vst.msk [vmem:[#allocation7] sm:$0x1] %vm538_vm0, %v7562_v1  ;;  %562 = vst.msk [vmem:[#allocation7 + $0x1] sm:$0x1] %vm538_vm0, %v561_v16  ;;  %v559_v28 = vpack.c.bf16 %v554_v26, %v554_v26  ;;  %v6577_v42 = vld [vmem:[#allocation13 + $0x54] ss:$8 sps:$4 sm:$0xff]  }
  0xde   : > { %564 = vst.msk [vmem:[#allocation7 + $0x2] sm:$0x1] %vm538_vm0, %v563_v17  ;;  %566 = vst.msk [vmem:[#allocation7 + $0x3] sm:$0x1] %vm538_vm0, %v565_v18  ;;  %v6575_v43 = vld [vmem:[#allocation13 + $0x50] ss:$8 sps:$4 sm:$0xff]  }
  0xdf   : > { %568 = vst.msk [vmem:[#allocation7 + $0x4] sm:$0x1] %vm538_vm0, %v567_v19  ;;  %570 = vst.msk [vmem:[#allocation7 + $0x5] sm:$0x1] %vm538_vm0, %v569_v20  ;;  %5686 = vmatmul.mubr.msk.bf16.vlgmr.msra.gmra.mrb[0].mxu1 %vm602_vm1, %v559_v28  ;;  %v800_v45 = vld [vmem:[%s7861_s18 + $0x1] sm:$0x1] }
  0xe0   : > { %572 = vst.msk [vmem:[#allocation7 + $0x6] sm:$0x1] %vm538_vm0, %v571_v23  ;;  %574 = vst.msk [vmem:[#allocation7 + $0x7] sm:$0x1] %vm538_vm0, %v573_v24  ;;  %847 = vmatpush1.bf16.msra.mxu1 %v6578_v27  ;;  %878 = vmatprep.mubr.bf16.mxu1 %v7561_v0  ;;  %v802_v46 = vld [vmem:[%s7861_s18 + $0x3] sm:$0x1] }
  0xe1   : > { %848 = vmatprep.subr.bf16.mxu1 %v6583_v32  ;;  %v804_v47 = vld [vmem:[%s7861_s18 + $0x5] sm:$0x1]  ;;  %v806_v48 = vld [vmem:[%s7861_s18 + $0x7] sm:$0x1]  ;;  %v808_v49 = vld [vmem:[%s7861_s18 + $0x9] sm:$0x1] }
  0xe2   : > { %v810_v50 = vld [vmem:[%s7861_s18 + $0xb] sm:$0x1]  ;;  %v812_v51 = vld [vmem:[%s7861_s18 + $0xd] sm:$0x1]  ;;  %v814_v52 = vld [vmem:[%s7861_s18 + $0xf] sm:$0x1] }
  0xe3   : > { %v6584_v53 = vld [vmem:[#allocation13 + $0x80] ss:$8 sps:$4 sm:$0xff]   ;;  %v6589_v57 = vld [vmem:[#allocation13 + $0x94] ss:$8 sps:$4 sm:$0xff]   ;;  %v6587_v58 = vld [vmem:[#allocation13 + $0x90] ss:$8 sps:$4 sm:$0xff]  }
  0xe4   : > { %849 = vmatpush1.bf16.msra.mxu1 %v6581_v29  ;;  %v6598_v55 = vld [vmem:[%s8677_s3 + $0x104] ss:$8 sps:$4 sm:$0xff]   ;;  %v889_v59 = vld [vmem:[%s7861_s18 + $0x2] sm:$0x1]  ;;  %v895_v62 = vld [vmem:[%s7861_s18 + $0x8] sm:$0x1] }
  0xe5   : > { %1260 = vmatprep.subr.bf16.mxu1 %v6598_v55  ;;  %v891_v60 = vld [vmem:[%s7861_s18 + $0x4] sm:$0x1]  ;;  %v893_v61 = vld [vmem:[%s7861_s18 + $0x6] sm:$0x1]  ;;  %v897_v63 = vld [vmem:[%s7861_s18 + $0xa] sm:$0x1] }
  0xe6   : > { %v899_v2 = vld [vmem:[%s7861_s18 + $0xc] sm:$0x1]  ;;  %v901_v3 = vld [vmem:[%s7861_s18 + $0xe] sm:$0x1]  ;;  %v6596_v5 = vld [vmem:[%s8677_s3 + $0x100] ss:$8 sps:$4 sm:$0xff]  }
  0xe7   : > { %v575_v39 = vld [vmem:[#allocation7] sm:$0xff]  ;;  %v6592_v4 = vld [vmem:[%s8677_s3 + $0x4] ss:$8 sps:$4 sm:$0xff]   ;;  %v6590_v10 = vld [vmem:[%s8677_s3] ss:$8 sps:$4 sm:$0xff]   ;;  %vm5135_vm5 = vcmask 257027  }
  0xe8   : > { %v581_v41 = vpack.c.bf16 %v575_v39, %v575_v39  ;;  %712 = vst.msk [vmem:[#allocation7] sm:$0x1] %vm538_vm0, %v711_v30  ;;  %714 = vst.msk [vmem:[#allocation7 + $0x1] sm:$0x1] %vm538_vm0, %v713_v31  ;;  %v6602_v8 = vld [vmem:[%s8677_s3 + $0x110] ss:$8 sps:$4 sm:$0xff]  }
  0xe9   : > { %716 = vst.msk [vmem:[#allocation7 + $0x2] sm:$0x1] %vm538_vm0, %v715_v33  ;;  %718 = vst.msk [vmem:[#allocation7 + $0x3] sm:$0x1] %vm538_vm0, %v717_v34  ;;  %v6610_v9 = vld [vmem:[%s8677_s3 + $0x124] ss:$8 sps:$4 sm:$0xff]  }
  0xea   : > { %720 = vst.msk [vmem:[#allocation7 + $0x4] sm:$0x1] %vm538_vm0, %v719_v35  ;;  %722 = vst.msk [vmem:[#allocation7 + $0x5] sm:$0x1] %vm538_vm0, %v721_v36  ;;  %5681 = vmatmul.mubr.msk.bf16.vlgmr.msra.gmra.mrb[0].mxu0 %vm602_vm1, %v581_v41  ;;  %v6608_v11 = vld [vmem:[%s8677_s3 + $0x120] ss:$8 sps:$4 sm:$0xff]  }
  0xeb   : > { %724 = vst.msk [vmem:[#allocation7 + $0x6] sm:$0x1] %vm538_vm0, %v723_v37  ;;  %726 = vst.msk [vmem:[#allocation7 + $0x7] sm:$0x1] %vm538_vm0, %v725_v38  ;;  %758 = vmatpush1.bf16.msra.mxu0 %v6569_v40  ;;  %789 = vmatprep.mubr.bf16.mxu0 %v7561_v0  ;;  %v6595_v12 = vld [vmem:[%s8677_s3 + $0x14] ss:$8 sps:$4 sm:$0xff]  }
  0xec   : > { %759 = vmatprep.subr.bf16.mxu0 %v6577_v42  ;;  %v6593_v15 = vld [vmem:[%s8677_s3 + $0x10] ss:$8 sps:$4 sm:$0xff]   ;;  %v6601_v16 = vld [vmem:[%s8677_s3 + $0x24] ss:$8 sps:$4 sm:$0xff]   ;;  %v6599_v17 = vld [vmem:[%s8677_s3 + $0x20] ss:$8 sps:$4 sm:$0xff]   ;;  %v979_v42 = vlaneseq }
  0xed   : > { %v6607_v18 = vld [vmem:[%s8677_s3 + $0x34] ss:$8 sps:$4 sm:$0xff]   ;;  %v6605_v19 = vld [vmem:[%s8677_s3 + $0x30] ss:$8 sps:$4 sm:$0xff]   ;;  %v6611_v20 = vld [vmem:[%s8677_s3 + $0x40] ss:$8 sps:$4 sm:$0xff]  }
  0xee   : > { %v6613_v21 = vld [vmem:[%s8677_s3 + $0x44] ss:$8 sps:$4 sm:$0xff]   ;;  %v6614_v22 = vld [vmem:[%s8677_s3 + $0x130] ss:$8 sps:$4 sm:$0xff]   ;;  %v6616_v23 = vld [vmem:[%s8677_s3 + $0x134] ss:$8 sps:$4 sm:$0xff]  }
  0xef   : > { %760 = vmatpush1.bf16.msra.mxu0 %v6575_v43  ;;  %v6619_v24 = vld [vmem:[%s8677_s3 + $0x54] ss:$8 sps:$4 sm:$0xff]   ;;  %v6617_v25 = vld [vmem:[%s8677_s3 + $0x50] ss:$8 sps:$4 sm:$0xff]   ;;  %v6620_v26 = vld [vmem:[%s8677_s3 + $0x140] ss:$8 sps:$4 sm:$0xff]  }
  0xf0   : > { %934 = vmatprep.subr.bf16.mxu0 %v6586_v44  ;;  %v6622_v27 = vld [vmem:[%s8677_s3 + $0x144] ss:$8 sps:$4 sm:$0xff]   ;;  %v6623_v28 = vld [vmem:[%s8677_s3 + $0x60] ss:$8 sps:$4 sm:$0xff]   ;;  %v6628_v30 = vld [vmem:[%s8677_s3 + $0x154] ss:$8 sps:$4 sm:$0xff]  }
  0xf1   : > { %v6625_v29 = vld [vmem:[%s8677_s3 + $0x64] ss:$8 sps:$4 sm:$0xff]   ;;  %v6626_v31 = vld [vmem:[%s8677_s3 + $0x150] ss:$8 sps:$4 sm:$0xff]   ;;  %v6631_v32 = vld [vmem:[%s8677_s3 + $0x74] ss:$8 sps:$4 sm:$0xff]  }
  0xf2   : > { %v727_v54 = vld [vmem:[#allocation7] sm:$0xff]  ;;  %v6632_v34 = vld [vmem:[%s8677_s3 + $0x160] ss:$8 sps:$4 sm:$0xff]   ;;  %v6634_v35 = vld [vmem:[%s8677_s3 + $0x164] ss:$8 sps:$4 sm:$0xff]   ;;  %vm8067_vm2 = vcmp.lt.s32.totalorder %v979_v42, 256 }
  0xf3   : > { %v733_v56 = vpack.c.bf16 %v727_v54, %v727_v54  ;;  %801 = vst.msk [vmem:[#allocation7] sm:$0x1] %vm538_vm0, %v800_v45  ;;  %803 = vst.msk [vmem:[#allocation7 + $0x1] sm:$0x1] %vm538_vm0, %v802_v46  ;;  %v6629_v33 = vld [vmem:[%s8677_s3 + $0x70] ss:$8 sps:$4 sm:$0xff]  }
  0xf4   : > { %805 = vst.msk [vmem:[#allocation7 + $0x2] sm:$0x1] %vm538_vm0, %v804_v47  ;;  %807 = vst.msk [vmem:[#allocation7 + $0x3] sm:$0x1] %vm538_vm0, %v806_v48  ;;  %v6635_v36 = vld [vmem:[%s8677_s3 + $0x80] ss:$8 sps:$4 sm:$0xff]  }
  0xf5   : > { %809 = vst.msk [vmem:[#allocation7 + $0x4] sm:$0x1] %vm538_vm0, %v808_v49  ;;  %811 = vst.msk [vmem:[#allocation7 + $0x5] sm:$0x1] %vm538_vm0, %v810_v50  ;;  %5691 = vmatmul.mubr.msk.bf16.vlgmr.msra.gmra.mrb[4].mxu0 %vm602_vm1, %v733_v56  ;;  %v6637_v37 = vld [vmem:[%s8677_s3 + $0x84] ss:$8 sps:$4 sm:$0xff]  }
  0xf6   : > { %813 = vst.msk [vmem:[#allocation7 + $0x6] sm:$0x1] %vm538_vm0, %v812_v51  ;;  %815 = vst.msk [vmem:[#allocation7 + $0x7] sm:$0x1] %vm538_vm0, %v814_v52  ;;  %935 = vmatpush1.bf16.msra.mxu0 %v6584_v53  ;;  %966 = vmatprep.mubr.bf16.mxu0 %v7561_v0  ;;  %v6604_v0 = vld [vmem:[%s8677_s3 + $0x114] ss:$8 sps:$4 sm:$0xff]  }
  0xf7   : > { %936 = vmatprep.subr.bf16.mxu0 %v6589_v57  ;;  %v6640_v38 = vld [vmem:[%s8677_s3 + $0x174] ss:$8 sps:$4 sm:$0xff]   ;;  %v6638_v39 = vld [vmem:[%s8677_s3 + $0x170] ss:$8 sps:$4 sm:$0xff]   ;;  %v6646_v43 = vld [vmem:[%s8677_s3 + $0x184] ss:$8 sps:$4 sm:$0xff]  }
  0xf8   : > { %v6643_v40 = vld [vmem:[%s8677_s3 + $0x94] ss:$8 sps:$4 sm:$0xff]   ;;  %v6641_v41 = vld [vmem:[%s8677_s3 + $0x90] ss:$8 sps:$4 sm:$0xff]   ;;  %v6644_v44 = vld [vmem:[%s8677_s3 + $0x180] ss:$8 sps:$4 sm:$0xff]  }
  0xf9   : > { %v6649_v45 = vld [vmem:[%s8677_s3 + $0xa4] ss:$8 sps:$4 sm:$0xff]   ;;  %v6647_v47 = vld [vmem:[%s8677_s3 + $0xa0] ss:$8 sps:$4 sm:$0xff]   ;;  %v6652_v48 = vld [vmem:[%s8677_s3 + $0x194] ss:$8 sps:$4 sm:$0xff]  }
  0xfa   : > { %937 = vmatpush1.bf16.msra.mxu0 %v6587_v58  ;;  %999 = vst.msk [vmem:[#allocation8] ss:$4 sm:$0x3] %vm8067_vm2, %v7562_v1  ;;  %1774 = vst.msk [vmem:[#allocation9] ss:$2 sm:$0x3] %vm8067_vm2, %v7562_v1 }
  0xfb   : > { %1461 = vmatprep.subr.bf16.mxu0 %v6592_v4  ;;  %2562 = vst.msk [vmem:[#allocation10] ss:$2 sm:$0x3] %vm8067_vm2, %v7562_v1  ;;  %3654 = vst.msk [vmem:[#allocation11] ss:$4 sm:$0x3] %vm8067_vm2, %v7562_v1 }
  0xfc   : > { %4747 = vst.msk [vmem:[#allocation12] ss:$8 sm:$0x3] %vm8067_vm2, %v7562_v1  ;;  %v6650_v49 = vld [vmem:[%s8677_s3 + $0x190] ss:$8 sps:$4 sm:$0xff]   ;;  %v7309_v46 = vld [vmem:[%s8685_s11 + $0x108] sm:$0xff]  }
  0xfd   : > { %v816_v6 = vld [vmem:[#allocation7] sm:$0xff]  ;;  %v6658_v52 = vld [vmem:[%s8677_s3 + $0x1a4] ss:$8 sps:$4 sm:$0xff]   ;;  %v6656_v53 = vld [vmem:[%s8677_s3 + $0x1a0] ss:$8 sps:$4 sm:$0xff]   ;;  %vm5137_vm6 = vcmask 258052  }
  0xfe   : > { %v822_v7 = vpack.c.bf16 %v816_v6, %v816_v6  ;;  %903 = vst.msk [vmem:[#allocation7 + $0x7] sm:$0x1] %vm538_vm0, %v7562_v1  ;;  %890 = vst.msk [vmem:[#allocation7] sm:$0x1] %vm538_vm0, %v889_v59  ;;  %v6655_v50 = vld [vmem:[%s8677_s3 + $0xb4] ss:$8 sps:$4 sm:$0xff]  }
  0xff   : > { %892 = vst.msk [vmem:[#allocation7 + $0x1] sm:$0x1] %vm538_vm0, %v891_v60  ;;  %894 = vst.msk [vmem:[#allocation7 + $0x2] sm:$0x1] %vm538_vm0, %v893_v61  ;;  %v6653_v51 = vld [vmem:[%s8677_s3 + $0xb0] ss:$8 sps:$4 sm:$0xff]  }
 0x100   : > { %896 = vst.msk [vmem:[#allocation7 + $0x3] sm:$0x1] %vm538_vm0, %v895_v62  ;;  %898 = vst.msk [vmem:[#allocation7 + $0x4] sm:$0x1] %vm538_vm0, %v897_v63  ;;  %5696 = vmatmul.mubr.msk.bf16.vlgmr.msra.gmra.mrb[4].mxu1 %vm602_vm1, %v822_v7  ;;  %v6661_v54 = vld [vmem:[%s8677_s3 + $0xc4] ss:$8 sps:$4 sm:$0xff]  }
 0x101   : > { %900 = vst.msk [vmem:[#allocation7 + $0x5] sm:$0x1] %vm538_vm0, %v899_v2  ;;  %902 = vst.msk [vmem:[#allocation7 + $0x6] sm:$0x1] %vm538_vm0, %v901_v3  ;;  %1261 = vmatpush1.bf16.msra.mxu1 %v6596_v5  ;;  %v6659_v55 = vld [vmem:[%s8677_s3 + $0xc0] ss:$8 sps:$4 sm:$0xff]  }
 0x102   : > { %1262 = vmatprep.subr.bf16.mxu1 %v6604_v0  ;;  %v6664_v56 = vld [vmem:[%s8677_s3 + $0x1b4] ss:$8 sps:$4 sm:$0xff]   ;;  %v6662_v57 = vld [vmem:[%s8677_s3 + $0x1b0] ss:$8 sps:$4 sm:$0xff]   ;;  %v6670_v60 = vld [vmem:[%s8677_s3 + $0x1c4] ss:$8 sps:$4 sm:$0xff]  }
 0x103   : > { %v6665_v58 = vld [vmem:[%s8677_s3 + $0xd0] ss:$8 sps:$4 sm:$0xff]   ;;  %v6667_v59 = vld [vmem:[%s8677_s3 + $0xd4] ss:$8 sps:$4 sm:$0xff]   ;;  %v6668_v61 = vld [vmem:[%s8677_s3 + $0x1c0] ss:$8 sps:$4 sm:$0xff]  }
 0x104   : > { %v6673_v62 = vld [vmem:[%s8677_s3 + $0xe4] ss:$8 sps:$4 sm:$0xff]   ;;  %v6671_v63 = vld [vmem:[%s8677_s3 + $0xe0] ss:$8 sps:$4 sm:$0xff]   ;;  %v6676_v2 = vld [vmem:[%s8677_s3 + $0x1d4] ss:$8 sps:$4 sm:$0xff]  }
 0x105   : > { %1263 = vmatpush1.bf16.msra.mxu1 %v6602_v8  ;;  %v6674_v3 = vld [vmem:[%s8677_s3 + $0x1d0] ss:$8 sps:$4 sm:$0xff]   ;;  %v6679_v4 = vld [vmem:[%s8677_s3 + $0xf4] ss:$8 sps:$4 sm:$0xff]   ;;  %v6682_v0 = vld [vmem:[%s8677_s3 + $0x1e4] ss:$8 sps:$4 sm:$0xff]  }
 0x106   : > { %1264 = vmatprep.subr.bf16.mxu1 %v6610_v9  ;;  %v6677_v5 = vld [vmem:[%s8677_s3 + $0xf0] ss:$8 sps:$4 sm:$0xff]   ;;  %v6680_v6 = vld [vmem:[%s8677_s3 + $0x1e0] ss:$8 sps:$4 sm:$0xff]   ;;  %v6686_v8 = vld [vmem:[%s8677_s3 + $0x1f4] ss:$8 sps:$4 sm:$0xff]  }
 0x107   : > { %v6684_v7 = vld [vmem:[%s8677_s3 + $0x1f0] ss:$8 sps:$4 sm:$0xff]   ;;  %v6690_v9 = vld [vmem:[%s8677_s3 + $0x204] ss:$8 sps:$4 sm:$0xff]   ;;  %vm5139_vm7 = vcmask 259077   ;;  %vm5141_vm8 = vcmask 260102  }
 0x108   : > { %v904_v13 = vld [vmem:[#allocation7] sm:$0xff]  ;;  %vm5143_vm9 = vcmask 261127  }
 0x109   : > { %v910_v14 = vpack.c.bf16 %v904_v13, %v904_v13  ;;  %1265 = vmatpush1.bf16.msra.mxu1 %v6608_v11 }
 0x10a   : > { %1266 = vmatprep.subr.bf16.mxu1 %v6616_v23 }
 0x10b   : > { %5701 = vmatmul.mubr.msk.bf16.vlgmr.msra.gmra.mrb[8].mxu0 %vm602_vm1, %v910_v14 }
 0x10c   : > { %1462 = vmatpush1.bf16.msra.mxu0 %v6590_v10 }
 0x10d   : > { %1463 = vmatprep.subr.bf16.mxu0 %v6595_v12  ;;  %1267 = vmatpush1.bf16.msra.mxu1 %v6614_v22 }
 0x10e   : > { %1268 = vmatprep.subr.bf16.mxu1 %v6622_v27 }
 0x110   : > { %1464 = vmatpush1.bf16.msra.mxu0 %v6593_v15 }
 0x111   : > { %1465 = vmatprep.subr.bf16.mxu0 %v6601_v16  ;;  %1269 = vmatpush1.bf16.msra.mxu1 %v6620_v26  ;;  %v8165_v26 = vshrl.u32 %v979_v42, 7 }
 0x112   : > { %1270 = vmatprep.subr.bf16.mxu1 %v6628_v30 }
 0x114   : > { %1466 = vmatpush1.bf16.msra.mxu0 %v6599_v17 }
 0x115   : > { %1467 = vmatprep.subr.bf16.mxu0 %v6607_v18  ;;  %1271 = vmatpush1.bf16.msra.mxu1 %v6626_v31 }
 0x116   : > { %1272 = vmatprep.subr.bf16.mxu1 %v6634_v35  ;;  %v8174_v35 = vsub.s32 1, %v8165_v26 }
 0x118   : > { %1468 = vmatpush1.bf16.msra.mxu0 %v6605_v19 }
 0x119   : > { %1469 = vmatprep.subr.bf16.mxu0 %v6613_v21  ;;  %1273 = vmatpush1.bf16.msra.mxu1 %v6632_v34 }
 0x11a   : > { %1274 = vmatprep.subr.bf16.mxu1 %v6640_v38 }
 0x11c   : > { %1470 = vmatpush1.bf16.msra.mxu0 %v6611_v20 }
 0x11d   : > { %1471 = vmatprep.subr.bf16.mxu0 %v6619_v24  ;;  %1275 = vmatpush1.bf16.msra.mxu1 %v6638_v39 }
 0x11e   : > { %1276 = vmatprep.subr.bf16.mxu1 %v6646_v43 }
 0x120   : > { %1472 = vmatpush1.bf16.msra.mxu0 %v6617_v25 }
 0x121   : > { %1473 = vmatprep.subr.bf16.mxu0 %v6625_v29  ;;  %1277 = vmatpush1.bf16.msra.mxu1 %v6644_v44 }
 0x122   : > { %1278 = vmatprep.subr.bf16.mxu1 %v6652_v48 }
 0x124   : > { %1474 = vmatpush1.bf16.msra.mxu0 %v6623_v28 }
 0x125   : > { %1475 = vmatprep.subr.bf16.mxu0 %v6631_v32  ;;  %1279 = vmatpush1.bf16.msra.mxu1 %v6650_v49  ;;  %v977_v32 = vld [vmem:[%s8676_s2] sm:$0x3] }
 0x126   : > { %1280 = vmatprep.subr.bf16.mxu1 %v6658_v52  ;;  %v986_v38 = vrot.slane %v977_v32, %v8174_v35 }
 0x128   : > { %1476 = vmatpush1.bf16.msra.mxu0 %v6629_v33  ;;  %v8171_v33 = vsub.s32 0, %v8165_v26 }
 0x129   : > { %1477 = vmatprep.subr.bf16.mxu0 %v6637_v37  ;;  %1281 = vmatpush1.bf16.msra.mxu1 %v6656_v53 }
 0x12a   : > { %1282 = vmatprep.subr.bf16.mxu1 %v6664_v56 }
 0x12c   : > { %1478 = vmatpush1.bf16.msra.mxu0 %v6635_v36  ;;  %v982_v36 = vrot.slane %v977_v32, %v8171_v33  ;;  %v6727_v32 = vld [vmem:[%s8677_s3 + $0x2c4] ss:$8 sps:$4 sm:$0xff]  }
 0x12d   : > { %1479 = vmatprep.subr.bf16.mxu0 %v6643_v40  ;;  %1283 = vmatpush1.bf16.msra.mxu1 %v6662_v57 }
 0x12e   : > { %1284 = vmatprep.subr.bf16.mxu1 %v6670_v60 }
 0x130   : > { %1480 = vmatpush1.bf16.msra.mxu0 %v6641_v41 }
 0x131   : > { %1481 = vmatprep.subr.bf16.mxu0 %v6649_v45  ;;  %1285 = vmatpush1.bf16.msra.mxu1 %v6668_v61 }
 0x132   : > { %1286 = vmatprep.subr.bf16.mxu1 %v6676_v2 }
 0x134   : > { %1482 = vmatpush1.bf16.msra.mxu0 %v6647_v47 }
 0x135   : > { %1483 = vmatprep.subr.bf16.mxu0 %v6655_v50  ;;  %1287 = vmatpush1.bf16.msra.mxu1 %v6674_v3 }
 0x136   : > { %1288 = vmatprep.subr.bf16.mxu1 %v6682_v0 }
 0x138   : > { %1484 = vmatpush1.bf16.msra.mxu0 %v6653_v51 }
 0x139   : > { %1485 = vmatprep.subr.bf16.mxu0 %v6661_v54  ;;  %1289 = vmatpush1.bf16.msra.mxu1 %v6680_v6  ;;  %v6693_v6 = vld [vmem:[%s8677_s3 + $0x214] ss:$8 sps:$4 sm:$0xff]  }
 0x13a   : > { %1290 = vmatprep.subr.bf16.mxu1 %v6686_v8  ;;  %v6696_v8 = vld [vmem:[%s8677_s3 + $0x224] ss:$8 sps:$4 sm:$0xff]  }
 0x13c   : > { %1486 = vmatpush1.bf16.msra.mxu0 %v6659_v55 }
 0x13d   : > { %1487 = vmatprep.subr.bf16.mxu0 %v6667_v59  ;;  %1291 = vmatpush1.bf16.msra.mxu1 %v6684_v7  ;;  %v6691_v7 = vld [vmem:[%s8677_s3 + $0x210] ss:$8 sps:$4 sm:$0xff]  }
 0x13e   : > { %1710 = vmatprep.subr.bf16.mxu1 %v6690_v9 }
 0x140   : > { %1488 = vmatpush1.bf16.msra.mxu0 %v6665_v58 }
 0x141   : > { %1489 = vmatprep.subr.bf16.mxu0 %v6673_v62 }
 0x144   : > { %1490 = vmatpush1.bf16.msra.mxu0 %v6671_v63 }
 0x145   : > { %1491 = vmatprep.subr.bf16.mxu0 %v6679_v4 }
 0x148   : > { %1492 = vmatpush1.bf16.msra.mxu0 %v6677_v5  ;;  %v6688_v5 = vld [vmem:[%s8677_s3 + $0x200] ss:$8 sps:$4 sm:$0xff]  }
 0x1b2   : > { %v704_v10 = vpop.f32.mrb[0].mxu1 }
 0x1b3   : > { %v706_v11 = vpop.f32.mrb[1].mxu1 }
 0x1b4   : > { %v708_v12 = vpop.f32.mrb[2].mxu1 }
 0x1b5   : > { %v709_v13 = vpop.f32.mrb[3].mxu1 }
 0x1b6   : > { %v6700_v13 = vld [vmem:[%s8677_s3 + $0x234] ss:$8 sps:$4 sm:$0xff]  }
 0x1bd   : > { %v640_v14 = vpop.f32.mrb[0].mxu0 }
 0x1be   : > { %v642_v15 = vpop.f32.mrb[1].mxu0  ;;  %v705_v16 = vadd.f32 %v704_v10, %v640_v14  ;;  %v6698_v14 = vld [vmem:[%s8677_s3 + $0x230] ss:$8 sps:$4 sm:$0xff]  }
 0x1bf   : > { %v644_v17 = vpop.f32.mrb[2].mxu0  ;;  %v707_v18 = vadd.f32 %v706_v11, %v642_v15  ;;  %v6694_v11 = vld [vmem:[%s8677_s3 + $0x220] ss:$8 sps:$4 sm:$0xff]   ;;  %v6703_v15 = vld [vmem:[%s8677_s3 + $0x244] ss:$8 sps:$4 sm:$0xff]  }
 0x1c0   : > { %v645_v19 = vpop.f32.mrb[3].mxu0  ;;  %v6706_v17 = vld [vmem:[%s8677_s3 + $0x254] ss:$8 sps:$4 sm:$0xff]  }
 0x1c1   : > { %v6709_v19 = vld [vmem:[%s8677_s3 + $0x264] ss:$8 sps:$4 sm:$0xff]  }
 0x1c8   : > { %v791_v20 = vpop.f32.mrb[4].mxu0 }
 0x1c9   : > { %v798_v21 = vadd.f32 %v791_v20, %v705_v16  ;;  %v793_v22 = vpop.f32.mrb[5].mxu0  ;;  %v6701_v16 = vld [vmem:[%s8677_s3 + $0x240] ss:$8 sps:$4 sm:$0xff]  }
 0x1ca   : > { %v799_v23 = vadd.f32 %v793_v22, %v707_v18  ;;  %v795_v24 = vpop.f32.mrb[6].mxu0  ;;  %v6704_v18 = vld [vmem:[%s8677_s3 + $0x250] ss:$8 sps:$4 sm:$0xff]   ;;  %v6707_v20 = vld [vmem:[%s8677_s3 + $0x260] ss:$8 sps:$4 sm:$0xff]  }
 0x1cb   : > { %v796_v25 = vpop.f32.mrb[7].mxu0  ;;  %v6710_v22 = vld [vmem:[%s8677_s3 + $0x270] ss:$8 sps:$4 sm:$0xff]   ;;  %v6713_v24 = vld [vmem:[%s8677_s3 + $0x280] ss:$8 sps:$4 sm:$0xff]  }
 0x1cc   : > { %v6718_v25 = vld [vmem:[%s8677_s3 + $0x294] ss:$8 sps:$4 sm:$0xff]  }
 0x1d3   : > { %v880_v27 = vpop.f32.mrb[4].mxu1 }
 0x1d4   : > { %v887_v28 = vadd.f32 %v880_v27, %v798_v21  ;;  %v882_v29 = vpop.f32.mrb[5].mxu1  ;;  %v6712_v21 = vld [vmem:[%s8677_s3 + $0x274] ss:$8 sps:$4 sm:$0xff]   ;;  %v6716_v27 = vld [vmem:[%s8677_s3 + $0x290] ss:$8 sps:$4 sm:$0xff]  }
 0x1d5   : > { %v888_v30 = vadd.f32 %v882_v29, %v799_v23  ;;  %v884_v31 = vpop.f32.mrb[6].mxu1  ;;  %v6715_v23 = vld [vmem:[%s8677_s3 + $0x284] ss:$8 sps:$4 sm:$0xff]   ;;  %v6719_v29 = vld [vmem:[%s8677_s3 + $0x2a0] ss:$8 sps:$4 sm:$0xff]  }
 0x1d6   : > { %v885_v34 = vpop.f32.mrb[7].mxu1  ;;  %v6722_v31 = vld [vmem:[%s8677_s3 + $0x2b0] ss:$8 sps:$4 sm:$0xff]  }
 0x1d7   : > { %v6725_v34 = vld [vmem:[%s8677_s3 + $0x2c0] ss:$8 sps:$4 sm:$0xff]  }
 0x1de   : > { %v968_v37 = vpop.f32.mrb[8].mxu0 }
 0x1df   : > { %v975_v39 = vadd.f32 %v968_v37, %v887_v28  ;;  %v970_v40 = vpop.f32.mrb[9].mxu0  ;;  %v6721_v28 = vld [vmem:[%s8677_s3 + $0x2a4] ss:$8 sps:$4 sm:$0xff]   ;;  %v6728_v37 = vld [vmem:[%s8677_s3 + $0x2d0] ss:$8 sps:$4 sm:$0xff]  }
 0x1e0   : > { %v976_v41 = vadd.f32 %v970_v40, %v888_v30  ;;  %v972_v42 = vpop.f32.mrb[10].mxu0  ;;  %v6724_v30 = vld [vmem:[%s8677_s3 + $0x2b4] ss:$8 sps:$4 sm:$0xff]  }
 0x1e1   : > { %v989_v43 = vadd.f32 %v982_v36, %v975_v39  ;;  %v973_v44 = vpop.f32.mrb[11].mxu0  ;;  %v6730_v36 = vld [vmem:[%s8677_s3 + $0x2d4] ss:$8 sps:$4 sm:$0xff]   ;;  %v6731_v39 = vld [vmem:[%s8677_s3 + $0x2e0] ss:$8 sps:$4 sm:$0xff]  }
 0x1e2   : > { %v990_v45 = vadd.f32 %v986_v38, %v976_v41  ;;  %v6733_v38 = vld [vmem:[%s8677_s3 + $0x2e4] ss:$8 sps:$4 sm:$0xff]   ;;  %v6736_v40 = vld [vmem:[%s8677_s3 + $0x2f4] ss:$8 sps:$4 sm:$0xff]   ;;  %v6734_v41 = vld [vmem:[%s8677_s3 + $0x2f0] ss:$8 sps:$4 sm:$0xff]  }
 0x1e3   : > { %v991_v47 = vmax.f32 %v989_v43, 0.0  ;;  %v6737_v43 = vld [vmem:[#allocation17] ss:$8 sps:$4 sm:$0xff]   ;;  %v6739_v44 = vld [vmem:[#allocation17 + $0x4] ss:$8 sps:$4 sm:$0xff]  }
 0x1e4   : > { %v992_v48 = vmax.f32 %v990_v45, 0.0  ;;  %v6742_v45 = vld [vmem:[#allocation17 + $0x14] ss:$8 sps:$4 sm:$0xff]  }
 0x1e5   : > { %993 = vst [vmem:[#allocation2] sm:$0xff] %v991_v47  ;;  %v6743_v47 = vld [vmem:[#allocation17 + $0x100] ss:$8 sps:$4 sm:$0xff]  }
 0x1e6   : > { %994 = vst [vmem:[#allocation2 + $0x8] sm:$0xff] %v992_v48  ;;  %v6745_v48 = vld [vmem:[#allocation17 + $0x104] ss:$8 sps:$4 sm:$0xff]  }
 0x1e7   : > { %2037 = vmatprep.subr.bf16.mxu0 %v6745_v48  ;;  %v6830_v48 = vld [vmem:[#allocation17 + $0x1f0] ss:$8 sps:$4 sm:$0xff]  }
 0x1ed   : > { %v1001_v49 = vld [vmem:[#allocation2 + $0x1] ss:$8 sm:$0x3]  ;;  %v1005_v50 = vld [vmem:[#allocation2 + $0x3] ss:$8 sm:$0x3] }
 0x1ee   : > { %1003 = vst.msk [vmem:[#allocation8 + $0x1] ss:$4 sm:$0x3] %vm8067_vm2, %v1001_v49  ;;  %1007 = vst.msk [vmem:[#allocation8 + $0x2] ss:$4 sm:$0x3] %vm8067_vm2, %v1005_v50 }
 0x1ef   : > { %v1009_v51 = vld [vmem:[#allocation2 + $0x5] ss:$8 sm:$0x3]  ;;  %v1050_v52 = vld [vmem:[#allocation2] ss:$8 sm:$0x3] }
 0x1f0   : > { %1011 = vst.msk [vmem:[#allocation8 + $0x3] ss:$4 sm:$0x3] %vm8067_vm2, %v1009_v51  ;;  %v1053_v53 = vld [vmem:[#allocation2 + $0x2] ss:$8 sm:$0x3] }
 0x1f1   : > { %v1056_v54 = vld [vmem:[#allocation2 + $0x4] ss:$8 sm:$0x3]  ;;  %v1059_v55 = vld [vmem:[#allocation2 + $0x6] ss:$8 sm:$0x3] }
 0x1f2   : > { %v1502_v60 = vld [vmem:[#allocation2 + $0x1] ss:$8 sm:$0x3]  ;;  %v1504_v61 = vld [vmem:[#allocation2 + $0x3] ss:$8 sm:$0x3] }
 0x1f3   : > { %v1506_v62 = vld [vmem:[#allocation2 + $0x5] ss:$8 sm:$0x3]  ;;  %v1509_v2 = vld [vmem:[#allocation2 + $0x7] ss:$8 sm:$0x3] }
 0x1f4   : > { %v6740_v49 = vld [vmem:[#allocation17 + $0x10] ss:$8 sps:$4 sm:$0xff]   ;;  %v6751_v50 = vld [vmem:[#allocation17 + $0x114] ss:$8 sps:$4 sm:$0xff]   ;;  %v6748_v51 = vld [vmem:[#allocation17 + $0x24] ss:$8 sps:$4 sm:$0xff]  }
 0x1f7   : > { %v1012_v56 = vld [vmem:[#allocation8] sm:$0xff] }
 0x1f8   : > { %v1046_v57 = vcombine.high %v1012_v56, %v1012_v56  ;;  %1051 = vst.msk [vmem:[#allocation8] ss:$4 sm:$0x3] %vm8067_vm2, %v1050_v52  ;;  %1054 = vst.msk [vmem:[#allocation8 + $0x1] ss:$4 sm:$0x3] %vm8067_vm2, %v1053_v53  ;;  %v1048_v59 = vpack.c.bf16 %v1012_v56, %v1012_v56 }
 0x1f9   : > { %1057 = vst.msk [vmem:[#allocation8 + $0x2] ss:$4 sm:$0x3] %vm8067_vm2, %v1056_v54  ;;  %1060 = vst.msk [vmem:[#allocation8 + $0x3] ss:$4 sm:$0x3] %vm8067_vm2, %v1059_v55 }
 0x1fa   : > { %v1049_v58 = vpack.c.bf16 %v1046_v57, %v1046_v57  ;;  %v6749_v52 = vld [vmem:[#allocation17 + $0x110] ss:$8 sps:$4 sm:$0xff]   ;;  %v6757_v53 = vld [vmem:[#allocation17 + $0x124] ss:$8 sps:$4 sm:$0xff]   ;;  %v6746_v54 = vld [vmem:[#allocation17 + $0x20] ss:$8 sps:$4 sm:$0xff]  }
 0x1fb   : > { %v6754_v55 = vld [vmem:[#allocation17 + $0x34] ss:$8 sps:$4 sm:$0xff]   ;;  %v6755_v56 = vld [vmem:[#allocation17 + $0x120] ss:$8 sps:$4 sm:$0xff]  }
 0x1fc   : > { %1493 = vmatprep.mubr.bf16.mxu0 %v1049_v58  ;;  %v6763_v57 = vld [vmem:[#allocation17 + $0x134] ss:$8 sps:$4 sm:$0xff]   ;;  %v6752_v58 = vld [vmem:[#allocation17 + $0x30] ss:$8 sps:$4 sm:$0xff]  }
 0x1fd   : > { %1494 = vmatmul.mubr.bf16.vlgmr.msra.gmra.mrb[12].mxu0 %v1048_v59  ;;  %v6760_v59 = vld [vmem:[#allocation17 + $0x44] ss:$8 sps:$4 sm:$0xff]  }
 0x1fe   : > { %2038 = vmatpush1.bf16.msra.mxu0 %v6743_v47  ;;  %v6832_v47 = vld [vmem:[#allocation17 + $0x1f4] ss:$8 sps:$4 sm:$0xff]  }
 0x1ff   : > { %2039 = vmatprep.subr.bf16.mxu0 %v6751_v50 }
 0x200   : > { %v1061_v63 = vld [vmem:[#allocation8] sm:$0xff] }
 0x201   : > { %v1096_v3 = vcombine.high %v1061_v63, %v1061_v63  ;;  %1503 = vst.msk [vmem:[#allocation8] ss:$4 sm:$0x3] %vm8067_vm2, %v1502_v60  ;;  %1505 = vst.msk [vmem:[#allocation8 + $0x1] ss:$4 sm:$0x3] %vm8067_vm2, %v1504_v61  ;;  %v1098_v0 = vpack.c.bf16 %v1061_v63, %v1061_v63 }
 0x202   : > { %1507 = vst.msk [vmem:[#allocation8 + $0x2] ss:$4 sm:$0x3] %vm8067_vm2, %v1506_v62  ;;  %1510 = vst.msk [vmem:[#allocation8 + $0x3] ss:$4 sm:$0x3] %vm8067_vm2, %v1509_v2  ;;  %2040 = vmatpush1.bf16.msra.mxu0 %v6749_v52 }
 0x203   : > { %v1099_v4 = vpack.c.bf16 %v1096_v3, %v1096_v3  ;;  %2041 = vmatprep.subr.bf16.mxu0 %v6757_v53  ;;  %v6761_v60 = vld [vmem:[#allocation17 + $0x130] ss:$8 sps:$4 sm:$0xff]   ;;  %v6769_v61 = vld [vmem:[#allocation17 + $0x144] ss:$8 sps:$4 sm:$0xff]   ;;  %v6758_v62 = vld [vmem:[#allocation17 + $0x40] ss:$8 sps:$4 sm:$0xff]  }
 0x204   : > { %v6766_v63 = vld [vmem:[#allocation17 + $0x54] ss:$8 sps:$4 sm:$0xff]   ;;  %v6767_v2 = vld [vmem:[#allocation17 + $0x140] ss:$8 sps:$4 sm:$0xff]  }
 0x205   : > { %1292 = vmatprep.mubr.bf16.mxu1 %v1099_v4  ;;  %v6775_v3 = vld [vmem:[#allocation17 + $0x154] ss:$8 sps:$4 sm:$0xff]   ;;  %v6764_v4 = vld [vmem:[#allocation17 + $0x50] ss:$8 sps:$4 sm:$0xff]  }
 0x206   : > { %1293 = vmatmul.mubr.bf16.vlgmr.msra.gmra.mrb[8].mxu1 %v1098_v0  ;;  %2042 = vmatpush1.bf16.msra.mxu0 %v6755_v56  ;;  %v6773_v0 = vld [vmem:[#allocation17 + $0x150] ss:$8 sps:$4 sm:$0xff]  }
 0x207   : > { %1711 = vmatpush1.bf16.msra.mxu1 %v6688_v5  ;;  %2043 = vmatprep.subr.bf16.mxu0 %v6763_v57  ;;  %v6772_v5 = vld [vmem:[#allocation17 + $0x64] ss:$8 sps:$4 sm:$0xff]  }
 0x208   : > { %1712 = vmatprep.subr.bf16.mxu1 %v6693_v6  ;;  %v6781_v6 = vld [vmem:[#allocation17 + $0x164] ss:$8 sps:$4 sm:$0xff]  }
 0x209   : > { %v1511_v9 = vld [vmem:[#allocation8] sm:$0xff] }
 0x20a   : > { %v1546_v10 = vcombine.high %v1511_v9, %v1511_v9  ;;  %v1548_v42 = vpack.c.bf16 %v1511_v9, %v1511_v9  ;;  %2044 = vmatpush1.bf16.msra.mxu0 %v6761_v60  ;;  %v6779_v9 = vld [vmem:[#allocation17 + $0x160] ss:$8 sps:$4 sm:$0xff]   ;;  %v1753_v60 = vld [vmem:[#allocation15] sm:$0x3] }
 0x20b   : > { %1713 = vmatpush1.bf16.msra.mxu1 %v6691_v7  ;;  %2045 = vmatprep.subr.bf16.mxu0 %v6769_v61  ;;  %v6770_v7 = vld [vmem:[#allocation17 + $0x60] ss:$8 sps:$4 sm:$0xff]   ;;  %v1758_v61 = vrot.slane %v1753_v60, %v8171_v33 }
 0x20c   : > { %v1549_v12 = vpack.c.bf16 %v1546_v10, %v1546_v10  ;;  %1714 = vmatprep.subr.bf16.mxu1 %v6696_v8  ;;  %v6778_v8 = vld [vmem:[#allocation17 + $0x74] ss:$8 sps:$4 sm:$0xff]   ;;  %v6776_v10 = vld [vmem:[#allocation17 + $0x70] ss:$8 sps:$4 sm:$0xff]  }
 0x20e   : > { %1742 = vmatprep.mubr.bf16.mxu1 %v1549_v12  ;;  %2046 = vmatpush1.bf16.msra.mxu0 %v6767_v2  ;;  %v6782_v12 = vld [vmem:[#allocation17 + $0x80] ss:$8 sps:$4 sm:$0xff]  }
 0x20f   : > { %1715 = vmatpush1.bf16.msra.mxu1 %v6694_v11  ;;  %2047 = vmatprep.subr.bf16.mxu0 %v6775_v3  ;;  %v6784_v11 = vld [vmem:[#allocation17 + $0x84] ss:$8 sps:$4 sm:$0xff]  }
 0x210   : > { %1716 = vmatprep.subr.bf16.mxu1 %v6700_v13  ;;  %v6787_v13 = vld [vmem:[#allocation17 + $0x174] ss:$8 sps:$4 sm:$0xff]  }
 0x212   : > { %2048 = vmatpush1.bf16.msra.mxu0 %v6773_v0 }
 0x213   : > { %1717 = vmatpush1.bf16.msra.mxu1 %v6698_v14  ;;  %2049 = vmatprep.subr.bf16.mxu0 %v6781_v6  ;;  %v6785_v14 = vld [vmem:[#allocation17 + $0x170] ss:$8 sps:$4 sm:$0xff]  }
 0x214   : > { %1718 = vmatprep.subr.bf16.mxu1 %v6703_v15  ;;  %v6790_v15 = vld [vmem:[#allocation17 + $0x94] ss:$8 sps:$4 sm:$0xff]  }
 0x216   : > { %2050 = vmatpush1.bf16.msra.mxu0 %v6779_v9 }
 0x217   : > { %1719 = vmatpush1.bf16.msra.mxu1 %v6701_v16  ;;  %2051 = vmatprep.subr.bf16.mxu0 %v6787_v13  ;;  %v6788_v16 = vld [vmem:[#allocation17 + $0x90] ss:$8 sps:$4 sm:$0xff]  }
 0x218   : > { %1720 = vmatprep.subr.bf16.mxu1 %v6706_v17  ;;  %v6793_v17 = vld [vmem:[#allocation17 + $0x184] ss:$8 sps:$4 sm:$0xff]  }
 0x21a   : > { %2052 = vmatpush1.bf16.msra.mxu0 %v6785_v14 }
 0x21b   : > { %1721 = vmatpush1.bf16.msra.mxu1 %v6704_v18  ;;  %v6791_v18 = vld [vmem:[#allocation17 + $0x180] ss:$8 sps:$4 sm:$0xff]   ;;  %2053 = vmatprep.subr.bf16.mxu0 %v6793_v17 }
 0x21c   : > { %1722 = vmatprep.subr.bf16.mxu1 %v6709_v19  ;;  %v6796_v19 = vld [vmem:[#allocation17 + $0xa4] ss:$8 sps:$4 sm:$0xff]  }
 0x21e   : > { %2054 = vmatpush1.bf16.msra.mxu0 %v6791_v18 }
 0x21f   : > { %1723 = vmatpush1.bf16.msra.mxu1 %v6707_v20  ;;  %v6794_v20 = vld [vmem:[#allocation17 + $0xa0] ss:$8 sps:$4 sm:$0xff]  }
 0x220   : > { %1724 = vmatprep.subr.bf16.mxu1 %v6712_v21  ;;  %v6797_v21 = vld [vmem:[#allocation17 + $0x190] ss:$8 sps:$4 sm:$0xff]  }
 0x223   : > { %1725 = vmatpush1.bf16.msra.mxu1 %v6710_v22  ;;  %v6799_v22 = vld [vmem:[#allocation17 + $0x194] ss:$8 sps:$4 sm:$0xff]  }
 0x224   : > { %1726 = vmatprep.subr.bf16.mxu1 %v6715_v23  ;;  %v6800_v23 = vld [vmem:[#allocation17 + $0xb0] ss:$8 sps:$4 sm:$0xff]   ;;  %2055 = vmatprep.subr.bf16.mxu0 %v6799_v22 }
 0x225   : > { %2056 = vmatpush1.bf16.msra.mxu0 %v6797_v21 }
 0x227   : > { %1727 = vmatpush1.bf16.msra.mxu1 %v6713_v24  ;;  %v6802_v24 = vld [vmem:[#allocation17 + $0xb4] ss:$8 sps:$4 sm:$0xff]  }
 0x228   : > { %1728 = vmatprep.subr.bf16.mxu1 %v6718_v25  ;;  %v6805_v25 = vld [vmem:[#allocation17 + $0x1a4] ss:$8 sps:$4 sm:$0xff]  }
 0x229   : > { %2057 = vmatprep.subr.bf16.mxu0 %v6805_v25  ;;  %v6838_v25 = vld [vmem:[#allocation17 + $0x214] ss:$8 sps:$4 sm:$0xff]  }
 0x22b   : > { %1729 = vmatpush1.bf16.msra.mxu1 %v6716_v27  ;;  %v6808_v27 = vld [vmem:[#allocation17 + $0xc4] ss:$8 sps:$4 sm:$0xff]  }
 0x22c   : > { %1730 = vmatprep.subr.bf16.mxu1 %v6721_v28  ;;  %v6803_v28 = vld [vmem:[#allocation17 + $0x1a0] ss:$8 sps:$4 sm:$0xff]  }
 0x22d   : > { %2058 = vmatpush1.bf16.msra.mxu0 %v6803_v28  ;;  %v6841_v28 = vld [vmem:[#allocation17 + $0x224] ss:$8 sps:$4 sm:$0xff]  }
 0x22f   : > { %1731 = vmatpush1.bf16.msra.mxu1 %v6719_v29  ;;  %v6806_v29 = vld [vmem:[#allocation17 + $0xc0] ss:$8 sps:$4 sm:$0xff]  }
 0x230   : > { %1732 = vmatprep.subr.bf16.mxu1 %v6724_v30  ;;  %v6811_v30 = vld [vmem:[#allocation17 + $0x1b4] ss:$8 sps:$4 sm:$0xff]  }
 0x231   : > { %2059 = vmatprep.subr.bf16.mxu0 %v6811_v30 }
 0x233   : > { %1733 = vmatpush1.bf16.msra.mxu1 %v6722_v31  ;;  %v6814_v31 = vld [vmem:[#allocation17 + $0xd4] ss:$8 sps:$4 sm:$0xff]  }
 0x234   : > { %1734 = vmatprep.subr.bf16.mxu1 %v6727_v32  ;;  %v6809_v32 = vld [vmem:[#allocation17 + $0x1b0] ss:$8 sps:$4 sm:$0xff]  }
 0x235   : > { %2060 = vmatpush1.bf16.msra.mxu0 %v6809_v32 }
 0x237   : > { %1735 = vmatpush1.bf16.msra.mxu1 %v6725_v34  ;;  %v6812_v34 = vld [vmem:[#allocation17 + $0xd0] ss:$8 sps:$4 sm:$0xff]  }
 0x238   : > { %1736 = vmatprep.subr.bf16.mxu1 %v6730_v36  ;;  %v6817_v36 = vld [vmem:[#allocation17 + $0x1c4] ss:$8 sps:$4 sm:$0xff]  }
 0x239   : > { %2061 = vmatprep.subr.bf16.mxu0 %v6817_v36  ;;  %v6842_v36 = vld [vmem:[#allocation17 + $0x230] ss:$8 sps:$4 sm:$0xff]  }
 0x23b   : > { %1737 = vmatpush1.bf16.msra.mxu1 %v6728_v37  ;;  %v6820_v37 = vld [vmem:[#allocation17 + $0xe4] ss:$8 sps:$4 sm:$0xff]  }
 0x23c   : > { %1738 = vmatprep.subr.bf16.mxu1 %v6733_v38  ;;  %v6815_v38 = vld [vmem:[#allocation17 + $0x1c0] ss:$8 sps:$4 sm:$0xff]  }
 0x23d   : > { %2062 = vmatpush1.bf16.msra.mxu0 %v6815_v38  ;;  %v6845_v38 = vld [vmem:[#allocation17 + $0x240] ss:$8 sps:$4 sm:$0xff]  }
 0x23f   : > { %1739 = vmatpush1.bf16.msra.mxu1 %v6731_v39  ;;  %v6818_v39 = vld [vmem:[#allocation17 + $0xe0] ss:$8 sps:$4 sm:$0xff]  }
 0x240   : > { %1740 = vmatprep.subr.bf16.mxu1 %v6736_v40  ;;  %v6823_v40 = vld [vmem:[#allocation17 + $0x1d4] ss:$8 sps:$4 sm:$0xff]  }
 0x241   : > { %2063 = vmatprep.subr.bf16.mxu0 %v6823_v40  ;;  %v6848_v40 = vld [vmem:[#allocation17 + $0x250] ss:$8 sps:$4 sm:$0xff]  }
 0x243   : > { %1741 = vmatpush1.bf16.msra.mxu1 %v6734_v41  ;;  %v6826_v41 = vld [vmem:[#allocation17 + $0xf4] ss:$8 sps:$4 sm:$0xff]  }
 0x244   : > { %2238 = vmatprep.subr.bf16.mxu1 %v6739_v44  ;;  %v6829_v44 = vld [vmem:[#allocation17 + $0x1e4] ss:$8 sps:$4 sm:$0xff]  }
 0x246   : > { %1743 = vmatmul.mubr.bf16.vlgmr.msra.gmra.mrb[12].mxu1 %v1548_v42  ;;  %v6821_v42 = vld [vmem:[#allocation17 + $0x1d0] ss:$8 sps:$4 sm:$0xff]  }
 0x247   : > { %2239 = vmatpush1.bf16.msra.mxu1 %v6737_v43  ;;  %v6824_v43 = vld [vmem:[#allocation17 + $0xf0] ss:$8 sps:$4 sm:$0xff]   ;;  %2064 = vmatpush1.bf16.msra.mxu0 %v6821_v42  ;;  %v6851_v42 = vld [vmem:[#allocation17 + $0x260] ss:$8 sps:$4 sm:$0xff]  }
 0x248   : > { %2240 = vmatprep.subr.bf16.mxu1 %v6742_v45  ;;  %v6827_v45 = vld [vmem:[#allocation17 + $0x1e0] ss:$8 sps:$4 sm:$0xff]   ;;  %2065 = vmatprep.subr.bf16.mxu0 %v6829_v44  ;;  %v6854_v44 = vld [vmem:[#allocation17 + $0x270] ss:$8 sps:$4 sm:$0xff]  }
 0x24b   : > { %2241 = vmatpush1.bf16.msra.mxu1 %v6740_v49  ;;  %2066 = vmatpush1.bf16.msra.mxu0 %v6827_v45  ;;  %v6835_v49 = vld [vmem:[#allocation17 + $0x204] ss:$8 sps:$4 sm:$0xff]  }
 0x24c   : > { %2242 = vmatprep.subr.bf16.mxu1 %v6748_v51  ;;  %2067 = vmatprep.subr.bf16.mxu0 %v6832_v47  ;;  %v6859_v45 = vld [vmem:[#allocation17 + $0x284] ss:$8 sps:$4 sm:$0xff]   ;;  %v6857_v47 = vld [vmem:[#allocation17 + $0x280] ss:$8 sps:$4 sm:$0xff]  }
 0x24f   : > { %2243 = vmatpush1.bf16.msra.mxu1 %v6746_v54  ;;  %2068 = vmatpush1.bf16.msra.mxu0 %v6830_v48  ;;  %v6862_v48 = vld [vmem:[#allocation17 + $0x294] ss:$8 sps:$4 sm:$0xff]  }
 0x250   : > { %2244 = vmatprep.subr.bf16.mxu1 %v6754_v55  ;;  %2491 = vmatprep.subr.bf16.mxu0 %v6835_v49  ;;  %v6860_v49 = vld [vmem:[#allocation17 + $0x290] ss:$8 sps:$4 sm:$0xff]  }
 0x253   : > { %2245 = vmatpush1.bf16.msra.mxu1 %v6752_v58 }
 0x254   : > { %2246 = vmatprep.subr.bf16.mxu1 %v6760_v59 }
 0x257   : > { %2247 = vmatpush1.bf16.msra.mxu1 %v6758_v62 }
 0x258   : > { %2248 = vmatprep.subr.bf16.mxu1 %v6766_v63  ;;  %v1762_v63 = vrot.slane %v1753_v60, %v8174_v35  ;;  %v6880_v60 = vld [vmem:[#allocation17 + $0x2f4] ss:$8 sps:$4 sm:$0xff]  }
 0x25b   : > { %2249 = vmatpush1.bf16.msra.mxu1 %v6764_v4 }
 0x25c   : > { %2250 = vmatprep.subr.bf16.mxu1 %v6772_v5 }
 0x25f   : > { %2251 = vmatpush1.bf16.msra.mxu1 %v6770_v7 }
 0x260   : > { %2252 = vmatprep.subr.bf16.mxu1 %v6778_v8 }
 0x263   : > { %2253 = vmatpush1.bf16.msra.mxu1 %v6776_v10 }
 0x264   : > { %2254 = vmatprep.subr.bf16.mxu1 %v6784_v11 }
 0x267   : > { %2255 = vmatpush1.bf16.msra.mxu1 %v6782_v12 }
 0x268   : > { %2256 = vmatprep.subr.bf16.mxu1 %v6790_v15 }
 0x26b   : > { %2257 = vmatpush1.bf16.msra.mxu1 %v6788_v16 }
 0x26c   : > { %2258 = vmatprep.subr.bf16.mxu1 %v6796_v19 }
 0x26f   : > { %2259 = vmatpush1.bf16.msra.mxu1 %v6794_v20 }
 0x270   : > { %2260 = vmatprep.subr.bf16.mxu1 %v6802_v24 }
 0x273   : > { %2261 = vmatpush1.bf16.msra.mxu1 %v6800_v23  ;;  %v6833_v23 = vld [vmem:[#allocation17 + $0x200] ss:$8 sps:$4 sm:$0xff]  }
 0x274   : > { %2262 = vmatprep.subr.bf16.mxu1 %v6808_v27  ;;  %v6836_v27 = vld [vmem:[#allocation17 + $0x210] ss:$8 sps:$4 sm:$0xff]  }
 0x277   : > { %2263 = vmatpush1.bf16.msra.mxu1 %v6806_v29 }
 0x278   : > { %2264 = vmatprep.subr.bf16.mxu1 %v6814_v31  ;;  %v6839_v31 = vld [vmem:[#allocation17 + $0x220] ss:$8 sps:$4 sm:$0xff]  }
 0x27b   : > { %2265 = vmatpush1.bf16.msra.mxu1 %v6812_v34  ;;  %v6844_v34 = vld [vmem:[#allocation17 + $0x234] ss:$8 sps:$4 sm:$0xff]  }
 0x27c   : > { %2266 = vmatprep.subr.bf16.mxu1 %v6820_v37  ;;  %v6847_v37 = vld [vmem:[#allocation17 + $0x244] ss:$8 sps:$4 sm:$0xff]  }
 0x27f   : > { %2267 = vmatpush1.bf16.msra.mxu1 %v6818_v39  ;;  %v6850_v39 = vld [vmem:[#allocation17 + $0x254] ss:$8 sps:$4 sm:$0xff]  }
 0x280   : > { %2268 = vmatprep.subr.bf16.mxu1 %v6826_v41  ;;  %v6853_v41 = vld [vmem:[#allocation17 + $0x264] ss:$8 sps:$4 sm:$0xff]  }
 0x283   : > { %2269 = vmatpush1.bf16.msra.mxu1 %v6824_v43  ;;  %v6856_v43 = vld [vmem:[#allocation17 + $0x274] ss:$8 sps:$4 sm:$0xff]  }
 0x2d0   : > { %v1495_v50 = vpop.f32.mrb[12].mxu0 }
 0x2d1   : > { %v1497_v51 = vpop.f32.mrb[13].mxu0 }
 0x2d2   : > { %v1499_v52 = vpop.f32.mrb[14].mxu0 }
 0x2d3   : > { %v1500_v53 = vpop.f32.mrb[15].mxu0  ;;  %v6868_v52 = vld [vmem:[#allocation17 + $0x2b4] ss:$8 sps:$4 sm:$0xff]  }
 0x2d4   : > { %v6866_v53 = vld [vmem:[#allocation17 + $0x2b0] ss:$8 sps:$4 sm:$0xff]  }
 0x2d9   : > { %v1294_v54 = vpop.f32.mrb[8].mxu1 }
 0x2da   : > { %v1496_v55 = vadd.f32 %v1495_v50, %v1294_v54  ;;  %v1296_v56 = vpop.f32.mrb[9].mxu1  ;;  %v6865_v50 = vld [vmem:[#allocation17 + $0x2a4] ss:$8 sps:$4 sm:$0xff]  }
 0x2db   : > { %v1498_v57 = vadd.f32 %v1497_v51, %v1296_v56  ;;  %v1298_v58 = vpop.f32.mrb[10].mxu1  ;;  %v6863_v51 = vld [vmem:[#allocation17 + $0x2a0] ss:$8 sps:$4 sm:$0xff]   ;;  %v6871_v54 = vld [vmem:[#allocation17 + $0x2c4] ss:$8 sps:$4 sm:$0xff]  }
 0x2dc   : > { %v1299_v59 = vpop.f32.mrb[11].mxu1  ;;  %v6874_v56 = vld [vmem:[#allocation17 + $0x2d4] ss:$8 sps:$4 sm:$0xff]   ;;  %v6877_v58 = vld [vmem:[#allocation17 + $0x2e4] ss:$8 sps:$4 sm:$0xff]  }
 0x2dd   : > { %v6875_v59 = vld [vmem:[#allocation17 + $0x2e0] ss:$8 sps:$4 sm:$0xff]  }
 0x319   : > { %v1744_v62 = vpop.f32.mrb[12].mxu1 }
 0x31a   : > { %v1751_v2 = vadd.f32 %v1744_v62, %v1496_v55  ;;  %v1746_v3 = vpop.f32.mrb[13].mxu1  ;;  %v6869_v55 = vld [vmem:[#allocation17 + $0x2c0] ss:$8 sps:$4 sm:$0xff]  }
 0x31b   : > { %v1752_v4 = vadd.f32 %v1746_v3, %v1498_v57  ;;  %v1748_v5 = vpop.f32.mrb[14].mxu1  ;;  %v6872_v57 = vld [vmem:[#allocation17 + $0x2d0] ss:$8 sps:$4 sm:$0xff]  }
 0x31c   : > { %v1765_v0 = vadd.f32 %v1758_v61, %v1751_v2  ;;  %v1749_v6 = vpop.f32.mrb[15].mxu1  ;;  %v6878_v61 = vld [vmem:[#allocation17 + $0x2f0] ss:$8 sps:$4 sm:$0xff]  }
 0x31d   : > { %v1766_v7 = vadd.f32 %v1762_v63, %v1752_v4  ;;  %v6881_v63 = vld [vmem:[#allocation20 + $0x100] ss:$8 sps:$4 sm:$0xff]   ;;  %v6883_v2 = vld [vmem:[#allocation20 + $0x104] ss:$8 sps:$4 sm:$0xff]   ;;  %v6886_v3 = vld [vmem:[#allocation20 + $0x114] ss:$8 sps:$4 sm:$0xff]  }
 0x31e   : > { %v1767_v8 = vmax.f32 %v1765_v0, 0.0  ;;  %2819 = vmatprep.subr.bf16.mxu1 %v6883_v2  ;;  %v6890_v4 = vld [vmem:[#allocation20] ss:$8 sps:$4 sm:$0xff]   ;;  %v6892_v5 = vld [vmem:[#allocation20 + $0x4] ss:$8 sps:$4 sm:$0xff]  }
 0x31f   : > { %v1768_v9 = vmax.f32 %v1766_v7, 0.0  ;;  %v6884_v0 = vld [vmem:[#allocation20 + $0x110] ss:$8 sps:$4 sm:$0xff]   ;;  %v6898_v6 = vld [vmem:[#allocation20 + $0x14] ss:$8 sps:$4 sm:$0xff]  }
 0x320   : > { %v6889_v7 = vld [vmem:[#allocation20 + $0x124] ss:$8 sps:$4 sm:$0xff]   ;;  %v6971_v2 = vld [vmem:[#allocation20 + $0xe0] ss:$8 sps:$4 sm:$0xff]  }
 0x321   : > { %v1771_v10 = vcombine.low %v1767_v8, %v1768_v9  ;;  %v6896_v8 = vld [vmem:[#allocation20 + $0x10] ss:$8 sps:$4 sm:$0xff]   ;;  %v6904_v9 = vld [vmem:[#allocation20 + $0x24] ss:$8 sps:$4 sm:$0xff]  }
 0x323   : > { %1773 = vst [vmem:[#allocation3] sm:$0xff] %v1771_v10  ;;  %v6887_v10 = vld [vmem:[#allocation20 + $0x120] ss:$8 sps:$4 sm:$0xff]  }
 0x32a   : > { %v1776_v11 = vld [vmem:[#allocation3 + $0x1] ss:$4 sm:$0x3]  ;;  %v1825_v12 = vld [vmem:[#allocation3] ss:$4 sm:$0x3] }
 0x32b   : > { %1778 = vst.msk [vmem:[#allocation9 + $0x1] ss:$2 sm:$0x3] %vm8067_vm2, %v1776_v11  ;;  %v1828_v13 = vld [vmem:[#allocation3 + $0x2] ss:$4 sm:$0x3] }
 0x32c   : > { %v2279_v18 = vld [vmem:[#allocation3 + $0x1] ss:$4 sm:$0x3]  ;;  %v2282_v19 = vld [vmem:[#allocation3 + $0x3] ss:$4 sm:$0x3] }
 0x32d   : > { %v6895_v11 = vld [vmem:[#allocation20 + $0x134] ss:$8 sps:$4 sm:$0xff]  }
 0x332   : > { %v5862_v14 = vld.sshfl [vmem:[#allocation9] sm:$0x33 pattern:$0x76325410] }
 0x333   : > { %v1820_v15 = vcombine.high %v5862_v14, %v5862_v14  ;;  %1826 = vst.msk [vmem:[#allocation9] ss:$2 sm:$0x3] %vm8067_vm2, %v1825_v12  ;;  %1829 = vst.msk [vmem:[#allocation9 + $0x1] ss:$2 sm:$0x3] %vm8067_vm2, %v1828_v13  ;;  %v1823_v17 = vpack.c.bf16 %v5862_v14, %v5862_v14 }
 0x334   : > { %v6902_v12 = vld [vmem:[#allocation20 + $0x20] ss:$8 sps:$4 sm:$0xff]   ;;  %v6910_v13 = vld [vmem:[#allocation20 + $0x34] ss:$8 sps:$4 sm:$0xff]   ;;  %v6893_v14 = vld [vmem:[#allocation20 + $0x130] ss:$8 sps:$4 sm:$0xff]  }
 0x335   : > { %v1824_v16 = vpack.c.bf16 %v1820_v15, %v1820_v15  ;;  %v6901_v15 = vld [vmem:[#allocation20 + $0x144] ss:$8 sps:$4 sm:$0xff]  }
 0x337   : > { %2270 = vmatprep.mubr.bf16.mxu1 %v1824_v16  ;;  %v6908_v16 = vld [vmem:[#allocation20 + $0x30] ss:$8 sps:$4 sm:$0xff]  }
 0x338   : > { %2271 = vmatmul.mubr.bf16.vlgmr.msra.gmra.mrb[16].mxu1 %v1823_v17  ;;  %v6916_v17 = vld [vmem:[#allocation20 + $0x44] ss:$8 sps:$4 sm:$0xff]  }
 0x339   : > { %2820 = vmatpush1.bf16.msra.mxu1 %v6881_v63  ;;  %v6968_v63 = vld [vmem:[#allocation20 + $0xd0] ss:$8 sps:$4 sm:$0xff]  }
 0x33a   : > { %v5863_v20 = vld.sshfl [vmem:[#allocation9] sm:$0x33 pattern:$0x76325410]  ;;  %2821 = vmatprep.subr.bf16.mxu1 %v6886_v3  ;;  %v6973_v3 = vld [vmem:[#allocation20 + $0xe4] ss:$8 sps:$4 sm:$0xff]  }
 0x33b   : > { %v1872_v21 = vcombine.high %v5863_v20, %v5863_v20  ;;  %2280 = vst.msk [vmem:[#allocation9] ss:$2 sm:$0x3] %vm8067_vm2, %v2279_v18  ;;  %2283 = vst.msk [vmem:[#allocation9 + $0x1] ss:$2 sm:$0x3] %vm8067_vm2, %v2282_v19  ;;  %v1875_v24 = vpack.c.bf16 %v5863_v20, %v5863_v20 }
 0x33c   : > { %v6899_v18 = vld [vmem:[#allocation20 + $0x140] ss:$8 sps:$4 sm:$0xff]   ;;  %v6907_v19 = vld [vmem:[#allocation20 + $0x154] ss:$8 sps:$4 sm:$0xff]  }
 0x33d   : > { %v1876_v22 = vpack.c.bf16 %v1872_v21, %v1872_v21  ;;  %2822 = vmatpush1.bf16.msra.mxu1 %v6884_v0  ;;  %v6914_v20 = vld [vmem:[#allocation20 + $0x40] ss:$8 sps:$4 sm:$0xff]   ;;  %v6922_v21 = vld [vmem:[#allocation20 + $0x54] ss:$8 sps:$4 sm:$0xff]   ;;  %v6977_v0 = vld [vmem:[#allocation20 + $0xf0] ss:$8 sps:$4 sm:$0xff]  }
 0x33e   : > { %2823 = vmatprep.subr.bf16.mxu1 %v6889_v7 }
 0x33f   : > { %2069 = vmatprep.mubr.bf16.mxu0 %v1876_v22  ;;  %v6905_v22 = vld [vmem:[#allocation20 + $0x150] ss:$8 sps:$4 sm:$0xff]  }
 0x340   : > { %2070 = vmatmul.mubr.bf16.vlgmr.msra.gmra.mrb[16].mxu0 %v1875_v24  ;;  %v6920_v24 = vld [vmem:[#allocation20 + $0x50] ss:$8 sps:$4 sm:$0xff]  }
 0x341   : > { %2492 = vmatpush1.bf16.msra.mxu0 %v6833_v23  ;;  %2824 = vmatpush1.bf16.msra.mxu1 %v6887_v10  ;;  %v6913_v23 = vld [vmem:[#allocation20 + $0x164] ss:$8 sps:$4 sm:$0xff]  }
 0x342   : > { %2493 = vmatprep.subr.bf16.mxu0 %v6838_v25  ;;  %v5928_v29 = vld.sshfl [vmem:[#allocation9] sm:$0x33 pattern:$0x76325410]  ;;  %2825 = vmatprep.subr.bf16.mxu1 %v6895_v11  ;;  %v6928_v25 = vld [vmem:[#allocation20 + $0x64] ss:$8 sps:$4 sm:$0xff]  }
 0x343   : > { %v2326_v30 = vcombine.high %v5928_v29, %v5928_v29  ;;  %v2329_v62 = vpack.c.bf16 %v5928_v29, %v5928_v29  ;;  %v6926_v29 = vld [vmem:[#allocation20 + $0x60] ss:$8 sps:$4 sm:$0xff]  }
 0x345   : > { %2494 = vmatpush1.bf16.msra.mxu0 %v6836_v27  ;;  %v2330_v32 = vpack.c.bf16 %v2326_v30, %v2326_v30  ;;  %2826 = vmatpush1.bf16.msra.mxu1 %v6893_v14  ;;  %v6911_v27 = vld [vmem:[#allocation20 + $0x160] ss:$8 sps:$4 sm:$0xff]   ;;  %v6934_v30 = vld [vmem:[#allocation20 + $0x74] ss:$8 sps:$4 sm:$0xff]  }
 0x346   : > { %2495 = vmatprep.subr.bf16.mxu0 %v6841_v28  ;;  %2827 = vmatprep.subr.bf16.mxu1 %v6901_v15  ;;  %v6919_v28 = vld [vmem:[#allocation20 + $0x174] ss:$8 sps:$4 sm:$0xff]  }
 0x347   : > { %2523 = vmatprep.mubr.bf16.mxu0 %v2330_v32  ;;  %v6925_v32 = vld [vmem:[#allocation20 + $0x184] ss:$8 sps:$4 sm:$0xff]  }
 0x349   : > { %2496 = vmatpush1.bf16.msra.mxu0 %v6839_v31  ;;  %2828 = vmatpush1.bf16.msra.mxu1 %v6899_v18  ;;  %v6917_v31 = vld [vmem:[#allocation20 + $0x170] ss:$8 sps:$4 sm:$0xff]  }
 0x34a   : > { %2497 = vmatprep.subr.bf16.mxu0 %v6844_v34  ;;  %2829 = vmatprep.subr.bf16.mxu1 %v6907_v19  ;;  %v6932_v34 = vld [vmem:[#allocation20 + $0x70] ss:$8 sps:$4 sm:$0xff]  }
 0x34d   : > { %2498 = vmatpush1.bf16.msra.mxu0 %v6842_v36  ;;  %2830 = vmatpush1.bf16.msra.mxu1 %v6905_v22  ;;  %v6940_v36 = vld [vmem:[#allocation20 + $0x84] ss:$8 sps:$4 sm:$0xff]  }
 0x34e   : > { %2499 = vmatprep.subr.bf16.mxu0 %v6847_v37  ;;  %2831 = vmatprep.subr.bf16.mxu1 %v6913_v23  ;;  %v6923_v37 = vld [vmem:[#allocation20 + $0x180] ss:$8 sps:$4 sm:$0xff]  }
 0x351   : > { %2500 = vmatpush1.bf16.msra.mxu0 %v6845_v38  ;;  %2832 = vmatpush1.bf16.msra.mxu1 %v6911_v27  ;;  %v6931_v38 = vld [vmem:[#allocation20 + $0x194] ss:$8 sps:$4 sm:$0xff]  }
 0x352   : > { %2501 = vmatprep.subr.bf16.mxu0 %v6850_v39  ;;  %2833 = vmatprep.subr.bf16.mxu1 %v6919_v28  ;;  %v6938_v39 = vld [vmem:[#allocation20 + $0x80] ss:$8 sps:$4 sm:$0xff]  }
 0x355   : > { %2502 = vmatpush1.bf16.msra.mxu0 %v6848_v40  ;;  %2834 = vmatpush1.bf16.msra.mxu1 %v6917_v31  ;;  %v6929_v40 = vld [vmem:[#allocation20 + $0x190] ss:$8 sps:$4 sm:$0xff]  }
 0x356   : > { %2503 = vmatprep.subr.bf16.mxu0 %v6853_v41  ;;  %2835 = vmatprep.subr.bf16.mxu1 %v6925_v32  ;;  %v6937_v41 = vld [vmem:[#allocation20 + $0x1a4] ss:$8 sps:$4 sm:$0xff]  }
 0x359   : > { %2504 = vmatpush1.bf16.msra.mxu0 %v6851_v42  ;;  %2836 = vmatpush1.bf16.msra.mxu1 %v6923_v37  ;;  %v6935_v42 = vld [vmem:[#allocation20 + $0x1a0] ss:$8 sps:$4 sm:$0xff]  }
 0x35a   : > { %2505 = vmatprep.subr.bf16.mxu0 %v6856_v43  ;;  %2837 = vmatprep.subr.bf16.mxu1 %v6931_v38  ;;  %v6943_v43 = vld [vmem:[#allocation20 + $0x1b4] ss:$8 sps:$4 sm:$0xff]   ;;  %v6974_v38 = vld [vmem:[#allocation20 + $0x300] ss:$8 sps:$4 sm:$0xff]  }
 0x35d   : > { %2506 = vmatpush1.bf16.msra.mxu0 %v6854_v44  ;;  %2838 = vmatpush1.bf16.msra.mxu1 %v6929_v40  ;;  %v6946_v44 = vld [vmem:[#allocation20 + $0x94] ss:$8 sps:$4 sm:$0xff]  }
 0x35e   : > { %2507 = vmatprep.subr.bf16.mxu0 %v6859_v45  ;;  %2839 = vmatprep.subr.bf16.mxu1 %v6937_v41  ;;  %v6941_v45 = vld [vmem:[#allocation20 + $0x1b0] ss:$8 sps:$4 sm:$0xff]   ;;  %v6982_v40 = vld [vmem:[#allocation20 + $0x314] ss:$8 sps:$4 sm:$0xff]  }
 0x35f   : > { %v6980_v41 = vld [vmem:[#allocation20 + $0x310] ss:$8 sps:$4 sm:$0xff]  }
 0x361   : > { %2508 = vmatpush1.bf16.msra.mxu0 %v6857_v47  ;;  %2840 = vmatpush1.bf16.msra.mxu1 %v6935_v42  ;;  %v6944_v47 = vld [vmem:[#allocation20 + $0x90] ss:$8 sps:$4 sm:$0xff]  }
 0x362   : > { %2509 = vmatprep.subr.bf16.mxu0 %v6862_v48  ;;  %2841 = vmatprep.subr.bf16.mxu1 %v6943_v43  ;;  %v6949_v48 = vld [vmem:[#allocation20 + $0x1c4] ss:$8 sps:$4 sm:$0xff]  }
 0x363   : > { %v6985_v43 = vld [vmem:[#allocation20 + $0x324] ss:$8 sps:$4 sm:$0xff]  }
 0x365   : > { %2510 = vmatpush1.bf16.msra.mxu0 %v6860_v49  ;;  %2842 = vmatpush1.bf16.msra.mxu1 %v6941_v45  ;;  %v6952_v49 = vld [vmem:[#allocation20 + $0xa4] ss:$8 sps:$4 sm:$0xff]  }
 0x366   : > { %2511 = vmatprep.subr.bf16.mxu0 %v6865_v50  ;;  %v6947_v50 = vld [vmem:[#allocation20 + $0x1c0] ss:$8 sps:$4 sm:$0xff]   ;;  %2843 = vmatprep.subr.bf16.mxu1 %v6949_v48 }
 0x369   : > { %2512 = vmatpush1.bf16.msra.mxu0 %v6863_v51  ;;  %v6950_v51 = vld [vmem:[#allocation20 + $0xa0] ss:$8 sps:$4 sm:$0xff]   ;;  %2844 = vmatpush1.bf16.msra.mxu1 %v6947_v50 }
 0x36a   : > { %2513 = vmatprep.subr.bf16.mxu0 %v6868_v52  ;;  %v6953_v52 = vld [vmem:[#allocation20 + $0x1d0] ss:$8 sps:$4 sm:$0xff]  }
 0x36d   : > { %2514 = vmatpush1.bf16.msra.mxu0 %v6866_v53  ;;  %v6955_v53 = vld [vmem:[#allocation20 + $0x1d4] ss:$8 sps:$4 sm:$0xff]  }
 0x36e   : > { %2515 = vmatprep.subr.bf16.mxu0 %v6871_v54  ;;  %v6956_v54 = vld [vmem:[#allocation20 + $0xb0] ss:$8 sps:$4 sm:$0xff]   ;;  %2845 = vmatprep.subr.bf16.mxu1 %v6955_v53 }
 0x36f   : > { %2846 = vmatpush1.bf16.msra.mxu1 %v6953_v52  ;;  %v6994_v52 = vld [vmem:[#allocation20 + $0x214] ss:$8 sps:$4 sm:$0xff]   ;;  %v6989_v53 = vld [vmem:[#allocation20 + $0x330] ss:$8 sps:$4 sm:$0xff]  }
 0x371   : > { %2516 = vmatpush1.bf16.msra.mxu0 %v6869_v55  ;;  %v6958_v55 = vld [vmem:[#allocation20 + $0xb4] ss:$8 sps:$4 sm:$0xff]  }
 0x372   : > { %2517 = vmatprep.subr.bf16.mxu0 %v6874_v56  ;;  %v6961_v56 = vld [vmem:[#allocation20 + $0x1e4] ss:$8 sps:$4 sm:$0xff]  }
 0x373   : > { %2847 = vmatprep.subr.bf16.mxu1 %v6961_v56 }
 0x375   : > { %2518 = vmatpush1.bf16.msra.mxu0 %v6872_v57  ;;  %v6964_v57 = vld [vmem:[#allocation20 + $0xc4] ss:$8 sps:$4 sm:$0xff]  }
 0x376   : > { %2519 = vmatprep.subr.bf16.mxu0 %v6877_v58  ;;  %v6959_v58 = vld [vmem:[#allocation20 + $0x1e0] ss:$8 sps:$4 sm:$0xff]  }
 0x377   : > { %2848 = vmatpush1.bf16.msra.mxu1 %v6959_v58 }
 0x379   : > { %2520 = vmatpush1.bf16.msra.mxu0 %v6875_v59  ;;  %v6962_v59 = vld [vmem:[#allocation20 + $0xc0] ss:$8 sps:$4 sm:$0xff]  }
 0x37a   : > { %2521 = vmatprep.subr.bf16.mxu0 %v6880_v60  ;;  %v6967_v60 = vld [vmem:[#allocation20 + $0x1f4] ss:$8 sps:$4 sm:$0xff]  }
 0x37b   : > { %2849 = vmatprep.subr.bf16.mxu1 %v6967_v60 }
 0x37d   : > { %2522 = vmatpush1.bf16.msra.mxu0 %v6878_v61  ;;  %v6970_v61 = vld [vmem:[#allocation20 + $0xd4] ss:$8 sps:$4 sm:$0xff]  }
 0x37e   : > { %3020 = vmatprep.subr.bf16.mxu0 %v6892_v5  ;;  %v6979_v5 = vld [vmem:[#allocation20 + $0xf4] ss:$8 sps:$4 sm:$0xff]  }
 0x380   : > { %2524 = vmatmul.mubr.bf16.vlgmr.msra.gmra.mrb[20].mxu0 %v2329_v62  ;;  %v6965_v62 = vld [vmem:[#allocation20 + $0x1f0] ss:$8 sps:$4 sm:$0xff]  }
 0x381   : > { %3021 = vmatpush1.bf16.msra.mxu0 %v6890_v4  ;;  %2850 = vmatpush1.bf16.msra.mxu1 %v6965_v62  ;;  %v6976_v4 = vld [vmem:[#allocation20 + $0x304] ss:$8 sps:$4 sm:$0xff]   ;;  %v7003_v62 = vld [vmem:[#allocation20 + $0x354] ss:$8 sps:$4 sm:$0xff]  }
 0x382   : > { %3022 = vmatprep.subr.bf16.mxu0 %v6898_v6  ;;  %3365 = vmatprep.subr.bf16.mxu1 %v6976_v4  ;;  %v6988_v6 = vld [vmem:[#allocation20 + $0x204] ss:$8 sps:$4 sm:$0xff]  }
 0x383   : > { %v7009_v4 = vld [vmem:[#allocation20 + $0x364] ss:$8 sps:$4 sm:$0xff]  }
 0x385   : > { %3023 = vmatpush1.bf16.msra.mxu0 %v6896_v8 }
 0x386   : > { %3024 = vmatprep.subr.bf16.mxu0 %v6904_v9 }
 0x389   : > { %3025 = vmatpush1.bf16.msra.mxu0 %v6902_v12 }
 0x38a   : > { %3026 = vmatprep.subr.bf16.mxu0 %v6910_v13 }
 0x38d   : > { %3027 = vmatpush1.bf16.msra.mxu0 %v6908_v16 }
 0x38e   : > { %3028 = vmatprep.subr.bf16.mxu0 %v6916_v17  ;;  %v2534_v17 = vld [vmem:[#allocation18] sm:$0x3] }
 0x38f   : > { %v2539_v18 = vrot.slane %v2534_v17, %v8171_v33 }
 0x391   : > { %3029 = vmatpush1.bf16.msra.mxu0 %v6914_v20  ;;  %v2543_v20 = vrot.slane %v2534_v17, %v8174_v35  ;;  %v7025_v17 = vld [vmem:[#allocation20 + $0x390] ss:$8 sps:$4 sm:$0xff]  }
 0x392   : > { %3030 = vmatprep.subr.bf16.mxu0 %v6922_v21 }
 0x395   : > { %3031 = vmatpush1.bf16.msra.mxu0 %v6920_v24 }
 0x396   : > { %3032 = vmatprep.subr.bf16.mxu0 %v6928_v25 }
 0x399   : > { %3033 = vmatpush1.bf16.msra.mxu0 %v6926_v29 }
 0x39a   : > { %3034 = vmatprep.subr.bf16.mxu0 %v6934_v30 }
 0x39d   : > { %3035 = vmatpush1.bf16.msra.mxu0 %v6932_v34 }
 0x39e   : > { %3036 = vmatprep.subr.bf16.mxu0 %v6940_v36 }
 0x3a1   : > { %3037 = vmatpush1.bf16.msra.mxu0 %v6938_v39 }
 0x3a2   : > { %3038 = vmatprep.subr.bf16.mxu0 %v6946_v44 }
 0x3a5   : > { %3039 = vmatpush1.bf16.msra.mxu0 %v6944_v47  ;;  %v6983_v47 = vld [vmem:[#allocation20 + $0x320] ss:$8 sps:$4 sm:$0xff]  }
 0x3a6   : > { %3040 = vmatprep.subr.bf16.mxu0 %v6952_v49  ;;  %v6986_v49 = vld [vmem:[#allocation20 + $0x200] ss:$8 sps:$4 sm:$0xff]  }
 0x3a9   : > { %3041 = vmatpush1.bf16.msra.mxu0 %v6950_v51  ;;  %v6991_v51 = vld [vmem:[#allocation20 + $0x334] ss:$8 sps:$4 sm:$0xff]  }
 0x3aa   : > { %3042 = vmatprep.subr.bf16.mxu0 %v6958_v55  ;;  %v6997_v55 = vld [vmem:[#allocation20 + $0x344] ss:$8 sps:$4 sm:$0xff]  }
 0x3ad   : > { %3043 = vmatpush1.bf16.msra.mxu0 %v6956_v54  ;;  %v6992_v54 = vld [vmem:[#allocation20 + $0x210] ss:$8 sps:$4 sm:$0xff]  }
 0x3ae   : > { %3044 = vmatprep.subr.bf16.mxu0 %v6964_v57  ;;  %v7000_v57 = vld [vmem:[#allocation20 + $0x224] ss:$8 sps:$4 sm:$0xff]  }
 0x3b1   : > { %3045 = vmatpush1.bf16.msra.mxu0 %v6962_v59  ;;  %v6995_v59 = vld [vmem:[#allocation20 + $0x340] ss:$8 sps:$4 sm:$0xff]  }
 0x3b2   : > { %3046 = vmatprep.subr.bf16.mxu0 %v6970_v61  ;;  %v6998_v61 = vld [vmem:[#allocation20 + $0x220] ss:$8 sps:$4 sm:$0xff]  }
 0x3b5   : > { %3047 = vmatpush1.bf16.msra.mxu0 %v6968_v63  ;;  %v7006_v63 = vld [vmem:[#allocation20 + $0x234] ss:$8 sps:$4 sm:$0xff]  }
 0x3b6   : > { %3048 = vmatprep.subr.bf16.mxu0 %v6973_v3  ;;  %v7004_v3 = vld [vmem:[#allocation20 + $0x230] ss:$8 sps:$4 sm:$0xff]  }
 0x3b9   : > { %3049 = vmatpush1.bf16.msra.mxu0 %v6971_v2  ;;  %v7001_v2 = vld [vmem:[#allocation20 + $0x350] ss:$8 sps:$4 sm:$0xff]  }
 0x3ba   : > { %3050 = vmatprep.subr.bf16.mxu0 %v6979_v5  ;;  %v7012_v5 = vld [vmem:[#allocation20 + $0x244] ss:$8 sps:$4 sm:$0xff]  }
 0x3bd   : > { %3051 = vmatpush1.bf16.msra.mxu0 %v6977_v0  ;;  %v7007_v0 = vld [vmem:[#allocation20 + $0x360] ss:$8 sps:$4 sm:$0xff]  }
 0x3be   : > { %3566 = vmatprep.subr.bf16.mxu0 %v6988_v6  ;;  %v7010_v6 = vld [vmem:[#allocation20 + $0x240] ss:$8 sps:$4 sm:$0xff]  }
 0x40b   : > { %v2272_v7 = vpop.f32.mrb[16].mxu1 }
 0x40c   : > { %v2274_v8 = vpop.f32.mrb[17].mxu1 }
 0x40d   : > { %v2276_v9 = vpop.f32.mrb[18].mxu1 }
 0x40e   : > { %v2277_v10 = vpop.f32.mrb[19].mxu1  ;;  %v7013_v9 = vld [vmem:[#allocation20 + $0x370] ss:$8 sps:$4 sm:$0xff]  }
 0x40f   : > { %v7016_v10 = vld [vmem:[#allocation20 + $0x250] ss:$8 sps:$4 sm:$0xff]  }
 0x413   : > { %v2071_v11 = vpop.f32.mrb[16].mxu0 }
 0x414   : > { %v2273_v12 = vadd.f32 %v2272_v7, %v2071_v11  ;;  %v2073_v13 = vpop.f32.mrb[17].mxu0  ;;  %v7015_v7 = vld [vmem:[#allocation20 + $0x374] ss:$8 sps:$4 sm:$0xff]   ;;  %v7021_v11 = vld [vmem:[#allocation20 + $0x384] ss:$8 sps:$4 sm:$0xff]  }
 0x415   : > { %v2275_v14 = vadd.f32 %v2274_v8, %v2073_v13  ;;  %v2075_v15 = vpop.f32.mrb[18].mxu0  ;;  %v7018_v8 = vld [vmem:[#allocation20 + $0x254] ss:$8 sps:$4 sm:$0xff]   ;;  %v7019_v13 = vld [vmem:[#allocation20 + $0x380] ss:$8 sps:$4 sm:$0xff]  }
 0x416   : > { %v2076_v16 = vpop.f32.mrb[19].mxu0  ;;  %v7027_v15 = vld [vmem:[#allocation20 + $0x394] ss:$8 sps:$4 sm:$0xff]  }
 0x417   : > { %v7030_v16 = vld [vmem:[#allocation20 + $0x274] ss:$8 sps:$4 sm:$0xff]  }
 0x453   : > { %v2525_v19 = vpop.f32.mrb[20].mxu0 }
 0x454   : > { %v2532_v21 = vadd.f32 %v2525_v19, %v2273_v12  ;;  %v2527_v22 = vpop.f32.mrb[21].mxu0  ;;  %v7024_v12 = vld [vmem:[#allocation20 + $0x264] ss:$8 sps:$4 sm:$0xff]  }
 0x455   : > { %v2533_v23 = vadd.f32 %v2527_v22, %v2275_v14  ;;  %v2529_v24 = vpop.f32.mrb[22].mxu0  ;;  %v7022_v14 = vld [vmem:[#allocation20 + $0x260] ss:$8 sps:$4 sm:$0xff]   ;;  %v7033_v19 = vld [vmem:[#allocation20 + $0x3a4] ss:$8 sps:$4 sm:$0xff]  }
 0x456   : > { %v2546_v25 = vadd.f32 %v2539_v18, %v2532_v21  ;;  %v2530_v27 = vpop.f32.mrb[23].mxu0  ;;  %v7028_v18 = vld [vmem:[#allocation20 + $0x270] ss:$8 sps:$4 sm:$0xff]   ;;  %v7031_v21 = vld [vmem:[#allocation20 + $0x3a0] ss:$8 sps:$4 sm:$0xff]  }
 0x457   : > { %v2547_v28 = vadd.f32 %v2543_v20, %v2533_v23  ;;  %v7036_v20 = vld [vmem:[#allocation20 + $0x284] ss:$8 sps:$4 sm:$0xff]   ;;  %v7034_v22 = vld [vmem:[#allocation20 + $0x280] ss:$8 sps:$4 sm:$0xff]   ;;  %v7039_v23 = vld [vmem:[#allocation20 + $0x3b4] ss:$8 sps:$4 sm:$0xff]  }
 0x458   : > { %v2548_v29 = vmax.f32 %v2546_v25, 0.0  ;;  %v7042_v24 = vld [vmem:[#allocation20 + $0x294] ss:$8 sps:$4 sm:$0xff]   ;;  %v7037_v25 = vld [vmem:[#allocation20 + $0x3b0] ss:$8 sps:$4 sm:$0xff]  }
 0x459   : > { %v2549_v30 = vmax.f32 %v2547_v28, 0.0  ;;  %v7040_v27 = vld [vmem:[#allocation20 + $0x290] ss:$8 sps:$4 sm:$0xff]   ;;  %v7045_v28 = vld [vmem:[#allocation20 + $0x3c4] ss:$8 sps:$4 sm:$0xff]  }
 0x45b   : > { %v2552_v31 = vcombine.low %v2548_v29, %v2549_v30  ;;  %v7048_v29 = vld [vmem:[#allocation20 + $0x2a4] ss:$8 sps:$4 sm:$0xff]   ;;  %v7043_v30 = vld [vmem:[#allocation20 + $0x3c0] ss:$8 sps:$4 sm:$0xff]  }
 0x45d   : > { %5961 = vst.sshfl [vmem:[#allocation4] sm:$0x33 pattern:$0x76325410] %v2552_v31  ;;  %v7046_v31 = vld [vmem:[#allocation20 + $0x2a0] ss:$8 sps:$4 sm:$0xff]  }
 0x464   : > { %v5963_v32 = vld.sshfl [vmem:[#allocation4] sm:$0x33 pattern:$0x76325410] }
 0x465   : > { %v2654_v34 = vcombine.high %v5963_v32, %v5963_v32  ;;  %v2563_v36 = vld [vmem:[#allocation4] ss:$2 sm:$0x3]  ;;  %v8309_v39 = vpack.c.bf16 %v5963_v32, %v5963_v32  ;;  %v3155_v42 = vld [vmem:[#allocation4 + $0x1] ss:$2 sm:$0x3] }
 0x466   : > { %2565 = vst.msk [vmem:[#allocation10 + $0x1] ss:$2 sm:$0x3] %vm8067_vm2, %v2563_v36  ;;  %v7051_v32 = vld [vmem:[#allocation20 + $0x3d4] ss:$8 sps:$4 sm:$0xff]  }
 0x467   : > { %v2658_v37 = vpack.c.bf16 %v2654_v34, %v2654_v34  ;;  %v7054_v34 = vld [vmem:[#allocation20 + $0x2b4] ss:$8 sps:$4 sm:$0xff]   ;;  %v7049_v36 = vld [vmem:[#allocation20 + $0x3d0] ss:$8 sps:$4 sm:$0xff]  }
 0x469   : > { %2851 = vmatprep.mubr.bf16.mxu1 %v2658_v37 }
 0x46a   : > { %2852 = vmatmul.mubr.bf16.vlgmr.msra.gmra.mrb[20].mxu1 %v8309_v39 }
 0x46b   : > { %3366 = vmatpush1.bf16.msra.mxu1 %v6974_v38  ;;  %v7057_v38 = vld [vmem:[#allocation20 + $0x3e4] ss:$8 sps:$4 sm:$0xff]  }
 0x46c   : > { %3367 = vmatprep.subr.bf16.mxu1 %v6982_v40  ;;  %v7060_v40 = vld [vmem:[#allocation20 + $0x2c4] ss:$8 sps:$4 sm:$0xff]  }
 0x46d   : > { %v5962_v44 = vld.sshfl [vmem:[#allocation10] sm:$0x33 pattern:$0x76325410] }
 0x46e   : > { %v2607_v45 = vcombine.high %v5962_v44, %v5962_v44  ;;  %3156 = vst.msk [vmem:[#allocation10] ss:$2 sm:$0x3] %vm8067_vm2, %v3155_v42  ;;  %3157 = vst.msk [vmem:[#allocation10 + $0x1] ss:$2 sm:$0x3] %vm8067_vm2, %v7562_v1  ;;  %v2610_v50 = vpack.c.bf16 %v5962_v44, %v5962_v44 }
 0x46f   : > { %3368 = vmatpush1.bf16.msra.mxu1 %v6980_v41  ;;  %v7055_v41 = vld [vmem:[#allocation20 + $0x3e0] ss:$8 sps:$4 sm:$0xff]   ;;  %v7066_v44 = vld [vmem:[#allocation20 + $0x2d4] ss:$8 sps:$4 sm:$0xff]  }
 0x470   : > { %v2611_v48 = vpack.c.bf16 %v2607_v45, %v2607_v45  ;;  %3369 = vmatprep.subr.bf16.mxu1 %v6985_v43  ;;  %v7058_v42 = vld [vmem:[#allocation20 + $0x2c0] ss:$8 sps:$4 sm:$0xff]   ;;  %v7063_v43 = vld [vmem:[#allocation20 + $0x3f4] ss:$8 sps:$4 sm:$0xff]   ;;  %v7061_v45 = vld [vmem:[#allocation20 + $0x3f0] ss:$8 sps:$4 sm:$0xff]  }
 0x472   : > { %3052 = vmatprep.mubr.bf16.mxu0 %v2611_v48  ;;  %v7069_v48 = vld [vmem:[#allocation20 + $0x2e4] ss:$8 sps:$4 sm:$0xff]  }
 0x473   : > { %3053 = vmatmul.mubr.bf16.vlgmr.msra.gmra.mrb[24].mxu0 %v2610_v50  ;;  %3370 = vmatpush1.bf16.msra.mxu1 %v6983_v47  ;;  %v7064_v47 = vld [vmem:[#allocation20 + $0x2d0] ss:$8 sps:$4 sm:$0xff]   ;;  %v7067_v50 = vld [vmem:[#allocation20 + $0x2e0] ss:$8 sps:$4 sm:$0xff]  }
 0x474   : > { %3567 = vmatpush1.bf16.msra.mxu0 %v6986_v49  ;;  %3598 = vmatprep.mubr.bf16.mxu0 %v2658_v37  ;;  %v7052_v37 = vld [vmem:[#allocation20 + $0x2b0] ss:$8 sps:$4 sm:$0xff]  }
 0x475   : > { %3371 = vmatprep.subr.bf16.mxu1 %v6991_v51  ;;  %3568 = vmatprep.subr.bf16.mxu0 %v6994_v52  ;;  %v8317_v56 = vld.sshfl [vmem:[#allocation10] sm:$0x33 pattern:$0x76325410]  ;;  %v7072_v51 = vld [vmem:[#allocation20 + $0x2f4] ss:$8 sps:$4 sm:$0xff]  }
 0x476   : > { %v3200_v58 = vcombine.high %v8317_v56, %v8317_v56  ;;  %v3203_v49 = vpack.c.bf16 %v8317_v56, %v8317_v56  ;;  %v7070_v52 = vld [vmem:[#allocation20 + $0x2f0] ss:$8 sps:$4 sm:$0xff]  }
 0x477   : > { %3372 = vmatpush1.bf16.msra.mxu1 %v6989_v53  ;;  %v7073_v53 = vld [vmem:[#allocation23 + $0x100] ss:$8 sps:$4 sm:$0xff]   ;;  %v7087_v56 = vld [vmem:[#allocation23 + $0x14] ss:$8 sps:$4 sm:$0xff]  }
 0x478   : > { %3569 = vmatpush1.bf16.msra.mxu0 %v6992_v54  ;;  %3373 = vmatprep.subr.bf16.mxu1 %v6997_v55  ;;  %v3204_v60 = vpack.c.bf16 %v3200_v58, %v3200_v58  ;;  %v7075_v54 = vld [vmem:[#allocation23 + $0x104] ss:$8 sps:$4 sm:$0xff]   ;;  %v7078_v55 = vld [vmem:[#allocation23 + $0x114] ss:$8 sps:$4 sm:$0xff]  }
 0x479   : > { %3570 = vmatprep.subr.bf16.mxu0 %v7000_v57  ;;  %v7079_v57 = vld [vmem:[#allocation23] ss:$8 sps:$4 sm:$0xff]   ;;  %v7081_v58 = vld [vmem:[#allocation23 + $0x4] ss:$8 sps:$4 sm:$0xff]  }
 0x47a   : > { %3397 = vmatprep.mubr.bf16.mxu1 %v3204_v60  ;;  %v7084_v60 = vld [vmem:[#allocation23 + $0x124] ss:$8 sps:$4 sm:$0xff]  }
 0x47b   : > { %3374 = vmatpush1.bf16.msra.mxu1 %v6995_v59  ;;  %v7076_v59 = vld [vmem:[#allocation23 + $0x110] ss:$8 sps:$4 sm:$0xff]  }
 0x47c   : > { %3571 = vmatpush1.bf16.msra.mxu0 %v6998_v61  ;;  %3375 = vmatprep.subr.bf16.mxu1 %v7003_v62  ;;  %v7085_v61 = vld [vmem:[#allocation23 + $0x10] ss:$8 sps:$4 sm:$0xff]   ;;  %v7093_v62 = vld [vmem:[#allocation23 + $0x24] ss:$8 sps:$4 sm:$0xff]  }
 0x47d   : > { %3572 = vmatprep.subr.bf16.mxu0 %v7006_v63  ;;  %v7082_v63 = vld [vmem:[#allocation23 + $0x120] ss:$8 sps:$4 sm:$0xff]  }
 0x47f   : > { %3376 = vmatpush1.bf16.msra.mxu1 %v7001_v2  ;;  %v7091_v2 = vld [vmem:[#allocation23 + $0x20] ss:$8 sps:$4 sm:$0xff]  }
 0x480   : > { %3573 = vmatpush1.bf16.msra.mxu0 %v7004_v3  ;;  %3377 = vmatprep.subr.bf16.mxu1 %v7009_v4  ;;  %v7099_v3 = vld [vmem:[#allocation23 + $0x34] ss:$8 sps:$4 sm:$0xff]   ;;  %v7088_v4 = vld [vmem:[#allocation23 + $0x130] ss:$8 sps:$4 sm:$0xff]  }
 0x481   : > { %3574 = vmatprep.subr.bf16.mxu0 %v7012_v5  ;;  %v7096_v5 = vld [vmem:[#allocation23 + $0x144] ss:$8 sps:$4 sm:$0xff]  }
 0x483   : > { %3378 = vmatpush1.bf16.msra.mxu1 %v7007_v0  ;;  %v7097_v0 = vld [vmem:[#allocation23 + $0x30] ss:$8 sps:$4 sm:$0xff]  }
 0x484   : > { %3575 = vmatpush1.bf16.msra.mxu0 %v7010_v6  ;;  %3379 = vmatprep.subr.bf16.mxu1 %v7015_v7  ;;  %v7105_v6 = vld [vmem:[#allocation23 + $0x44] ss:$8 sps:$4 sm:$0xff]   ;;  %v7094_v7 = vld [vmem:[#allocation23 + $0x140] ss:$8 sps:$4 sm:$0xff]  }
 0x485   : > { %3576 = vmatprep.subr.bf16.mxu0 %v7018_v8  ;;  %v7102_v8 = vld [vmem:[#allocation23 + $0x154] ss:$8 sps:$4 sm:$0xff]  }
 0x487   : > { %3380 = vmatpush1.bf16.msra.mxu1 %v7013_v9  ;;  %v7103_v9 = vld [vmem:[#allocation23 + $0x40] ss:$8 sps:$4 sm:$0xff]  }
 0x488   : > { %3577 = vmatpush1.bf16.msra.mxu0 %v7016_v10  ;;  %3381 = vmatprep.subr.bf16.mxu1 %v7021_v11  ;;  %v7111_v10 = vld [vmem:[#allocation23 + $0x54] ss:$8 sps:$4 sm:$0xff]   ;;  %v7100_v11 = vld [vmem:[#allocation23 + $0x150] ss:$8 sps:$4 sm:$0xff]  }
 0x489   : > { %3578 = vmatprep.subr.bf16.mxu0 %v7024_v12  ;;  %v7108_v12 = vld [vmem:[#allocation23 + $0x164] ss:$8 sps:$4 sm:$0xff]  }
 0x48b   : > { %3382 = vmatpush1.bf16.msra.mxu1 %v7019_v13  ;;  %v7109_v13 = vld [vmem:[#allocation23 + $0x50] ss:$8 sps:$4 sm:$0xff]  }
 0x48c   : > { %3579 = vmatpush1.bf16.msra.mxu0 %v7022_v14  ;;  %3383 = vmatprep.subr.bf16.mxu1 %v7027_v15  ;;  %v7106_v14 = vld [vmem:[#allocation23 + $0x160] ss:$8 sps:$4 sm:$0xff]   ;;  %v7114_v15 = vld [vmem:[#allocation23 + $0x174] ss:$8 sps:$4 sm:$0xff]  }
 0x48d   : > { %3580 = vmatprep.subr.bf16.mxu0 %v7030_v16  ;;  %v7112_v16 = vld [vmem:[#allocation23 + $0x170] ss:$8 sps:$4 sm:$0xff]  }
 0x48f   : > { %3384 = vmatpush1.bf16.msra.mxu1 %v7025_v17  ;;  %v7117_v17 = vld [vmem:[#allocation23 + $0x64] ss:$8 sps:$4 sm:$0xff]  }
 0x490   : > { %3581 = vmatpush1.bf16.msra.mxu0 %v7028_v18  ;;  %3385 = vmatprep.subr.bf16.mxu1 %v7033_v19  ;;  %v7115_v18 = vld [vmem:[#allocation23 + $0x60] ss:$8 sps:$4 sm:$0xff]  }
 0x491   : > { %3582 = vmatprep.subr.bf16.mxu0 %v7036_v20  ;;  %v7118_v19 = vld [vmem:[#allocation23 + $0x180] ss:$8 sps:$4 sm:$0xff]   ;;  %v7120_v20 = vld [vmem:[#allocation23 + $0x184] ss:$8 sps:$4 sm:$0xff]  }
 0x493   : > { %3386 = vmatpush1.bf16.msra.mxu1 %v7031_v21  ;;  %v7121_v21 = vld [vmem:[#allocation23 + $0x70] ss:$8 sps:$4 sm:$0xff]  }
 0x494   : > { %3583 = vmatpush1.bf16.msra.mxu0 %v7034_v22  ;;  %3387 = vmatprep.subr.bf16.mxu1 %v7039_v23  ;;  %v7123_v22 = vld [vmem:[#allocation23 + $0x74] ss:$8 sps:$4 sm:$0xff]  }
 0x495   : > { %3584 = vmatprep.subr.bf16.mxu0 %v7042_v24  ;;  %v7126_v23 = vld [vmem:[#allocation23 + $0x194] ss:$8 sps:$4 sm:$0xff]   ;;  %v7124_v24 = vld [vmem:[#allocation23 + $0x190] ss:$8 sps:$4 sm:$0xff]  }
 0x497   : > { %3388 = vmatpush1.bf16.msra.mxu1 %v7037_v25  ;;  %v7129_v25 = vld [vmem:[#allocation23 + $0x84] ss:$8 sps:$4 sm:$0xff]  }
 0x498   : > { %3585 = vmatpush1.bf16.msra.mxu0 %v7040_v27  ;;  %3389 = vmatprep.subr.bf16.mxu1 %v7045_v28  ;;  %v7127_v27 = vld [vmem:[#allocation23 + $0x80] ss:$8 sps:$4 sm:$0xff]   ;;  %v7132_v28 = vld [vmem:[#allocation23 + $0x1a4] ss:$8 sps:$4 sm:$0xff]  }
 0x499   : > { %3586 = vmatprep.subr.bf16.mxu0 %v7048_v29  ;;  %v7130_v29 = vld [vmem:[#allocation23 + $0x1a0] ss:$8 sps:$4 sm:$0xff]  }
 0x49b   : > { %3390 = vmatpush1.bf16.msra.mxu1 %v7043_v30  ;;  %v7135_v30 = vld [vmem:[#allocation23 + $0x94] ss:$8 sps:$4 sm:$0xff]  }
 0x49c   : > { %3587 = vmatpush1.bf16.msra.mxu0 %v7046_v31  ;;  %3391 = vmatprep.subr.bf16.mxu1 %v7051_v32  ;;  %v7133_v31 = vld [vmem:[#allocation23 + $0x90] ss:$8 sps:$4 sm:$0xff]   ;;  %v7138_v32 = vld [vmem:[#allocation23 + $0x1b4] ss:$8 sps:$4 sm:$0xff]  }
 0x49d   : > { %3588 = vmatprep.subr.bf16.mxu0 %v7054_v34  ;;  %v7136_v34 = vld [vmem:[#allocation23 + $0x1b0] ss:$8 sps:$4 sm:$0xff]  }
 0x49f   : > { %3392 = vmatpush1.bf16.msra.mxu1 %v7049_v36  ;;  %v7141_v36 = vld [vmem:[#allocation23 + $0xa4] ss:$8 sps:$4 sm:$0xff]  }
 0x4a0   : > { %3589 = vmatpush1.bf16.msra.mxu0 %v7052_v37  ;;  %3393 = vmatprep.subr.bf16.mxu1 %v7057_v38  ;;  %v7139_v37 = vld [vmem:[#allocation23 + $0xa0] ss:$8 sps:$4 sm:$0xff]   ;;  %v7144_v38 = vld [vmem:[#allocation23 + $0x1c4] ss:$8 sps:$4 sm:$0xff]  }
 0x4a1   : > { %3590 = vmatprep.subr.bf16.mxu0 %v7060_v40  ;;  %v7142_v40 = vld [vmem:[#allocation23 + $0x1c0] ss:$8 sps:$4 sm:$0xff]  }
 0x4a3   : > { %3394 = vmatpush1.bf16.msra.mxu1 %v7055_v41  ;;  %v7147_v41 = vld [vmem:[#allocation23 + $0xb4] ss:$8 sps:$4 sm:$0xff]  }
 0x4a4   : > { %3591 = vmatpush1.bf16.msra.mxu0 %v7058_v42  ;;  %3395 = vmatprep.subr.bf16.mxu1 %v7063_v43  ;;  %v7145_v42 = vld [vmem:[#allocation23 + $0xb0] ss:$8 sps:$4 sm:$0xff]   ;;  %v7150_v43 = vld [vmem:[#allocation23 + $0x1d4] ss:$8 sps:$4 sm:$0xff]  }
 0x4a5   : > { %3592 = vmatprep.subr.bf16.mxu0 %v7066_v44  ;;  %v7148_v44 = vld [vmem:[#allocation23 + $0x1d0] ss:$8 sps:$4 sm:$0xff]  }
 0x4a7   : > { %3396 = vmatpush1.bf16.msra.mxu1 %v7061_v45  ;;  %v7151_v45 = vld [vmem:[#allocation23 + $0xc0] ss:$8 sps:$4 sm:$0xff]  }
 0x4a8   : > { %3593 = vmatpush1.bf16.msra.mxu0 %v7064_v47  ;;  %3901 = vmatprep.subr.bf16.mxu1 %v7075_v54  ;;  %v7153_v47 = vld [vmem:[#allocation23 + $0xc4] ss:$8 sps:$4 sm:$0xff]   ;;  %v7160_v54 = vld [vmem:[#allocation23 + $0x1f0] ss:$8 sps:$4 sm:$0xff]  }
 0x4a9   : > { %3594 = vmatprep.subr.bf16.mxu0 %v7069_v48  ;;  %v7154_v48 = vld [vmem:[#allocation23 + $0x1e0] ss:$8 sps:$4 sm:$0xff]  }
 0x4aa   : > { %3398 = vmatmul.mubr.bf16.vlgmr.msra.gmra.mrb[24].mxu1 %v3203_v49  ;;  %v7156_v49 = vld [vmem:[#allocation23 + $0x1e4] ss:$8 sps:$4 sm:$0xff]  }
 0x4ab   : > { %3902 = vmatpush1.bf16.msra.mxu1 %v7073_v53  ;;  %v7165_v53 = vld [vmem:[#allocation23 + $0xe4] ss:$8 sps:$4 sm:$0xff]  }
 0x4ac   : > { %3595 = vmatpush1.bf16.msra.mxu0 %v7067_v50  ;;  %3903 = vmatprep.subr.bf16.mxu1 %v7078_v55  ;;  %v7159_v50 = vld [vmem:[#allocation23 + $0xd4] ss:$8 sps:$4 sm:$0xff]   ;;  %v7163_v55 = vld [vmem:[#allocation23 + $0xe0] ss:$8 sps:$4 sm:$0xff]  }
 0x4ad   : > { %3596 = vmatprep.subr.bf16.mxu0 %v7072_v51  ;;  %v7162_v51 = vld [vmem:[#allocation23 + $0x1f4] ss:$8 sps:$4 sm:$0xff]  }
 0x4af   : > { %3904 = vmatpush1.bf16.msra.mxu1 %v7076_v59  ;;  %v7170_v59 = vld [vmem:[#allocation23 + $0xf0] ss:$8 sps:$4 sm:$0xff]  }
 0x4b0   : > { %3597 = vmatpush1.bf16.msra.mxu0 %v7070_v52  ;;  %3905 = vmatprep.subr.bf16.mxu1 %v7084_v60  ;;  %v7157_v52 = vld [vmem:[#allocation23 + $0xd0] ss:$8 sps:$4 sm:$0xff]  }
 0x4b1   : > { %4102 = vmatprep.subr.bf16.mxu0 %v7081_v58  ;;  %v7172_v58 = vld [vmem:[#allocation23 + $0xf4] ss:$8 sps:$4 sm:$0xff]  }
 0x4b3   : > { %3599 = vmatmul.mubr.bf16.vlgmr.msra.gmra.mrb[28].mxu0 %v8309_v39  ;;  %v7090_v39 = vld [vmem:[#allocation23 + $0x134] ss:$8 sps:$4 sm:$0xff]   ;;  %3906 = vmatpush1.bf16.msra.mxu1 %v7082_v63 }
 0x4b4   : > { %4103 = vmatpush1.bf16.msra.mxu0 %v7079_v57  ;;  %3907 = vmatprep.subr.bf16.mxu1 %v7090_v39  ;;  %v7169_v57 = vld [vmem:[#allocation23 + $0x304] ss:$8 sps:$4 sm:$0xff]   ;;  %v3061_v39 = vld [vmem:[#allocation21] sm:$0x3] }
 0x4b5   : > { %4104 = vmatprep.subr.bf16.mxu0 %v7087_v56  ;;  %v7179_v56 = vld [vmem:[#allocation23 + $0x204] ss:$8 sps:$4 sm:$0xff]  }
 0x4b7   : > { %3908 = vmatpush1.bf16.msra.mxu1 %v7088_v4  ;;  %v3066_v4 = vrot.slane %v3061_v39, %v8171_v33 }
 0x4b8   : > { %4105 = vmatpush1.bf16.msra.mxu0 %v7085_v61  ;;  %3909 = vmatprep.subr.bf16.mxu1 %v7096_v5 }
 0x4b9   : > { %4106 = vmatprep.subr.bf16.mxu0 %v7093_v62 }
 0x4bb   : > { %3910 = vmatpush1.bf16.msra.mxu1 %v7094_v7 }
 0x4bc   : > { %4107 = vmatpush1.bf16.msra.mxu0 %v7091_v2  ;;  %3911 = vmatprep.subr.bf16.mxu1 %v7102_v8  ;;  %v7563_v2 = vmov 1966171168  }
 0x4bd   : > { %4108 = vmatprep.subr.bf16.mxu0 %v7099_v3  ;;  %v3081_v3 = vunpack.c.l.s4 %v7563_v2  ;;  %v7177_v2 = vld [vmem:[#allocation23 + $0x200] ss:$8 sps:$4 sm:$0xff]  }
 0x4bf   : > { %3912 = vmatpush1.bf16.msra.mxu1 %v7100_v11  ;;  %v3082_v8 = vunpack.c.0.s8 %v3081_v3 }
 0x4c0   : > { %4109 = vmatpush1.bf16.msra.mxu0 %v7097_v0  ;;  %3913 = vmatprep.subr.bf16.mxu1 %v7108_v12  ;;  %v3070_v0 = vrot.slane %v3061_v39, %v8174_v35 }
 0x4c1   : > { %4110 = vmatprep.subr.bf16.mxu0 %v7105_v6 }
 0x4c3   : > { %3914 = vmatpush1.bf16.msra.mxu1 %v7106_v14 }
 0x4c4   : > { %4111 = vmatpush1.bf16.msra.mxu0 %v7103_v9  ;;  %3915 = vmatprep.subr.bf16.mxu1 %v7114_v15  ;;  %v8327_v15 = vsub.s32 %v3082_v8, %v8165_v26  ;;  %v7192_v8 = vld [vmem:[#allocation23 + $0x224] ss:$8 sps:$4 sm:$0xff]  }
 0x4c5   : > { %4112 = vmatprep.subr.bf16.mxu0 %v7111_v10 }
 0x4c7   : > { %3916 = vmatpush1.bf16.msra.mxu1 %v7112_v16 }
 0x4c8   : > { %4113 = vmatpush1.bf16.msra.mxu0 %v7109_v13  ;;  %3917 = vmatprep.subr.bf16.mxu1 %v7120_v20 }
 0x4c9   : > { %4114 = vmatprep.subr.bf16.mxu0 %v7117_v17 }
 0x4cb   : > { %3918 = vmatpush1.bf16.msra.mxu1 %v7118_v19 }
 0x4cc   : > { %4115 = vmatpush1.bf16.msra.mxu0 %v7115_v18  ;;  %3919 = vmatprep.subr.bf16.mxu1 %v7126_v23 }
 0x4cd   : > { %4116 = vmatprep.subr.bf16.mxu0 %v7123_v22 }
 0x4cf   : > { %3920 = vmatpush1.bf16.msra.mxu1 %v7124_v24 }
 0x4d0   : > { %4117 = vmatpush1.bf16.msra.mxu0 %v7121_v21  ;;  %3921 = vmatprep.subr.bf16.mxu1 %v7132_v28  ;;  %v3607_v28 = vld [vmem:[#allocation21] sm:$0x3] }
 0x4d1   : > { %4118 = vmatprep.subr.bf16.mxu0 %v7129_v25 }
 0x4d3   : > { %3922 = vmatpush1.bf16.msra.mxu1 %v7130_v29  ;;  %v3612_v29 = vrot.slane %v3607_v28, %v8171_v33 }
 0x4d4   : > { %4119 = vmatpush1.bf16.msra.mxu0 %v7127_v27  ;;  %3923 = vmatprep.subr.bf16.mxu1 %v7138_v32 }
 0x4d5   : > { %4120 = vmatprep.subr.bf16.mxu0 %v7135_v30 }
 0x4d7   : > { %3924 = vmatpush1.bf16.msra.mxu1 %v7136_v34 }
 0x4d8   : > { %4121 = vmatpush1.bf16.msra.mxu0 %v7133_v31  ;;  %3925 = vmatprep.subr.bf16.mxu1 %v7144_v38  ;;  %v3616_v31 = vrot.slane %v3607_v28, %v8174_v35  ;;  %v7211_v28 = vld [vmem:[#allocation23 + $0x370] ss:$8 sps:$4 sm:$0xff]  }
 0x4d9   : > { %4122 = vmatprep.subr.bf16.mxu0 %v7141_v36 }
 0x4db   : > { %3926 = vmatpush1.bf16.msra.mxu1 %v7142_v40 }
 0x4dc   : > { %4123 = vmatpush1.bf16.msra.mxu0 %v7139_v37  ;;  %3927 = vmatprep.subr.bf16.mxu1 %v7150_v43 }
 0x4dd   : > { %4124 = vmatprep.subr.bf16.mxu0 %v7147_v41 }
 0x4df   : > { %3928 = vmatpush1.bf16.msra.mxu1 %v7148_v44 }
 0x4e0   : > { %4125 = vmatpush1.bf16.msra.mxu0 %v7145_v42  ;;  %3929 = vmatprep.subr.bf16.mxu1 %v7156_v49 }
 0x4e1   : > { %4126 = vmatprep.subr.bf16.mxu0 %v7153_v47 }
 0x4e3   : > { %3930 = vmatpush1.bf16.msra.mxu1 %v7154_v48 }
 0x4e4   : > { %4127 = vmatpush1.bf16.msra.mxu0 %v7151_v45  ;;  %3931 = vmatprep.subr.bf16.mxu1 %v7162_v51 }
 0x4e5   : > { %4128 = vmatprep.subr.bf16.mxu0 %v7159_v50 }
 0x4e7   : > { %3932 = vmatpush1.bf16.msra.mxu1 %v7160_v54  ;;  %v7167_v54 = vld [vmem:[#allocation23 + $0x300] ss:$8 sps:$4 sm:$0xff]  }
 0x4e8   : > { %4129 = vmatpush1.bf16.msra.mxu0 %v7157_v52  ;;  %4446 = vmatprep.subr.bf16.mxu1 %v7169_v57  ;;  %v7175_v57 = vld [vmem:[#allocation23 + $0x314] ss:$8 sps:$4 sm:$0xff]  }
 0x4e9   : > { %4130 = vmatprep.subr.bf16.mxu0 %v7165_v53 }
 0x4ec   : > { %4131 = vmatpush1.bf16.msra.mxu0 %v7163_v55 }
 0x4ed   : > { %4132 = vmatprep.subr.bf16.mxu0 %v7172_v58 }
 0x4f0   : > { %4133 = vmatpush1.bf16.msra.mxu0 %v7170_v59 }
 0x4f1   : > { %4647 = vmatprep.subr.bf16.mxu0 %v7179_v56 }
 0x53d   : > { %v2853_v60 = vpop.f32.mrb[20].mxu1 }
 0x53e   : > { %v2855_v61 = vpop.f32.mrb[21].mxu1 }
 0x53f   : > { %v2857_v62 = vpop.f32.mrb[22].mxu1 }
 0x540   : > { %v2858_v63 = vpop.f32.mrb[23].mxu1 }
 0x541   : > { %v7182_v63 = vld [vmem:[#allocation23 + $0x324] ss:$8 sps:$4 sm:$0xff]  }
 0x546   : > { %v3054_v5 = vpop.f32.mrb[24].mxu0 }
 0x547   : > { %v3055_v6 = vadd.f32 %v3054_v5, %v2853_v60  ;;  %v3056_v7 = vpop.f32.mrb[25].mxu0  ;;  %v7180_v5 = vld [vmem:[#allocation23 + $0x320] ss:$8 sps:$4 sm:$0xff]  }
 0x548   : > { %v3057_v9 = vadd.f32 %v3056_v7, %v2855_v61  ;;  %v3058_v10 = vpop.f32.mrb[26].mxu0  ;;  %v7173_v61 = vld [vmem:[#allocation23 + $0x310] ss:$8 sps:$4 sm:$0xff]  }
 0x549   : > { %v3073_v11 = vadd.f32 %v3066_v4, %v3055_v6  ;;  %v3059_v12 = vpop.f32.mrb[27].mxu0  ;;  %v7185_v4 = vld [vmem:[#allocation23 + $0x214] ss:$8 sps:$4 sm:$0xff]   ;;  %v7183_v6 = vld [vmem:[#allocation23 + $0x210] ss:$8 sps:$4 sm:$0xff]  }
 0x54a   : > { %v3074_v13 = vadd.f32 %v3070_v0, %v3057_v9  ;;  %v7188_v0 = vld [vmem:[#allocation23 + $0x334] ss:$8 sps:$4 sm:$0xff]   ;;  %v7186_v9 = vld [vmem:[#allocation23 + $0x330] ss:$8 sps:$4 sm:$0xff]  }
 0x54b   : > { %v3075_v14 = vmax.f32 %v3073_v11, 0.0  ;;  %v7195_v11 = vld [vmem:[#allocation23 + $0x344] ss:$8 sps:$4 sm:$0xff]  }
 0x54c   : > { %v3076_v16 = vmax.f32 %v3074_v13, 0.0  ;;  %v7190_v13 = vld [vmem:[#allocation23 + $0x220] ss:$8 sps:$4 sm:$0xff]  }
 0x54e   : > { %v3079_v17 = vcombine.low %v3075_v14, %v3076_v16  ;;  %v7198_v14 = vld [vmem:[#allocation23 + $0x234] ss:$8 sps:$4 sm:$0xff]   ;;  %v7193_v16 = vld [vmem:[#allocation23 + $0x340] ss:$8 sps:$4 sm:$0xff]  }
 0x550   : > { %v3086_v18 = vrot.slane %v3079_v17, %v8327_v15  ;;  %v7201_v17 = vld [vmem:[#allocation23 + $0x354] ss:$8 sps:$4 sm:$0xff]  }
 0x552   : > { %v3093_v19 = vrot.slane %v3086_v18, %v8327_v15  ;;  %v3096_v20 = vcombine.high %v3086_v18, %v3086_v18  ;;  %v7196_v18 = vld [vmem:[#allocation23 + $0x230] ss:$8 sps:$4 sm:$0xff]  }
 0x554   : > { %3095 = vst.msk [vmem:[#allocation5] ss:$4 sm:$0x3] %vm8067_vm2, %v3093_v19  ;;  %v3103_v21 = vrot.slane %v3096_v20, %v8327_v15  ;;  %v7204_v19 = vld [vmem:[#allocation23 + $0x244] ss:$8 sps:$4 sm:$0xff]  }
 0x555   : > { %v7199_v20 = vld [vmem:[#allocation23 + $0x350] ss:$8 sps:$4 sm:$0xff]  }
 0x556   : > { %3106 = vst.msk [vmem:[#allocation5 + $0x2] ss:$4 sm:$0x3] %vm8067_vm2, %v3103_v21  ;;  %v7207_v21 = vld [vmem:[#allocation23 + $0x364] ss:$8 sps:$4 sm:$0xff]  }
 0x55b   : > { %v3655_v22 = vld [vmem:[#allocation5] ss:$4 sm:$0x3] }
 0x55c   : > { %3657 = vst.msk [vmem:[#allocation11 + $0x1] ss:$4 sm:$0x3] %vm8067_vm2, %v3655_v22  ;;  %v7202_v22 = vld [vmem:[#allocation23 + $0x240] ss:$8 sps:$4 sm:$0xff]  }
 0x55d   : > { %v3661_v26 = vld [vmem:[#allocation5 + $0x2] ss:$4 sm:$0x3] }
 0x55e   : > { %3663 = vst.msk [vmem:[#allocation11 + $0x3] ss:$4 sm:$0x3] %vm8067_vm2, %v3661_v26  ;;  %v4242_v59 = vld [vmem:[#allocation5 + $0x2] ss:$4 sm:$0x3] }
 0x55f   : > { %v7210_v26 = vld [vmem:[#allocation23 + $0x254] ss:$8 sps:$4 sm:$0xff]  }
 0x57d   : > { %v3399_v23 = vpop.f32.mrb[24].mxu1 }
 0x57e   : > { %v3401_v24 = vpop.f32.mrb[25].mxu1 }
 0x57f   : > { %v3403_v25 = vpop.f32.mrb[26].mxu1 }
 0x580   : > { %v3404_v27 = vpop.f32.mrb[27].mxu1  ;;  %v7208_v25 = vld [vmem:[#allocation23 + $0x250] ss:$8 sps:$4 sm:$0xff]  }
 0x581   : > { %v7216_v27 = vld [vmem:[#allocation23 + $0x264] ss:$8 sps:$4 sm:$0xff]  }
 0x586   : > { %v3600_v30 = vpop.f32.mrb[28].mxu0 }
 0x587   : > { %v3601_v32 = vadd.f32 %v3600_v30, %v3399_v23  ;;  %v3602_v34 = vpop.f32.mrb[29].mxu0  ;;  %v7205_v23 = vld [vmem:[#allocation23 + $0x360] ss:$8 sps:$4 sm:$0xff]  }
 0x588   : > { %v3603_v36 = vadd.f32 %v3602_v34, %v3401_v24  ;;  %v3604_v37 = vpop.f32.mrb[30].mxu0  ;;  %v7213_v24 = vld [vmem:[#allocation23 + $0x374] ss:$8 sps:$4 sm:$0xff]   ;;  %v7214_v30 = vld [vmem:[#allocation23 + $0x260] ss:$8 sps:$4 sm:$0xff]  }
 0x589   : > { %v3619_v38 = vadd.f32 %v3612_v29, %v3601_v32  ;;  %v3605_v40 = vpop.f32.mrb[31].mxu0  ;;  %v7219_v29 = vld [vmem:[#allocation23 + $0x384] ss:$8 sps:$4 sm:$0xff]   ;;  %v7217_v32 = vld [vmem:[#allocation23 + $0x380] ss:$8 sps:$4 sm:$0xff]  }
 0x58a   : > { %v3620_v41 = vadd.f32 %v3616_v31, %v3603_v36  ;;  %v7222_v31 = vld [vmem:[#allocation23 + $0x274] ss:$8 sps:$4 sm:$0xff]   ;;  %v7220_v36 = vld [vmem:[#allocation23 + $0x270] ss:$8 sps:$4 sm:$0xff]   ;;  %v7228_v37 = vld [vmem:[#allocation23 + $0x284] ss:$8 sps:$4 sm:$0xff]  }
 0x58b   : > { %v3621_v42 = vmax.f32 %v3619_v38, 0.0  ;;  %v7225_v34 = vld [vmem:[#allocation23 + $0x394] ss:$8 sps:$4 sm:$0xff]   ;;  %v7223_v38 = vld [vmem:[#allocation23 + $0x390] ss:$8 sps:$4 sm:$0xff]  }
 0x58c   : > { %v3622_v43 = vmax.f32 %v3620_v41, 0.0  ;;  %v7231_v40 = vld [vmem:[#allocation23 + $0x3a4] ss:$8 sps:$4 sm:$0xff]   ;;  %v7226_v41 = vld [vmem:[#allocation23 + $0x280] ss:$8 sps:$4 sm:$0xff]  }
 0x58e   : > { %v3625_v44 = vcombine.low %v3621_v42, %v3622_v43  ;;  %v7234_v42 = vld [vmem:[#allocation23 + $0x294] ss:$8 sps:$4 sm:$0xff]   ;;  %v7229_v43 = vld [vmem:[#allocation23 + $0x3a0] ss:$8 sps:$4 sm:$0xff]  }
 0x590   : > { %v3632_v45 = vrot.slane %v3625_v44, %v8327_v15  ;;  %v7237_v44 = vld [vmem:[#allocation23 + $0x3b4] ss:$8 sps:$4 sm:$0xff]  }
 0x592   : > { %v3639_v47 = vrot.slane %v3632_v45, %v8327_v15  ;;  %v3643_v48 = vcombine.high %v3632_v45, %v3632_v45  ;;  %v7232_v45 = vld [vmem:[#allocation23 + $0x290] ss:$8 sps:$4 sm:$0xff]  }
 0x594   : > { %3642 = vst.msk [vmem:[#allocation5 + $0x1] ss:$4 sm:$0x3] %vm8067_vm2, %v3639_v47  ;;  %v3650_v49 = vrot.slane %v3643_v48, %v8327_v15  ;;  %v7240_v47 = vld [vmem:[#allocation23 + $0x2a4] ss:$8 sps:$4 sm:$0xff]  }
 0x595   : > { %v7235_v48 = vld [vmem:[#allocation23 + $0x3b0] ss:$8 sps:$4 sm:$0xff]  }
 0x596   : > { %3653 = vst.msk [vmem:[#allocation5 + $0x3] ss:$4 sm:$0x3] %vm8067_vm2, %v3650_v49  ;;  %v7243_v49 = vld [vmem:[#allocation23 + $0x3c4] ss:$8 sps:$4 sm:$0xff]  }
 0x59b   : > { %v3658_v50 = vld [vmem:[#allocation5 + $0x1] ss:$4 sm:$0x3] }
 0x59c   : > { %3660 = vst.msk [vmem:[#allocation11 + $0x2] ss:$4 sm:$0x3] %vm8067_vm2, %v3658_v50  ;;  %v4240_v58 = vld [vmem:[#allocation5 + $0x1] ss:$4 sm:$0x3] }
 0x59d   : > { %v3702_v51 = vld [vmem:[#allocation5] sm:$0xff]  ;;  %v7238_v50 = vld [vmem:[#allocation23 + $0x2a0] ss:$8 sps:$4 sm:$0xff]  }
 0x59e   : > { %v3737_v52 = vcombine.high %v3702_v51, %v3702_v51  ;;  %v8351_v55 = vpack.c.bf16 %v3702_v51, %v3702_v51  ;;  %v4244_v60 = vld [vmem:[#allocation5 + $0x3] ss:$4 sm:$0x3] }
 0x59f   : > { %v7246_v51 = vld [vmem:[#allocation23 + $0x2b4] ss:$8 sps:$4 sm:$0xff]  }
 0x5a0   : > { %v3740_v53 = vpack.c.bf16 %v3737_v52, %v3737_v52  ;;  %v7241_v52 = vld [vmem:[#allocation23 + $0x3c0] ss:$8 sps:$4 sm:$0xff]  }
 0x5a2   : > { %3933 = vmatprep.mubr.bf16.mxu1 %v3740_v53 }
 0x5a3   : > { %3934 = vmatmul.mubr.bf16.vlgmr.msra.gmra.mrb[28].mxu1 %v8351_v55  ;;  %v3664_v56 = vld [vmem:[#allocation11] sm:$0xff] }
 0x5a4   : > { %4447 = vmatpush1.bf16.msra.mxu1 %v7167_v54  ;;  %v3698_v62 = vcombine.high %v3664_v56, %v3664_v56  ;;  %4241 = vst.msk [vmem:[#allocation11] ss:$4 sm:$0x3] %vm8067_vm2, %v4240_v58  ;;  %4243 = vst.msk [vmem:[#allocation11 + $0x1] ss:$4 sm:$0x3] %vm8067_vm2, %v4242_v59  ;;  %v3700_v3 = vpack.c.bf16 %v3664_v56, %v3664_v56 }
 0x5a5   : > { %4245 = vst.msk [vmem:[#allocation11 + $0x2] ss:$4 sm:$0x3] %vm8067_vm2, %v4244_v60  ;;  %4246 = vst.msk [vmem:[#allocation11 + $0x3] ss:$4 sm:$0x3] %vm8067_vm2, %v7562_v1  ;;  %4448 = vmatprep.subr.bf16.mxu1 %v7175_v57 }
 0x5a6   : > { %v3701_v39 = vpack.c.bf16 %v3698_v62, %v3698_v62  ;;  %v7244_v54 = vld [vmem:[#allocation23 + $0x2b0] ss:$8 sps:$4 sm:$0xff]   ;;  %v7252_v57 = vld [vmem:[#allocation23 + $0x2c4] ss:$8 sps:$4 sm:$0xff]   ;;  %v7250_v56 = vld [vmem:[#allocation23 + $0x2c0] ss:$8 sps:$4 sm:$0xff]  }
 0x5a7   : > { %v7247_v58 = vld [vmem:[#allocation23 + $0x3d0] ss:$8 sps:$4 sm:$0xff]   ;;  %v7255_v59 = vld [vmem:[#allocation23 + $0x3e4] ss:$8 sps:$4 sm:$0xff]   ;;  %v7258_v60 = vld [vmem:[#allocation23 + $0x2d4] ss:$8 sps:$4 sm:$0xff]  }
 0x5a8   : > { %4449 = vmatpush1.bf16.msra.mxu1 %v7173_v61  ;;  %4134 = vmatprep.mubr.bf16.mxu0 %v3701_v39  ;;  %v7253_v61 = vld [vmem:[#allocation23 + $0x3e0] ss:$8 sps:$4 sm:$0xff]   ;;  %v7261_v62 = vld [vmem:[#allocation23 + $0x3f4] ss:$8 sps:$4 sm:$0xff]   ;;  %v7264_v39 = vld [vmem:[#allocation23 + $0x2e4] ss:$8 sps:$4 sm:$0xff]  }
 0x5a9   : > { %4135 = vmatmul.mubr.bf16.vlgmr.msra.gmra.mrb[32].mxu0 %v3700_v3  ;;  %4450 = vmatprep.subr.bf16.mxu1 %v7182_v63  ;;  %v7256_v63 = vld [vmem:[#allocation23 + $0x2d0] ss:$8 sps:$4 sm:$0xff]   ;;  %v7262_v3 = vld [vmem:[#allocation23 + $0x2e0] ss:$8 sps:$4 sm:$0xff]  }
 0x5aa   : > { %4648 = vmatpush1.bf16.msra.mxu0 %v7177_v2  ;;  %4679 = vmatprep.mubr.bf16.mxu0 %v3740_v53  ;;  %v7249_v53 = vld [vmem:[#allocation23 + $0x3d4] ss:$8 sps:$4 sm:$0xff]   ;;  %v7259_v2 = vld [vmem:[#allocation23 + $0x3f0] ss:$8 sps:$4 sm:$0xff]  }
 0x5ab   : > { %4649 = vmatprep.subr.bf16.mxu0 %v7185_v4  ;;  %v7267_v4 = vld [vmem:[#allocation23 + $0x2f4] ss:$8 sps:$4 sm:$0xff]  }
 0x5ac   : > { %v8363_v7 = vld [vmem:[#allocation11] sm:$0xff]  ;;  %4451 = vmatpush1.bf16.msra.mxu1 %v7180_v5 }
 0x5ad   : > { %v4282_v10 = vcombine.high %v8363_v7, %v8363_v7  ;;  %4452 = vmatprep.subr.bf16.mxu1 %v7188_v0  ;;  %v4284_v5 = vpack.c.bf16 %v8363_v7, %v8363_v7  ;;  %v7265_v0 = vld [vmem:[#allocation23 + $0x2f0] ss:$8 sps:$4 sm:$0xff]   ;;  %v7270_v7 = vld [vmem:[%s8685_s11 + $0xc8] sm:$0xff]  }
 0x5ae   : > { %4650 = vmatpush1.bf16.msra.mxu0 %v7183_v6  ;;  %v7268_v6 = vld [vmem:[%s8685_s11 + $0xc0] sm:$0xff]  }
 0x5af   : > { %v4285_v12 = vpack.c.bf16 %v4282_v10, %v4282_v10  ;;  %4651 = vmatprep.subr.bf16.mxu0 %v7192_v8  ;;  %v7269_v8 = vld [vmem:[%s8685_s11 + $0x80] sm:$0xff]  }
 0x5b0   : > { %4453 = vmatpush1.bf16.msra.mxu1 %v7186_v9  ;;  %v7271_v9 = vld [vmem:[%s8685_s11 + $0x88] sm:$0xff]   ;;  %v7273_v10 = vld [vmem:[%s8685_s11] sm:$0xff]  }
 0x5b1   : > { %4478 = vmatprep.mubr.bf16.mxu1 %v4285_v12  ;;  %4454 = vmatprep.subr.bf16.mxu1 %v7195_v11  ;;  %v7274_v11 = vld [vmem:[%s8685_s11 + $0xd0] sm:$0xff]  }
 0x5b2   : > { %4652 = vmatpush1.bf16.msra.mxu0 %v7190_v13  ;;  %v7275_v12 = vld [vmem:[%s8685_s11 + $0x90] sm:$0xff]   ;;  %v7276_v13 = vld [vmem:[%s8685_s11 + $0x48] sm:$0xff]  }
 0x5b3   : > { %4653 = vmatprep.subr.bf16.mxu0 %v7198_v14  ;;  %v7277_v14 = vld [vmem:[%s8685_s11 + $0x8] sm:$0xff]  }
 0x5b4   : > { %4455 = vmatpush1.bf16.msra.mxu1 %v7193_v16  ;;  %v7278_v16 = vld [vmem:[%s8685_s11 + $0xd8] sm:$0xff]  }
 0x5b5   : > { %4456 = vmatprep.subr.bf16.mxu1 %v7201_v17  ;;  %v7279_v17 = vld [vmem:[%s8685_s11 + $0x98] sm:$0xff]  }
 0x5b6   : > { %4654 = vmatpush1.bf16.msra.mxu0 %v7196_v18  ;;  %v7280_v18 = vld [vmem:[%s8685_s11 + $0x50] sm:$0xff]  }
 0x5b7   : > { %4655 = vmatprep.subr.bf16.mxu0 %v7204_v19  ;;  %v7281_v19 = vld [vmem:[%s8685_s11 + $0x10] sm:$0xff]  }
 0x5b8   : > { %4457 = vmatpush1.bf16.msra.mxu1 %v7199_v20  ;;  %v7282_v20 = vld [vmem:[%s8685_s11 + $0xe0] sm:$0xff]  }
 0x5b9   : > { %4458 = vmatprep.subr.bf16.mxu1 %v7207_v21  ;;  %v7283_v21 = vld [vmem:[%s8685_s11 + $0xa0] sm:$0xff]  }
 0x5ba   : > { %4656 = vmatpush1.bf16.msra.mxu0 %v7202_v22  ;;  %v7284_v22 = vld [vmem:[%s8685_s11 + $0x58] sm:$0xff]  }
 0x5bb   : > { %4657 = vmatprep.subr.bf16.mxu0 %v7210_v26  ;;  %v7285_v26 = vld [vmem:[%s8685_s11 + $0x18] sm:$0xff]  }
 0x5bc   : > { %4459 = vmatpush1.bf16.msra.mxu1 %v7205_v23  ;;  %v7286_v23 = vld [vmem:[%s8685_s11 + $0xe8] sm:$0xff]  }
 0x5bd   : > { %4460 = vmatprep.subr.bf16.mxu1 %v7213_v24  ;;  %v7287_v24 = vld [vmem:[%s8685_s11 + $0xa8] sm:$0xff]  }
 0x5be   : > { %4658 = vmatpush1.bf16.msra.mxu0 %v7208_v25  ;;  %v7288_v25 = vld [vmem:[%s8685_s11 + $0x60] sm:$0xff]  }
 0x5bf   : > { %4659 = vmatprep.subr.bf16.mxu0 %v7216_v27  ;;  %v7289_v27 = vld [vmem:[%s8685_s11 + $0x20] sm:$0xff]  }
 0x5c0   : > { %4461 = vmatpush1.bf16.msra.mxu1 %v7211_v28  ;;  %v7290_v28 = vld [vmem:[%s8685_s11 + $0xf0] sm:$0xff]  }
 0x5c1   : > { %4462 = vmatprep.subr.bf16.mxu1 %v7219_v29  ;;  %v7291_v29 = vld [vmem:[%s8685_s11 + $0xb0] sm:$0xff]  }
 0x5c2   : > { %4660 = vmatpush1.bf16.msra.mxu0 %v7214_v30  ;;  %v7292_v30 = vld [vmem:[%s8685_s11 + $0x68] sm:$0xff]  }
 0x5c3   : > { %4661 = vmatprep.subr.bf16.mxu0 %v7222_v31  ;;  %v7293_v31 = vld [vmem:[%s8685_s11 + $0x28] sm:$0xff]  }
 0x5c4   : > { %4463 = vmatpush1.bf16.msra.mxu1 %v7217_v32  ;;  %v7294_v32 = vld [vmem:[%s8685_s11 + $0xf8] sm:$0xff]  }
 0x5c5   : > { %4464 = vmatprep.subr.bf16.mxu1 %v7225_v34  ;;  %v7295_v34 = vld [vmem:[%s8685_s11 + $0xb8] sm:$0xff]  }
 0x5c6   : > { %4662 = vmatpush1.bf16.msra.mxu0 %v7220_v36  ;;  %v7296_v36 = vld [vmem:[%s8685_s11 + $0x70] sm:$0xff]  }
 0x5c7   : > { %4663 = vmatprep.subr.bf16.mxu0 %v7228_v37  ;;  %v7297_v37 = vld [vmem:[%s8685_s11 + $0x30] sm:$0xff]  }
 0x5c8   : > { %4465 = vmatpush1.bf16.msra.mxu1 %v7223_v38  ;;  %v7298_v38 = vld [vmem:[%s8685_s11 + $0x1c0] sm:$0xff]  }
 0x5c9   : > { %4466 = vmatprep.subr.bf16.mxu1 %v7231_v40  ;;  %v7300_v40 = vld [vmem:[%s8685_s11 + $0x78] sm:$0xff]  }
 0x5ca   : > { %4664 = vmatpush1.bf16.msra.mxu0 %v7226_v41  ;;  %v7301_v41 = vld [vmem:[%s8685_s11 + $0x38] sm:$0xff]  }
 0x5cb   : > { %4665 = vmatprep.subr.bf16.mxu0 %v7234_v42  ;;  %v7304_v42 = vld [vmem:[%s8685_s11 + $0x140] sm:$0xff]  }
 0x5cc   : > { %4467 = vmatpush1.bf16.msra.mxu1 %v7229_v43 }
 0x5cd   : > { %4468 = vmatprep.subr.bf16.mxu1 %v7237_v44 }
 0x5ce   : > { %4666 = vmatpush1.bf16.msra.mxu0 %v7232_v45 }
 0x5cf   : > { %4667 = vmatprep.subr.bf16.mxu0 %v7240_v47  ;;  %v4143_v47 = vld [vmem:[%s8684_s10] sm:$0x3] }
 0x5d0   : > { %4469 = vmatpush1.bf16.msra.mxu1 %v7235_v48 }
 0x5d1   : > { %4470 = vmatprep.subr.bf16.mxu1 %v7243_v49  ;;  %v4148_v49 = vrot.slane %v4143_v47, %v8171_v33 }
 0x5d2   : > { %4668 = vmatpush1.bf16.msra.mxu0 %v7238_v50 }
 0x5d3   : > { %4669 = vmatprep.subr.bf16.mxu0 %v7246_v51  ;;  %v4152_v51 = vrot.slane %v4143_v47, %v8174_v35 }
 0x5d4   : > { %4471 = vmatpush1.bf16.msra.mxu1 %v7241_v52 }
 0x5d5   : > { %4472 = vmatprep.subr.bf16.mxu1 %v7249_v53 }
 0x5d6   : > { %4670 = vmatpush1.bf16.msra.mxu0 %v7244_v54 }
 0x5d7   : > { %4671 = vmatprep.subr.bf16.mxu0 %v7252_v57 }
 0x5d8   : > { %4473 = vmatpush1.bf16.msra.mxu1 %v7247_v58 }
 0x5d9   : > { %4474 = vmatprep.subr.bf16.mxu1 %v7255_v59 }
 0x5da   : > { %4672 = vmatpush1.bf16.msra.mxu0 %v7250_v56 }
 0x5db   : > { %4673 = vmatprep.subr.bf16.mxu0 %v7258_v60 }
 0x5dc   : > { %4475 = vmatpush1.bf16.msra.mxu1 %v7253_v61 }
 0x5dd   : > { %4476 = vmatprep.subr.bf16.mxu1 %v7261_v62 }
 0x5de   : > { %4674 = vmatpush1.bf16.msra.mxu0 %v7256_v63 }
 0x5df   : > { %4675 = vmatprep.subr.bf16.mxu0 %v7264_v39 }
 0x5e0   : > { %4477 = vmatpush1.bf16.msra.mxu1 %v7259_v2 }
 0x5e1   : > { %6388 = vmatprep.subr.bf16.mxu1 %v7268_v6 }
 0x5e2   : > { %4676 = vmatpush1.bf16.msra.mxu0 %v7262_v3 }
 0x5e3   : > { %4479 = vmatmul.mubr.bf16.vlgmr.msra.gmra.mrb[32].mxu1 %v4284_v5  ;;  %4677 = vmatprep.subr.bf16.mxu0 %v7267_v4 }
 0x5e4   : > { %6389 = vmatpush3.bf16.msra.mxu1 %v7269_v8 }
 0x5e5   : > { %6390 = vmatprep.subr.bf16.mxu1 %v7270_v7 }
 0x5e6   : > { %4678 = vmatpush1.bf16.msra.mxu0 %v7265_v0 }
 0x5e8   : > { %6391 = vmatpush3.bf16.msra.mxu1 %v7271_v9 }
 0x5e9   : > { %4680 = vmatmul.mubr.bf16.vlgmr.msra.gmra.mrb[36].mxu0 %v8351_v55  ;;  %v7272_v55 = vld [vmem:[%s8685_s11 + $0x40] sm:$0xff]   ;;  %6392 = vmatprep.subr.bf16.mxu1 %v7274_v11 }
 0x5ea   : > { %6410 = vmatprep.subr.bf16.mxu0 %v7272_v55  ;;  %v4688_v11 = vld [vmem:[%s8684_s10] sm:$0x3] }
 0x5eb   : > { %6411 = vmatpush3.bf16.msra.mxu0 %v7273_v10 }
 0x5ec   : > { %6393 = vmatpush3.bf16.msra.mxu1 %v7275_v12  ;;  %6412 = vmatprep.subr.bf16.mxu0 %v7276_v13  ;;  %v4693_v13 = vrot.slane %v4688_v11, %v8171_v33 }
 0x5ed   : > { %6394 = vmatprep.subr.bf16.mxu1 %v7278_v16  ;;  %v4697_v16 = vrot.slane %v4688_v11, %v8174_v35  ;;  %v7326_v11 = vld [vmem:[%s8685_s11 + $0x1f8] sm:$0xff]  }
 0x5ef   : > { %6413 = vmatpush3.bf16.msra.mxu0 %v7277_v14 }
 0x5f0   : > { %6395 = vmatpush3.bf16.msra.mxu1 %v7279_v17  ;;  %6414 = vmatprep.subr.bf16.mxu0 %v7280_v18 }
 0x5f1   : > { %6396 = vmatprep.subr.bf16.mxu1 %v7282_v20 }
 0x5f3   : > { %6415 = vmatpush3.bf16.msra.mxu0 %v7281_v19 }
 0x5f4   : > { %6397 = vmatpush3.bf16.msra.mxu1 %v7283_v21  ;;  %6416 = vmatprep.subr.bf16.mxu0 %v7284_v22 }
 0x5f5   : > { %6398 = vmatprep.subr.bf16.mxu1 %v7286_v23 }
 0x5f7   : > { %6417 = vmatpush3.bf16.msra.mxu0 %v7285_v26 }
 0x5f8   : > { %6399 = vmatpush3.bf16.msra.mxu1 %v7287_v24  ;;  %6418 = vmatprep.subr.bf16.mxu0 %v7288_v25 }
 0x5f9   : > { %6400 = vmatprep.subr.bf16.mxu1 %v7290_v28 }
 0x5fb   : > { %6419 = vmatpush3.bf16.msra.mxu0 %v7289_v27 }
 0x5fc   : > { %6401 = vmatpush3.bf16.msra.mxu1 %v7291_v29  ;;  %6420 = vmatprep.subr.bf16.mxu0 %v7292_v30 }
 0x5fd   : > { %6402 = vmatprep.subr.bf16.mxu1 %v7294_v32 }
 0x5ff   : > { %6421 = vmatpush3.bf16.msra.mxu0 %v7293_v31 }
 0x600   : > { %6403 = vmatpush3.bf16.msra.mxu1 %v7295_v34  ;;  %6422 = vmatprep.subr.bf16.mxu0 %v7296_v36 }
 0x601   : > { %6432 = vmatprep.subr.bf16.mxu1 %v7298_v38 }
 0x603   : > { %6423 = vmatpush3.bf16.msra.mxu0 %v7297_v37 }
 0x604   : > { %6424 = vmatprep.subr.bf16.mxu0 %v7300_v40  ;;  %v7299_v40 = vld [vmem:[%s8685_s11 + $0x180] sm:$0xff]  }
 0x607   : > { %6425 = vmatpush3.bf16.msra.mxu0 %v7301_v41  ;;  %v7302_v41 = vld [vmem:[%s8685_s11 + $0x1c8] sm:$0xff]  }
 0x608   : > { %6454 = vmatprep.subr.bf16.mxu0 %v7304_v42  ;;  %v7303_v42 = vld [vmem:[%s8685_s11 + $0x188] sm:$0xff]  }
 0x676   : > { %v3935_v43 = vpop.f32.mrb[28].mxu1 }
 0x677   : > { %v3937_v44 = vpop.f32.mrb[29].mxu1 }
 0x678   : > { %v3939_v45 = vpop.f32.mrb[30].mxu1 }
 0x679   : > { %v3940_v48 = vpop.f32.mrb[31].mxu1 }
 0x67c   : > { %v4136_v50 = vpop.f32.mrb[32].mxu0 }
 0x67d   : > { %v4137_v52 = vadd.f32 %v4136_v50, %v3935_v43  ;;  %v4138_v53 = vpop.f32.mrb[33].mxu0  ;;  %v7306_v43 = vld [vmem:[%s8685_s11 + $0x1d0] sm:$0xff]  }
 0x67e   : > { %v4139_v54 = vadd.f32 %v4138_v53, %v3937_v44  ;;  %v4140_v57 = vpop.f32.mrb[34].mxu0 }
 0x67f   : > { %v4155_v58 = vadd.f32 %v4148_v49, %v4137_v52  ;;  %v4141_v59 = vpop.f32.mrb[35].mxu0 }
 0x680   : > { %v4156_v56 = vadd.f32 %v4152_v51, %v4139_v54  ;;  %v7307_v59 = vld [vmem:[%s8685_s11 + $0x190] sm:$0xff]  }
 0x681   : > { %v4157_v60 = vmax.f32 %v4155_v58, 0.0  ;;  %v7305_v58 = vld [vmem:[%s8685_s11 + $0x100] sm:$0xff]  }
 0x682   : > { %v4158_v61 = vmax.f32 %v4156_v56, 0.0  ;;  %v7310_v56 = vld [vmem:[%s8685_s11 + $0x1d8] sm:$0xff]  }
 0x684   : > { %v4161_v62 = vcombine.low %v4157_v60, %v4158_v61  ;;  %v7312_v60 = vld [vmem:[%s8685_s11 + $0x150] sm:$0xff]   ;;  %v7311_v61 = vld [vmem:[%s8685_s11 + $0x198] sm:$0xff]  }
 0x686   : > { %v4168_v63 = vrot.slane %v4161_v62, %v8327_v15 }
 0x688   : > { %v4175_v39 = vrot.slane %v4168_v63, %v8327_v15  ;;  %v4179_v2 = vcombine.high %v4168_v63, %v4168_v63  ;;  %v7314_v63 = vld [vmem:[%s8685_s11 + $0x1e0] sm:$0xff]  }
 0x68a   : > { %4177 = vst.msk [vmem:[#allocation6] ss:$8 sm:$0x3] %vm8067_vm2, %v4175_v39  ;;  %v4186_v3 = vrot.slane %v4179_v2, %v8327_v15  ;;  %v4191_v4 = vcombine.high %v4175_v39, %v4175_v39  ;;  %v7313_v2 = vld [vmem:[%s8685_s11 + $0x110] sm:$0xff]  }
 0x68c   : > { %4189 = vst.msk [vmem:[#allocation6 + $0x2] ss:$8 sm:$0x3] %vm8067_vm2, %v4186_v3  ;;  %4194 = vst.msk [vmem:[#allocation6 + $0x4] ss:$8 sm:$0x3] %vm8067_vm2, %v4191_v4  ;;  %v4196_v5 = vcombine.high %v4186_v3, %v4186_v3 }
 0x68d   : > { %v7316_v3 = vld [vmem:[%s8685_s11 + $0x158] sm:$0xff]   ;;  %v7315_v4 = vld [vmem:[%s8685_s11 + $0x1a0] sm:$0xff]  }
 0x68e   : > { %4199 = vst.msk [vmem:[#allocation6 + $0x6] ss:$8 sm:$0x3] %vm8067_vm2, %v4196_v5  ;;  %v7318_v5 = vld [vmem:[%s8685_s11 + $0x1e8] sm:$0xff]  }
 0x691   : > { %v4749_v0 = vld [vmem:[#allocation6] ss:$8 sm:$0x3] }
 0x692   : > { %4751 = vst.msk [vmem:[#allocation12 + $0x1] ss:$8 sm:$0x3] %vm8067_vm2, %v4749_v0  ;;  %v7317_v0 = vld [vmem:[%s8685_s11 + $0x118] sm:$0xff]  }
 0x693   : > { %v4757_v6 = vld [vmem:[#allocation6 + $0x2] ss:$8 sm:$0x3]  ;;  %v4765_v8 = vld [vmem:[#allocation6 + $0x4] ss:$8 sm:$0x3] }
 0x694   : > { %4759 = vst.msk [vmem:[#allocation12 + $0x3] ss:$8 sm:$0x3] %vm8067_vm2, %v4757_v6  ;;  %4767 = vst.msk [vmem:[#allocation12 + $0x5] ss:$8 sm:$0x3] %vm8067_vm2, %v4765_v8 }
 0x695   : > { %v4773_v7 = vld [vmem:[#allocation6 + $0x6] ss:$8 sm:$0x3]  ;;  %v5185_v45 = vld [vmem:[#allocation6 + $0x2] ss:$8 sm:$0x3] }
 0x696   : > { %4775 = vst.msk [vmem:[#allocation12 + $0x7] ss:$8 sm:$0x3] %vm8067_vm2, %v4773_v7  ;;  %v5191_v47 = vld [vmem:[#allocation6 + $0x4] ss:$8 sm:$0x3] }
 0x697   : > { %v5197_v48 = vld [vmem:[#allocation6 + $0x6] ss:$8 sm:$0x3]  ;;  %v7320_v6 = vld [vmem:[%s8685_s11 + $0x160] sm:$0xff]  }
 0x698   : > { %v7319_v8 = vld [vmem:[%s8685_s11 + $0x1a8] sm:$0xff]   ;;  %v7322_v7 = vld [vmem:[%s8685_s11 + $0x1f0] sm:$0xff]  }
 0x6b6   : > { %v4480_v9 = vpop.f32.mrb[32].mxu1 }
 0x6b7   : > { %v4482_v55 = vpop.f32.mrb[33].mxu1 }
 0x6b8   : > { %v4484_v10 = vpop.f32.mrb[34].mxu1 }
 0x6b9   : > { %v4485_v12 = vpop.f32.mrb[35].mxu1  ;;  %v7323_v10 = vld [vmem:[%s8685_s11 + $0x1b0] sm:$0xff]  }
 0x6ba   : > { %v7325_v12 = vld [vmem:[%s8685_s11 + $0x128] sm:$0xff]  }
 0x6bc   : > { %v4681_v14 = vpop.f32.mrb[36].mxu0 }
 0x6bd   : > { %v4682_v17 = vadd.f32 %v4681_v14, %v4480_v9  ;;  %v4683_v18 = vpop.f32.mrb[37].mxu0  ;;  %v7321_v9 = vld [vmem:[%s8685_s11 + $0x120] sm:$0xff]   ;;  %v7327_v14 = vld [vmem:[%s8685_s11 + $0x1b8] sm:$0xff]  }
 0x6be   : > { %v4684_v19 = vadd.f32 %v4683_v18, %v4482_v55  ;;  %v4685_v20 = vpop.f32.mrb[38].mxu0  ;;  %v7324_v55 = vld [vmem:[%s8685_s11 + $0x168] sm:$0xff]   ;;  %v7330_v18 = vld [vmem:[%s8685_s11 + $0x178] sm:$0xff]  }
 0x6bf   : > { %v4700_v21 = vadd.f32 %v4693_v13, %v4682_v17  ;;  %v4686_v22 = vpop.f32.mrb[39].mxu0  ;;  %v7328_v13 = vld [vmem:[%s8685_s11 + $0x170] sm:$0xff]   ;;  %v7331_v20 = vld [vmem:[%s8685_s11 + $0x138] sm:$0xff]  }
 0x6c0   : > { %v4701_v26 = vadd.f32 %v4697_v16, %v4684_v19  ;;  %v7329_v16 = vld [vmem:[%s8685_s11 + $0x130] sm:$0xff]  }
 0x6c1   : > { %v4702_v23 = vmax.f32 %v4700_v21, 0.0 }
 0x6c2   : > { %v4703_v24 = vmax.f32 %v4701_v26, 0.0 }
 0x6c4   : > { %v4706_v25 = vcombine.low %v4702_v23, %v4703_v24 }
 0x6c6   : > { %v4713_v27 = vrot.slane %v4706_v25, %v8327_v15 }
 0x6c8   : > { %v4720_v28 = vrot.slane %v4713_v27, %v8327_v15  ;;  %v4725_v29 = vcombine.high %v4713_v27, %v4713_v27 }
 0x6ca   : > { %4723 = vst.msk [vmem:[#allocation6 + $0x1] ss:$8 sm:$0x3] %vm8067_vm2, %v4720_v28  ;;  %v4732_v33 = vrot.slane %v4725_v29, %v8327_v15  ;;  %v4737_v35 = vcombine.high %v4720_v28, %v4720_v28 }
 0x6cc   : > { %4735 = vst.msk [vmem:[#allocation6 + $0x3] ss:$8 sm:$0x3] %vm8067_vm2, %v4732_v33  ;;  %4740 = vst.msk [vmem:[#allocation6 + $0x5] ss:$8 sm:$0x3] %vm8067_vm2, %v4737_v35  ;;  %v4742_v30 = vcombine.high %v4732_v33, %v4732_v33 }
 0x6cd   : > { %v6286_v33 = vld [vmem:[%s8686_s12] ss:$0 sm:$0xff] }
 0x6ce   : > { %4745 = vst.msk [vmem:[#allocation6 + $0x7] ss:$8 sm:$0x3] %vm8067_vm2, %v4742_v30 }
 0x6d1   : > { %v4753_v31 = vld [vmem:[#allocation6 + $0x1] ss:$8 sm:$0x3] }
 0x6d2   : > { %4755 = vst.msk [vmem:[#allocation12 + $0x2] ss:$8 sm:$0x3] %vm8067_vm2, %v4753_v31  ;;  %v5182_v44 = vld [vmem:[#allocation6 + $0x1] ss:$8 sm:$0x3] }
 0x6d3   : > { %v4761_v32 = vld [vmem:[#allocation6 + $0x3] ss:$8 sm:$0x3]  ;;  %v4769_v34 = vld [vmem:[#allocation6 + $0x5] ss:$8 sm:$0x3] }
 0x6d4   : > { %4763 = vst.msk [vmem:[#allocation12 + $0x4] ss:$8 sm:$0x3] %vm8067_vm2, %v4761_v32  ;;  %4771 = vst.msk [vmem:[#allocation12 + $0x6] ss:$8 sm:$0x3] %vm8067_vm2, %v4769_v34 }
 0x6d5   : > { %v4814_v15 = vld [vmem:[#allocation6 + $0x8] sm:$0xff]  ;;  %v4813_v36 = vld [vmem:[#allocation6] sm:$0xff] }
 0x6d6   : > { %v4849_v37 = vpack.c.bf16 %v4814_v15, %v4814_v15  ;;  %v8518_v38 = vpack.c.bf16 %v4813_v36, %v4813_v36  ;;  %v5188_v49 = vld [vmem:[#allocation6 + $0x3] ss:$8 sm:$0x3]  ;;  %v5194_v50 = vld [vmem:[#allocation6 + $0x5] ss:$8 sm:$0x3] }
 0x6d7   : > { %v5200_v53 = vld [vmem:[#allocation6 + $0x7] ss:$8 sm:$0x3] }
 0x6d8   : > { %4978 = vmatprep.mubr.bf16.mxu1 %v4849_v37 }
 0x6d9   : > { %4979 = vmatmul.mubr.bf16.vlgmr.msra.gmra.mrb[36].mxu1 %v8518_v38 }
 0x6da   : > { %6433 = vmatpush3.bf16.msra.mxu1 %v7299_v40 }
 0x6db   : > { %6434 = vmatprep.subr.bf16.mxu1 %v7302_v41  ;;  %v4778_v51 = vld [vmem:[#allocation12 + $0x8] sm:$0xff]  ;;  %v4777_v52 = vld [vmem:[#allocation12] sm:$0xff] }
 0x6dc   : > { %v4812_v54 = vpack.c.bf16 %v4778_v51, %v4778_v51  ;;  %v4811_v57 = vpack.c.bf16 %v4777_v52, %v4777_v52  ;;  %5203 = vst.msk [vmem:[#allocation12 + $0x7] ss:$8 sm:$0x3] %vm8067_vm2, %v7562_v1  ;;  %5183 = vst.msk [vmem:[#allocation12] ss:$8 sm:$0x3] %vm8067_vm2, %v5182_v44 }
 0x6dd   : > { %5186 = vst.msk [vmem:[#allocation12 + $0x1] ss:$8 sm:$0x3] %vm8067_vm2, %v5185_v45  ;;  %5189 = vst.msk [vmem:[#allocation12 + $0x2] ss:$8 sm:$0x3] %vm8067_vm2, %v5188_v49 }
 0x6de   : > { %5192 = vst.msk [vmem:[#allocation12 + $0x3] ss:$8 sm:$0x3] %vm8067_vm2, %v5191_v47  ;;  %5195 = vst.msk [vmem:[#allocation12 + $0x4] ss:$8 sm:$0x3] %vm8067_vm2, %v5194_v50  ;;  %6435 = vmatpush3.bf16.msra.mxu1 %v7303_v42  ;;  %5114 = vmatprep.mubr.bf16.mxu0 %v4812_v54 }
 0x6df   : > { %5198 = vst.msk [vmem:[#allocation12 + $0x5] ss:$8 sm:$0x3] %vm8067_vm2, %v5197_v48  ;;  %5201 = vst.msk [vmem:[#allocation12 + $0x6] ss:$8 sm:$0x3] %vm8067_vm2, %v5200_v53  ;;  %5115 = vmatmul.mubr.bf16.vlgmr.msra.gmra.mrb[40].mxu0 %v4811_v57  ;;  %6436 = vmatprep.subr.bf16.mxu1 %v7306_v43 }
 0x6e0   : > { %v7308_v1 = vld [vmem:[%s8685_s11 + $0x148] sm:$0xff]   ;;  %6455 = vmatpush3.bf16.msra.mxu0 %v7305_v58  ;;  %5506 = vmatprep.mubr.bf16.mxu0 %v4849_v37 }
 0x6e1   : > { %6456 = vmatprep.subr.bf16.mxu0 %v7308_v1 }
 0x6e2   : > { %6437 = vmatpush3.bf16.msra.mxu1 %v7307_v59 }
 0x6e3   : > { %6438 = vmatprep.subr.bf16.mxu1 %v7310_v56 }
 0x6e4   : > { %6457 = vmatpush3.bf16.msra.mxu0 %v7309_v46 }
 0x6e5   : > { %6458 = vmatprep.subr.bf16.mxu0 %v7312_v60 }
 0x6e6   : > { %v5206_v62 = vld [vmem:[#allocation12 + $0x8] sm:$0xff]  ;;  %6439 = vmatpush3.bf16.msra.mxu1 %v7311_v61  ;;  %v5205_v17 = vld [vmem:[#allocation12] sm:$0xff] }
 0x6e7   : > { %v5241_v39 = vpack.c.bf16 %v5206_v62, %v5206_v62  ;;  %6440 = vmatprep.subr.bf16.mxu1 %v7314_v63  ;;  %v5240_v19 = vpack.c.bf16 %v5205_v17, %v5205_v17 }
 0x6e8   : > { %6459 = vmatpush3.bf16.msra.mxu0 %v7313_v2 }
 0x6e9   : > { %5370 = vmatprep.mubr.bf16.mxu1 %v5241_v39  ;;  %6460 = vmatprep.subr.bf16.mxu0 %v7316_v3 }
 0x6ea   : > { %6441 = vmatpush3.bf16.msra.mxu1 %v7315_v4 }
 0x6eb   : > { %6442 = vmatprep.subr.bf16.mxu1 %v7318_v5 }
 0x6ec   : > { %6461 = vmatpush3.bf16.msra.mxu0 %v7317_v0 }
 0x6ed   : > { %6462 = vmatprep.subr.bf16.mxu0 %v7320_v6 }
 0x6ee   : > { %6443 = vmatpush3.bf16.msra.mxu1 %v7319_v8 }
 0x6ef   : > { %6444 = vmatprep.subr.bf16.mxu1 %v7322_v7 }
 0x6f0   : > { %6463 = vmatpush3.bf16.msra.mxu0 %v7321_v9 }
 0x6f1   : > { %6464 = vmatprep.subr.bf16.mxu0 %v7324_v55 }
 0x6f2   : > { %6445 = vmatpush3.bf16.msra.mxu1 %v7323_v10 }
 0x6f3   : > { %6446 = vmatprep.subr.bf16.mxu1 %v7326_v11 }
 0x6f4   : > { %6465 = vmatpush3.bf16.msra.mxu0 %v7325_v12 }
 0x6f5   : > { %6466 = vmatprep.subr.bf16.mxu0 %v7328_v13 }
 0x6f6   : > { %6447 = vmatpush3.bf16.msra.mxu1 %v7327_v14 }
 0x6f8   : > { %6467 = vmatpush3.bf16.msra.mxu0 %v7329_v16 }
 0x6f9   : > { %5371 = vmatmul.mubr.bf16.vlgmr.msra.gmra.mrb[40].mxu1 %v5240_v19  ;;  %6468 = vmatprep.subr.bf16.mxu0 %v7330_v18 }
 0x6fc   : > { %6469 = vmatpush3.bf16.msra.mxu0 %v7331_v20 }
 0x6ff   : > { %5507 = vmatmul.mubr.bf16.vlgmr.msra.gmra.mrb[44].mxu0 %v8518_v38 }
 0x7ac   : > { %v6404_v21 = vpop.f32.mrb[36].mxu1 }
 0x7ad   : > { %v6405_v22 = vpop.f32.mrb[37].mxu1 }
 0x7ae   : > { %v6406_v26 = vadd.f32 %v6405_v22, %v6404_v21  ;;  %v6407_v23 = vpop.f32.mrb[38].mxu1 }
 0x7af   : > { %v6408_v24 = vpop.f32.mrb[39].mxu1 }
 0x7b2   : > { %v6426_v25 = vpop.f32.mrb[40].mxu0 }
 0x7b3   : > { %v6427_v27 = vpop.f32.mrb[41].mxu0 }
 0x7b4   : > { %v6428_v28 = vadd.f32 %v6427_v27, %v6426_v25  ;;  %v6429_v29 = vpop.f32.mrb[42].mxu0 }
 0x7b5   : > { %v6430_v35 = vpop.f32.mrb[43].mxu0 }
 0x7b6   : > { %v5117_v30 = vadd.f32 %v6428_v28, %v6406_v26 }
 0x7b8   : > { %v5129_v31 = vadd.f32 %v6286_v33, %v5117_v30 }
 0x7ba   : > { %5130 = vst.msk [vmem:[%s8637_s8] sm:$0x1] %vm538_vm0, %v5129_v31 }
 0x7bb   : > { %5132 = vst.msk [vmem:[%s8637_s8 + $0x1] sm:$0x2] %vm5131_vm3, %v5129_v31 }
 0x7bc   : > { %5134 = vst.msk [vmem:[%s8637_s8 + $0x2] sm:$0x4] %vm5133_vm4, %v5129_v31 }
 0x7bd   : > { %5136 = vst.msk [vmem:[%s8637_s8 + $0x3] sm:$0x8] %vm5135_vm5, %v5129_v31 }
 0x7be   : > { %5138 = vst.msk [vmem:[%s8637_s8 + $0x4] sm:$0x10] %vm5137_vm6, %v5129_v31 }
 0x7bf   : > { %5140 = vst.msk [vmem:[%s8637_s8 + $0x5] sm:$0x20] %vm5139_vm7, %v5129_v31 }
 0x7c0   : > { %5142 = vst.msk [vmem:[%s8637_s8 + $0x6] sm:$0x40] %vm5141_vm8, %v5129_v31 }
 0x7c1   : > { %5144 = vst.msk [vmem:[%s8637_s8 + $0x7] sm:$0x80] %vm5143_vm9, %v5129_v31 }
 0x7cc   : > { %v6448_v32 = vpop.f32.mrb[40].mxu1 }
 0x7cd   : > { %v6449_v34 = vpop.f32.mrb[41].mxu1 }
 0x7ce   : > { %v6450_v15 = vadd.f32 %v6449_v34, %v6448_v32  ;;  %v6451_v36 = vpop.f32.mrb[42].mxu1 }
 0x7cf   : > { %v6452_v37 = vpop.f32.mrb[43].mxu1 }
 0x7d2   : > { %v6470_v38 = vpop.f32.mrb[44].mxu0 }
 0x7d3   : > { %v6471_v40 = vpop.f32.mrb[45].mxu0 }
 0x7d4   : > { %v6472_v41 = vadd.f32 %v6471_v40, %v6470_v38  ;;  %v6473_v42 = vpop.f32.mrb[46].mxu0 }
 0x7d5   : > { %v6474_v43 = vpop.f32.mrb[47].mxu0 }
 0x7d6   : > { %v5509_v44 = vadd.f32 %v6472_v41, %v6450_v15 }
 0x7d8   : > { %v5521_v45 = vadd.f32 %v6286_v33, %v5509_v44 }
 0x7da   : > { %5522 = vst.msk [vmem:[%s8637_s8 + $0x1] sm:$0x1] %vm538_vm0, %v5521_v45 }
 0x7db   : > { %5523 = vst.msk [vmem:[%s8637_s8 + $0x2] sm:$0x2] %vm5131_vm3, %v5521_v45 }
 0x7dc   : > { %5524 = vst.msk [vmem:[%s8637_s8 + $0x3] sm:$0x4] %vm5133_vm4, %v5521_v45 }
 0x7dd   : > { %5525 = vst.msk [vmem:[%s8637_s8 + $0x4] sm:$0x8] %vm5135_vm5, %v5521_v45 }
 0x7de   : > { %5526 = vst.msk [vmem:[%s8637_s8 + $0x5] sm:$0x10] %vm5137_vm6, %v5521_v45 }
 0x7df   : > { %5527 = vst.msk [vmem:[%s8637_s8 + $0x6] sm:$0x20] %vm5139_vm7, %v5521_v45 }
 0x7e0   : > { %5528 = vst.msk [vmem:[%s8637_s8 + $0x7] sm:$0x40] %vm5141_vm8, %v5521_v45 }
 0x7e1   : > { %5529 = vst.msk [vmem:[%s8637_s8 + $0x8] sm:$0x80] %vm5143_vm9, %v5521_v45 }
 0x7e2 PF: > { %s8712_s28 = sld [smem:[#allocation28_spill]] }
 0x7e8   : > { %s27_s25 = sadd.s32 1, %s8712_s28  }
 0x7e9   : > { %p24_p11 = scmp.ge.s32.totalorder %s27_s25, 4  }
 0x7eb   :  { %26 = sbr.rel (!%p24_p11) target bundleno = 8 (0x8), region = 184 }
 0x7f2   :  { %5551 = vsyncpa [#allocation14], 1 }
 0x7f3   :  { %5553 = vsyncpa [#allocation14 + $0x1], 1 }
 0x7f4   :  { %5554 = vsyncpa [#allocation16], 1 }
 0x7f5   :  { %5555 = vsyncpa [#allocation19], 1 }
 0x7f6   :  { %5556 = vsyncpa [#allocation22], 1 }

</bundles_post_ra>
